<compile_context>
chip_gen: v7x
topology: tpu7x:2x2x1
jax: 0.10.0
libtpu: 0.0.40
codegen_flags: <defaults>
</compile_context>

<pallas_src>
import functools

import jax
import jax.numpy as jnp
from jax.experimental import pallas as pl
from jax.experimental.pallas import tpu as pltpu


def _layernorm(x, g, b, eps=1e-5):
    mu = jnp.mean(x, axis=-1, keepdims=True)
    var = jnp.mean((x - mu) ** 2, axis=-1, keepdims=True)
    return (x - mu) * jax.lax.rsqrt(var + eps) * g + b


# ----------------------------------------------------------------------------
# Fused kernel: one grid step per encoder layer
#   step 0: embedding + pos-enc + model_feat   -> feat (VMEM scratch)
#   step 1: model_shared(feat)  + masked mean  -> rep_shared
#   step 2: model_distinct(feat)+ masked mean  -> rep_distinct, fc, sigmoid
# ----------------------------------------------------------------------------
def fused_forward_kernel(seq_ref,                       # SMEM (B,) int32
                         x_ref, pe_ref, emb_w_ref, emb_b_ref,
                         wqkv_ref, bqkv_ref, wo_ref, bo_ref,
                         ln1g_ref, ln1b_ref, w1_ref, b1_ref,
                         w2t_ref, b2_ref, ln2g_ref, ln2b_ref,
                         fc_w_ref, fc_b_ref,
                         rep_s_ref, rep_d_ref, pred_ref,
                         feat_sc,                       # VMEM (B*S, D) f32
                         *, n_head, batch, seq_len):
    B, S = batch, seq_len
    BS = B * S
    D = pe_ref.shape[1]
    dh = D // n_head
    scale = 1.0 / (dh ** 0.5)
    step = pl.program_id(0)

    # --- key-padding mask built in-kernel from SMEM scalars (VPU filler) ------
    pos = jax.lax.broadcasted_iota(jnp.int32, (B, S), 1)
    bidx = jax.lax.broadcasted_iota(jnp.int32, (B, S), 0)
    valid = jnp.zeros((B, S), jnp.float32)
    for b in range(B):                                   # static unroll, tiny B
        valid = jnp.where((bidx == b) & (pos < seq_ref[b]), 1.0, valid)
    add_mask = ((1.0 - valid) * -1e9)[:, None, :]        # (B, 1, S), finite

    # --- step 0: embedding + learnable positional encoding (dropout p=0) ------
    @pl.when(step == 0)
    def _():
        xb = x_ref[...].astype(jnp.bfloat16)
        h0 = (jnp.dot(xb, emb_w_ref[...], preferred_element_type=jnp.float32)
              + emb_b_ref[...]
              + jnp.tile(pe_ref[...], (B, 1)))           # (BS, D) f32
        feat_sc[...] = h0

    # Layer input: embedding at step 0, feat at steps 1 and 2.
    h_in = feat_sc[...]                                  # (BS, D) f32

    # --- one post-norm TransformerEncoderLayer (this step's weight slab) ------
    hb = h_in.astype(jnp.bfloat16)
    qkv = (jnp.dot(hb, wqkv_ref[0], preferred_element_type=jnp.float32)
           + bqkv_ref[0])                                # (BS, 3D) f32
    q3 = qkv[:, 0 * D:1 * D].reshape(B, S, D).astype(jnp.bfloat16)
    k3 = qkv[:, 1 * D:2 * D].reshape(B, S, D).astype(jnp.bfloat16)
    v3 = qkv[:, 2 * D:3 * D].reshape(B, S, D).astype(jnp.bfloat16)

    o_heads = []
    for hd in range(n_head):                             # static loop, batched over B
        lo = hd * dh
        s = (jnp.einsum('bqd,bkd->bqk', q3[:, :, lo:lo + dh], k3[:, :, lo:lo + dh],
                        preferred_element_type=jnp.float32) * scale + add_mask)
        s = s - jnp.max(s, axis=-1, keepdims=True)
        p = jnp.exp(s)
        p = p * pl.reciprocal(jnp.sum(p, axis=-1, keepdims=True), approx=True)
        o_heads.append(jnp.einsum('bqk,bkd->bqd', p.astype(jnp.bfloat16),
                                  v3[:, :, lo:lo + dh],
                                  preferred_element_type=jnp.float32))
    # Heads all live inside one 128-lane tile (D=32): cheap lane concat, then a
    # single full-width Wo matmul.
    o = jnp.concatenate(o_heads, axis=-1).reshape(BS, D)
    attn = (jnp.dot(o.astype(jnp.bfloat16), wo_ref[0],
                    preferred_element_type=jnp.float32) + bo_ref[0])

    # residual + LayerNorm1 (attention dropout = identity, eval mode)
    y = _layernorm(h_in + attn, ln1g_ref[0], ln1b_ref[0])

    # feed-forward: relu(y W1 + b1) W2 + b2   (W2 stored transposed, lane-dense)
    f1 = jnp.maximum(
        jnp.dot(y.astype(jnp.bfloat16), w1_ref[0],
                preferred_element_type=jnp.float32) + b1_ref[0], 0.0)
    f2 = jax.lax.dot_general(
        f1.astype(jnp.bfloat16), w2t_ref[0],
        (((1,), (1,)), ((), ())),                        # contract DFF vs DFF
        preferred_element_type=jnp.float32) + b2_ref[0]

    out = _layernorm(y + f2, ln2g_ref[0], ln2b_ref[0])   # (BS, D) f32

    @pl.when(step == 0)
    def _():
        feat_sc[...] = out                               # feat for steps 1 and 2

    # --- masked mean pooling as a single (B, BS) @ (BS, D) matmul -------------
    def pooled():
        row = jax.lax.broadcasted_iota(jnp.int32, (B, BS), 0)
        col = jax.lax.broadcasted_iota(jnp.int32, (B, BS), 1)
        pmat = jnp.zeros((B, BS), jnp.float32)
        for b in range(B):
            sel = (row == b) & (col >= b * S) & (col < b * S + seq_ref[b])
            pmat = jnp.where(sel, 1.0, pmat)
        denom = jnp.maximum(jnp.sum(pmat, axis=-1, keepdims=True), 1.0)
        pmat = pmat * pl.reciprocal(denom, approx=True)
        return jnp.dot(pmat, out, preferred_element_type=jnp.float32)   # (B, D)

    @pl.when(step == 1)
    def _():
        rep_s_ref[...] = pooled().astype(rep_s_ref.dtype)

    @pl.when(step == 2)
    def _():
        rep_d = pooled()
        rep_d_ref[...] = rep_d.astype(rep_d_ref.dtype)
        logits = (jnp.dot(rep_d.astype(jnp.bfloat16), fc_w_ref[...],
                          preferred_element_type=jnp.float32) + fc_b_ref[...])
        pred_ref[...] = jax.nn.sigmoid(logits).astype(pred_ref.dtype)


# ----------------------------------------------------------------------------
# pallas_call wrapper
# ----------------------------------------------------------------------------
def ehr_transformer_forward(x, seq_lengths, params, n_head):
    B, S, F = x.shape
    D = params["emb_w"].shape[1]
    C = params["fc_w"].shape[1]
    DFF = params["w1"].shape[-1]
    n_layers = params["wqkv"].shape[0]
    assert n_layers == 3 and D % n_head == 0

    x2 = x.reshape(B * S, F)
    pe = params["pe"][:S]                                # (S, D), broadcast in-kernel
    seq32 = seq_lengths.astype(jnp.int32)

    def const_spec(shape):
        return pl.BlockSpec(shape, lambda l, seq: (0, 0))

    def layer_spec(shape):                               # streamed per grid step
        return pl.BlockSpec((1,) + shape, lambda l, seq: (l, 0, 0))

    in_specs = [
        const_spec((B * S, F)),        # x2
        const_spec((S, D)),            # pe
        const_spec((F, D)),            # emb_w
        const_spec((1, D)),            # emb_b
        layer_spec((D, 3 * D)),        # wqkv
        layer_spec((1, 3 * D)),        # bqkv
        layer_spec((D, D)),            # wo
        layer_spec((1, D)),            # bo
        layer_spec((1, D)),            # ln1g
        layer_spec((1, D)),            # ln1b
        layer_spec((D, DFF)),          # w1
        layer_spec((1, DFF)),          # b1
        layer_spec((D, DFF)),          # w2t (transposed W2)
        layer_spec((1, D)),            # b2
        layer_spec((1, D)),            # ln2g
        layer_spec((1, D)),            # ln2b
        const_spec((D, C)),            # fc_w
        const_spec((1, C)),            # fc_b
    ]

    out_specs = (const_spec((B, D)), const_spec((B, D)), const_spec((B, C)))

    grid_spec = pltpu.PrefetchScalarGridSpec(
        num_scalar_prefetch=1,
        grid=(n_layers,),
        in_specs=in_specs,
        out_specs=out_specs,
        scratch_shapes=[pltpu.VMEM((B * S, D), jnp.float32)],   # feat carry
    )

    kernel = functools.partial(fused_forward_kernel,
                               n_head=n_head, batch=B, seq_len=S)

    return pl.pallas_call(
        kernel,
        out_shape=(
            jax.ShapeDtypeStruct((B, D), jnp.float32),
            jax.ShapeDtypeStruct((B, D), jnp.float32),
            jax.ShapeDtypeStruct((B, C), jnp.float32),
        ),
        grid_spec=grid_spec,
        compiler_params=pltpu.CompilerParams(
            dimension_semantics=("arbitrary",),          # feat carried across steps
            vmem_limit_bytes=32 * 1024 * 1024,
        ),
    )(seq32, x2, pe, params["emb_w"], params["emb_b"],
      params["wqkv"], params["bqkv"], params["wo"], params["bo"],
      params["ln1g"], params["ln1b"], params["w1"], params["b1"],
      params["w2t"], params["b2"], params["ln2g"], params["ln2b"],
      params["fc_w"], params["fc_b"])


# ----------------------------------------------------------------------------
# Parameter init (deterministic, synthetic).  Matmul weights in bf16, biases /
# LayerNorm params / pe in f32.  Layer order: [0]=feat, [1]=shared, [2]=distinct.
# ----------------------------------------------------------------------------
def init_params(key, input_size, d_model, dff, num_classes, max_len, n_layers=3):
    keys = iter(jax.random.split(key, 32))
    bf = jnp.bfloat16

    def u(shape, dtype=jnp.float32, s=0.1):
        return jax.random.uniform(next(keys), shape, jnp.float32, -s, s).astype(dtype)

    return dict(
        emb_w=u((input_size, d_model), bf),
        emb_b=u((1, d_model)),
        pe=u((max_len, d_model)),                      # LearnablePositionalEncoding.pe[0]
        fc_w=u((d_model, num_classes), bf),
        fc_b=u((1, num_classes)),
        wqkv=u((n_layers, d_model, 3 * d_model), bf),  # packed [Wq | Wk | Wv]
        bqkv=u((n_layers, 1, 3 * d_model)),
        wo=u((n_layers, d_model, d_model), bf),
        bo=u((n_layers, 1, d_model)),
        ln1g=jnp.ones((n_layers, 1, d_model), jnp.float32),
        ln1b=jnp.zeros((n_layers, 1, d_model), jnp.float32),
        w1=u((n_layers, d_model, dff), bf),
        b1=u((n_layers, 1, dff)),
        w2t=u((n_layers, d_model, dff), bf),           # W2 stored transposed (out, in)
        b2=u((n_layers, 1, d_model)),
        ln2g=jnp.ones((n_layers, 1, d_model), jnp.float32),
        ln2b=jnp.zeros((n_layers, 1, d_model), jnp.float32),
    )


# ----------------------------------------------------------------------------
if __name__ == "__main__":
    # TODO(synk): encoder dropout (p=0.3) is treated as identity (eval-mode
    # forward); training-mode dropout would need pltpu.prng_seed/prng_random_bits.
    key = jax.random.PRNGKey(0)
    B, S, F = 2, 8, 16          # batch, seq len (== max_len here), input_size
    D, H, C = 32, 4, 3          # d_model, n_head, num_classes
    DFF = 2048                  # nn.TransformerEncoderLayer default dim_feedforward

    kx, kp = jax.random.split(key)
    x = jax.random.normal(kx, (B, S, F), jnp.float32)
    seq_lengths = jnp.array([8, 5], jnp.int32)

    params = init_params(kp, F, D, DFF, C, max_len=S)

    rep_shared, rep_distinct, pred_distinct = ehr_transformer_forward(
        x, seq_lengths, params, n_head=H)
    jax.block_until_ready((rep_shared, rep_distinct, pred_distinct))

    assert rep_shared.shape == (B, D)
    assert rep_distinct.shape == (B, D)
    assert pred_distinct.shape == (B, C)
    assert bool(jnp.all(jnp.isfinite(rep_shared)))
    assert bool(jnp.all(jnp.isfinite(rep_distinct)))
    assert bool(jnp.all(jnp.isfinite(pred_distinct)))
    assert bool(jnp.all((pred_distinct >= 0.0) & (pred_distinct <= 1.0)))
    print("KERNEL_OK")
</pallas_src>

<mosaic_0001>
module attributes {stable_mosaic.version = 11 : i64} {
  func.func @fused_forward_kernel(%arg0: i32, %arg1: memref<2xi32, #tpu.memory_space<smem>>, %arg2: memref<16x16xf32, #tpu.memory_space<vmem>>, %arg3: memref<8x32xf32, #tpu.memory_space<vmem>>, %arg4: memref<16x32xbf16, #tpu.memory_space<vmem>>, %arg5: memref<1x32xf32, #tpu.memory_space<vmem>>, %arg6: memref<1x32x96xbf16, #tpu.memory_space<vmem>>, %arg7: memref<1x1x96xf32, #tpu.memory_space<vmem>>, %arg8: memref<1x32x32xbf16, #tpu.memory_space<vmem>>, %arg9: memref<1x1x32xf32, #tpu.memory_space<vmem>>, %arg10: memref<1x1x32xf32, #tpu.memory_space<vmem>>, %arg11: memref<1x1x32xf32, #tpu.memory_space<vmem>>, %arg12: memref<1x32x2048xbf16, #tpu.memory_space<vmem>>, %arg13: memref<1x1x2048xf32, #tpu.memory_space<vmem>>, %arg14: memref<1x32x2048xbf16, #tpu.memory_space<vmem>>, %arg15: memref<1x1x32xf32, #tpu.memory_space<vmem>>, %arg16: memref<1x1x32xf32, #tpu.memory_space<vmem>>, %arg17: memref<1x1x32xf32, #tpu.memory_space<vmem>>, %arg18: memref<32x3xbf16, #tpu.memory_space<vmem>>, %arg19: memref<1x3xf32, #tpu.memory_space<vmem>>, %arg20: memref<2x32xf32, #tpu.memory_space<vmem>>, %arg21: memref<2x32xf32, #tpu.memory_space<vmem>>, %arg22: memref<2x3xf32, #tpu.memory_space<vmem>>, %arg23: memref<16x32xf32, #tpu.memory_space<vmem>>) attributes {dimension_semantics = [#tpu.dimension_semantics<arbitrary>], iteration_bounds = array<i64: 3>, scalar_prefetch = 1 : i64, scratch_operands = 1 : i64, tpu.core_type = #tpu.core_type<tc>, window_params = [{pipeline_mode = #tpu.pipeline_mode<synchronous>, transform_indices = @transform_0, window_bounds = array<i64: 16, 16>}, {pipeline_mode = #tpu.pipeline_mode<synchronous>, transform_indices = @transform_1, window_bounds = array<i64: 8, 32>}, {pipeline_mode = #tpu.pipeline_mode<synchronous>, transform_indices = @transform_2, window_bounds = array<i64: 16, 32>}, {pipeline_mode = #tpu.pipeline_mode<synchronous>, transform_indices = @transform_3, window_bounds = array<i64: 1, 32>}, {transform_indices = @transform_4, window_bounds = array<i64: 1, 32, 96>}, {transform_indices = @transform_5, window_bounds = array<i64: 1, 1, 96>}, {transform_indices = @transform_6, window_bounds = array<i64: 1, 32, 32>}, {transform_indices = @transform_7, window_bounds = array<i64: 1, 1, 32>}, {transform_indices = @transform_8, window_bounds = array<i64: 1, 1, 32>}, {transform_indices = @transform_9, window_bounds = array<i64: 1, 1, 32>}, {transform_indices = @transform_10, window_bounds = array<i64: 1, 32, 2048>}, {transform_indices = @transform_11, window_bounds = array<i64: 1, 1, 2048>}, {transform_indices = @transform_12, window_bounds = array<i64: 1, 32, 2048>}, {transform_indices = @transform_13, window_bounds = array<i64: 1, 1, 32>}, {transform_indices = @transform_14, window_bounds = array<i64: 1, 1, 32>}, {transform_indices = @transform_15, window_bounds = array<i64: 1, 1, 32>}, {pipeline_mode = #tpu.pipeline_mode<synchronous>, transform_indices = @transform_16, window_bounds = array<i64: 32, 3>}, {pipeline_mode = #tpu.pipeline_mode<synchronous>, transform_indices = @transform_17, window_bounds = array<i64: 1, 3>}, {pipeline_mode = #tpu.pipeline_mode<synchronous>, transform_indices = @transform_18, window_bounds = array<i64: 2, 32>}, {pipeline_mode = #tpu.pipeline_mode<synchronous>, transform_indices = @transform_19, window_bounds = array<i64: 2, 32>}, {pipeline_mode = #tpu.pipeline_mode<synchronous>, transform_indices = @transform_20, window_bounds = array<i64: 2, 3>}]} {
    %0 = tpu.iota {dimensions = array<i32: 1>} : vector<2x8xi32>
    %1 = tpu.iota {dimensions = array<i32: 0>} : vector<2x8xi32>
    %cst = arith.constant 0.000000e+00 : f32
    %2 = vector.broadcast %cst : f32 to vector<2x8xf32>
    %c0_i32 = arith.constant 0 : i32
    %3 = vector.broadcast %c0_i32 : i32 to vector<2x8xi32>
    %4 = arith.cmpi eq, %1, %3 : vector<2x8xi32>
    %c0 = arith.constant 0 : index
    %5 = memref.load %arg1[%c0] : memref<2xi32, #tpu.memory_space<smem>>
    %6 = vector.broadcast %5 : i32 to vector<2x8xi32>
    %7 = arith.cmpi slt, %0, %6 : vector<2x8xi32>
    %8 = arith.andi %4, %7 : vector<2x8xi1>
    %cst_0 = arith.constant 1.000000e+00 : f32
    %9 = vector.broadcast %cst_0 : f32 to vector<2x8xf32>
    %10 = arith.select %8, %9, %2 : vector<2x8xi1>, vector<2x8xf32>
    %c1_i32 = arith.constant 1 : i32
    %11 = vector.broadcast %c1_i32 : i32 to vector<2x8xi32>
    %12 = arith.cmpi eq, %1, %11 : vector<2x8xi32>
    %c1 = arith.constant 1 : index
    %13 = memref.load %arg1[%c1] : memref<2xi32, #tpu.memory_space<smem>>
    %14 = vector.broadcast %13 : i32 to vector<2x8xi32>
    %15 = arith.cmpi slt, %0, %14 : vector<2x8xi32>
    %16 = arith.andi %12, %15 : vector<2x8xi1>
    %cst_1 = arith.constant 1.000000e+00 : f32
    %17 = vector.broadcast %cst_1 : f32 to vector<2x8xf32>
    %18 = arith.select %16, %17, %10 : vector<2x8xi1>, vector<2x8xf32>
    %cst_2 = arith.constant 1.000000e+00 : f32
    %19 = vector.broadcast %cst_2 : f32 to vector<2x8xf32>
    %20 = arith.subf %19, %18 : vector<2x8xf32>
    %cst_3 = arith.constant -1.000000e+09 : f32
    %21 = vector.broadcast %cst_3 : f32 to vector<2x8xf32>
    %22 = arith.mulf %20, %21 : vector<2x8xf32>
    %23 = vector.shape_cast %22 : vector<2x8xf32> to vector<2x1x8xf32>
    %c0_i32_4 = arith.constant 0 : i32
    %24 = arith.cmpi eq, %arg0, %c0_i32_4 : i32
    %25 = arith.extui %24 : i1 to i32
    %c0_i32_5 = arith.constant 0 : i32
    %26 = arith.cmpi ne, %25, %c0_i32_5 : i32
    scf.if %26 {
      %c0_84 = arith.constant 0 : index
      %c0_85 = arith.constant 0 : index
      %216 = vector.load %arg2[%c0_84, %c0_85] : memref<16x16xf32, #tpu.memory_space<vmem>>, vector<16x16xf32>
      %217 = arith.truncf %216 : vector<16x16xf32> to vector<16x16xbf16>
      %c0_86 = arith.constant 0 : index
      %c0_87 = arith.constant 0 : index
      %218 = vector.load %arg4[%c0_86, %c0_87] : memref<16x32xbf16, #tpu.memory_space<vmem>>, vector<16x32xbf16>
      %cst_88 = arith.constant dense<0.000000e+00> : vector<16x32xf32>
      %219 = tpu.matmul %217, %218, %cst_88 {dimension_numbers = #tpu.dot_dimension_numbers<[1], [0], [0], [1], [0, 0, 1, 1], [], []>} : vector<16x16xbf16>, vector<16x32xbf16>, vector<16x32xf32> -> vector<16x32xf32>
      %c0_89 = arith.constant 0 : index
      %c0_90 = arith.constant 0 : index
      %220 = vector.load %arg5[%c0_89, %c0_90] : memref<1x32xf32, #tpu.memory_space<vmem>>, vector<1x32xf32>
      %221 = vector.broadcast %220 : vector<1x32xf32> to vector<16x32xf32>
      %222 = arith.addf %219, %221 : vector<16x32xf32>
      %c0_91 = arith.constant 0 : index
      %c0_92 = arith.constant 0 : index
      %223 = vector.load %arg3[%c0_91, %c0_92] : memref<8x32xf32, #tpu.memory_space<vmem>>, vector<8x32xf32>
      %224 = tpu.concatenate %223, %223 in 0 : vector<8x32xf32>, vector<8x32xf32> -> vector<16x32xf32>
      %225 = arith.addf %222, %224 : vector<16x32xf32>
      %c0_93 = arith.constant 0 : index
      %c0_94 = arith.constant 0 : index
      %226 = vector.load %arg23[%c0_93, %c0_94] : memref<16x32xf32, #tpu.memory_space<vmem>>, vector<16x32xf32>
      tpu.vector_store %arg23[%c0_93, %c0_94], %225 {strides = array<i32>} : memref<16x32xf32, #tpu.memory_space<vmem>>, vector<16x32xf32>,
    } else {
    }
    %c0_6 = arith.constant 0 : index
    %c0_7 = arith.constant 0 : index
    %27 = vector.load %arg23[%c0_6, %c0_7] : memref<16x32xf32, #tpu.memory_space<vmem>>, vector<16x32xf32>
    %28 = arith.truncf %27 : vector<16x32xf32> to vector<16x32xbf16>
    %c0_8 = arith.constant 0 : index
    %c0_9 = arith.constant 0 : index
    %c0_10 = arith.constant 0 : index
    %29 = vector.load %arg6[%c0_8, %c0_9, %c0_10] : memref<1x32x96xbf16, #tpu.memory_space<vmem>>, vector<1x32x96xbf16>
    %30 = vector.shape_cast %29 : vector<1x32x96xbf16> to vector<32x96xbf16>
    %cst_11 = arith.constant dense<0.000000e+00> : vector<16x96xf32>
    %31 = tpu.matmul %28, %30, %cst_11 {dimension_numbers = #tpu.dot_dimension_numbers<[1], [0], [0], [1], [0, 0, 1, 1], [], []>} : vector<16x32xbf16>, vector<32x96xbf16>, vector<16x96xf32> -> vector<16x96xf32>
    %c0_12 = arith.constant 0 : index
    %c0_13 = arith.constant 0 : index
    %c0_14 = arith.constant 0 : index
    %32 = vector.load %arg7[%c0_12, %c0_13, %c0_14] : memref<1x1x96xf32, #tpu.memory_space<vmem>>, vector<1x1x96xf32>
    %33 = vector.shape_cast %32 : vector<1x1x96xf32> to vector<1x96xf32>
    %34 = vector.broadcast %33 : vector<1x96xf32> to vector<16x96xf32>
    %35 = arith.addf %31, %34 : vector<16x96xf32>
    %36 = vector.extract_strided_slice %35 {offsets = [0, 0], sizes = [16, 32], strides = [1, 1]} : vector<16x96xf32> to vector<16x32xf32>
    %37 = vector.shape_cast %36 : vector<16x32xf32> to vector<2x8x32xf32>
    %38 = arith.truncf %37 : vector<2x8x32xf32> to vector<2x8x32xbf16>
    %39 = vector.extract_strided_slice %35 {offsets = [0, 32], sizes = [16, 32], strides = [1, 1]} : vector<16x96xf32> to vector<16x32xf32>
    %40 = vector.shape_cast %39 : vector<16x32xf32> to vector<2x8x32xf32>
    %41 = arith.truncf %40 : vector<2x8x32xf32> to vector<2x8x32xbf16>
    %42 = vector.extract_strided_slice %35 {offsets = [0, 64], sizes = [16, 32], strides = [1, 1]} : vector<16x96xf32> to vector<16x32xf32>
    %43 = vector.shape_cast %42 : vector<16x32xf32> to vector<2x8x32xf32>
    %44 = arith.truncf %43 : vector<2x8x32xf32> to vector<2x8x32xbf16>
    %45 = vector.extract_strided_slice %38 {offsets = [0, 0, 0], sizes = [2, 8, 8], strides = [1, 1, 1]} : vector<2x8x32xbf16> to vector<2x8x8xbf16>
    %46 = vector.extract_strided_slice %41 {offsets = [0, 0, 0], sizes = [2, 8, 8], strides = [1, 1, 1]} : vector<2x8x32xbf16> to vector<2x8x8xbf16>
    "tpu.trace_start"() <{level = 10 : i32, message = "bqd,bkd->bqk"}> : () -> ()
    %cst_15 = arith.constant dense<0.000000e+00> : vector<2x8x8xf32>
    %47 = tpu.matmul %45, %46, %cst_15 {dimension_numbers = #tpu.dot_dimension_numbers<[2], [2], [1], [1], [0, 0, 0, 1, 1, 1], [0], [0]>} : vector<2x8x8xbf16>, vector<2x8x8xbf16>, vector<2x8x8xf32> -> vector<2x8x8xf32>
    "tpu.trace_stop"() : () -> ()
    %cst_16 = arith.constant 0.353553385 : f32
    %48 = vector.broadcast %cst_16 : f32 to vector<2x8x8xf32>
    %49 = arith.mulf %47, %48 : vector<2x8x8xf32>
    %50 = vector.broadcast %23 : vector<2x1x8xf32> to vector<2x8x8xf32>
    %51 = arith.addf %49, %50 : vector<2x8x8xf32>
    %cst_17 = arith.constant dense<0xFF800000> : vector<2x8xf32>
    %52 = vector.multi_reduction <maximumf>, %51, %cst_17 [2] : vector<2x8x8xf32> to vector<2x8xf32>
    %53 = vector.shape_cast %52 : vector<2x8xf32> to vector<2x8x1xf32>
    %54 = vector.broadcast %53 : vector<2x8x1xf32> to vector<2x8x8xf32>
    %55 = arith.subf %51, %54 : vector<2x8x8xf32>
    %56 = math.exp %55 : vector<2x8x8xf32>
    %cst_18 = arith.constant dense<0.000000e+00> : vector<2x8xf32>
    %57 = vector.multi_reduction <add>, %56, %cst_18 [2] : vector<2x8x8xf32> to vector<2x8xf32>
    %58 = vector.shape_cast %57 : vector<2x8xf32> to vector<2x8x1xf32>
    %59 = tpu.reciprocal %58 {approx = true} : vector<2x8x1xf32> -> vector<2x8x1xf32>
    %60 = vector.broadcast %59 : vector<2x8x1xf32> to vector<2x8x8xf32>
    %61 = arith.mulf %56, %60 : vector<2x8x8xf32>
    %62 = arith.truncf %61 : vector<2x8x8xf32> to vector<2x8x8xbf16>
    %63 = vector.extract_strided_slice %44 {offsets = [0, 0, 0], sizes = [2, 8, 8], strides = [1, 1, 1]} : vector<2x8x32xbf16> to vector<2x8x8xbf16>
    "tpu.trace_start"() <{level = 10 : i32, message = "bqk,bkd->bqd"}> : () -> ()
    %cst_19 = arith.constant dense<0.000000e+00> : vector<2x8x8xf32>
    %64 = tpu.matmul %62, %63, %cst_19 {dimension_numbers = #tpu.dot_dimension_numbers<[2], [1], [1], [2], [0, 0, 0, 1, 1, 2], [0], [0]>} : vector<2x8x8xbf16>, vector<2x8x8xbf16>, vector<2x8x8xf32> -> vector<2x8x8xf32>
    "tpu.trace_stop"() : () -> ()
    %65 = vector.extract_strided_slice %38 {offsets = [0, 0, 8], sizes = [2, 8, 8], strides = [1, 1, 1]} : vector<2x8x32xbf16> to vector<2x8x8xbf16>
    %66 = vector.extract_strided_slice %41 {offsets = [0, 0, 8], sizes = [2, 8, 8], strides = [1, 1, 1]} : vector<2x8x32xbf16> to vector<2x8x8xbf16>
    "tpu.trace_start"() <{level = 10 : i32, message = "bqd,bkd->bqk"}> : () -> ()
    %cst_20 = arith.constant dense<0.000000e+00> : vector<2x8x8xf32>
    %67 = tpu.matmul %65, %66, %cst_20 {dimension_numbers = #tpu.dot_dimension_numbers<[2], [2], [1], [1], [0, 0, 0, 1, 1, 1], [0], [0]>} : vector<2x8x8xbf16>, vector<2x8x8xbf16>, vector<2x8x8xf32> -> vector<2x8x8xf32>
    "tpu.trace_stop"() : () -> ()
    %cst_21 = arith.constant 0.353553385 : f32
    %68 = vector.broadcast %cst_21 : f32 to vector<2x8x8xf32>
    %69 = arith.mulf %67, %68 : vector<2x8x8xf32>
    %70 = vector.broadcast %23 : vector<2x1x8xf32> to vector<2x8x8xf32>
    %71 = arith.addf %69, %70 : vector<2x8x8xf32>
    %cst_22 = arith.constant dense<0xFF800000> : vector<2x8xf32>
    %72 = vector.multi_reduction <maximumf>, %71, %cst_22 [2] : vector<2x8x8xf32> to vector<2x8xf32>
    %73 = vector.shape_cast %72 : vector<2x8xf32> to vector<2x8x1xf32>
    %74 = vector.broadcast %73 : vector<2x8x1xf32> to vector<2x8x8xf32>
    %75 = arith.subf %71, %74 : vector<2x8x8xf32>
    %76 = math.exp %75 : vector<2x8x8xf32>
    %cst_23 = arith.constant dense<0.000000e+00> : vector<2x8xf32>
    %77 = vector.multi_reduction <add>, %76, %cst_23 [2] : vector<2x8x8xf32> to vector<2x8xf32>
    %78 = vector.shape_cast %77 : vector<2x8xf32> to vector<2x8x1xf32>
    %79 = tpu.reciprocal %78 {approx = true} : vector<2x8x1xf32> -> vector<2x8x1xf32>
    %80 = vector.broadcast %79 : vector<2x8x1xf32> to vector<2x8x8xf32>
    %81 = arith.mulf %76, %80 : vector<2x8x8xf32>
    %82 = arith.truncf %81 : vector<2x8x8xf32> to vector<2x8x8xbf16>
    %83 = vector.extract_strided_slice %44 {offsets = [0, 0, 8], sizes = [2, 8, 8], strides = [1, 1, 1]} : vector<2x8x32xbf16> to vector<2x8x8xbf16>
    "tpu.trace_start"() <{level = 10 : i32, message = "bqk,bkd->bqd"}> : () -> ()
    %cst_24 = arith.constant dense<0.000000e+00> : vector<2x8x8xf32>
    %84 = tpu.matmul %82, %83, %cst_24 {dimension_numbers = #tpu.dot_dimension_numbers<[2], [1], [1], [2], [0, 0, 0, 1, 1, 2], [0], [0]>} : vector<2x8x8xbf16>, vector<2x8x8xbf16>, vector<2x8x8xf32> -> vector<2x8x8xf32>
    "tpu.trace_stop"() : () -> ()
    %85 = vector.extract_strided_slice %38 {offsets = [0, 0, 16], sizes = [2, 8, 8], strides = [1, 1, 1]} : vector<2x8x32xbf16> to vector<2x8x8xbf16>
    %86 = vector.extract_strided_slice %41 {offsets = [0, 0, 16], sizes = [2, 8, 8], strides = [1, 1, 1]} : vector<2x8x32xbf16> to vector<2x8x8xbf16>
    "tpu.trace_start"() <{level = 10 : i32, message = "bqd,bkd->bqk"}> : () -> ()
    %cst_25 = arith.constant dense<0.000000e+00> : vector<2x8x8xf32>
    %87 = tpu.matmul %85, %86, %cst_25 {dimension_numbers = #tpu.dot_dimension_numbers<[2], [2], [1], [1], [0, 0, 0, 1, 1, 1], [0], [0]>} : vector<2x8x8xbf16>, vector<2x8x8xbf16>, vector<2x8x8xf32> -> vector<2x8x8xf32>
    "tpu.trace_stop"() : () -> ()
    %cst_26 = arith.constant 0.353553385 : f32
    %88 = vector.broadcast %cst_26 : f32 to vector<2x8x8xf32>
    %89 = arith.mulf %87, %88 : vector<2x8x8xf32>
    %90 = vector.broadcast %23 : vector<2x1x8xf32> to vector<2x8x8xf32>
    %91 = arith.addf %89, %90 : vector<2x8x8xf32>
    %cst_27 = arith.constant dense<0xFF800000> : vector<2x8xf32>
    %92 = vector.multi_reduction <maximumf>, %91, %cst_27 [2] : vector<2x8x8xf32> to vector<2x8xf32>
    %93 = vector.shape_cast %92 : vector<2x8xf32> to vector<2x8x1xf32>
    %94 = vector.broadcast %93 : vector<2x8x1xf32> to vector<2x8x8xf32>
    %95 = arith.subf %91, %94 : vector<2x8x8xf32>
    %96 = math.exp %95 : vector<2x8x8xf32>
    %cst_28 = arith.constant dense<0.000000e+00> : vector<2x8xf32>
    %97 = vector.multi_reduction <add>, %96, %cst_28 [2] : vector<2x8x8xf32> to vector<2x8xf32>
    %98 = vector.shape_cast %97 : vector<2x8xf32> to vector<2x8x1xf32>
    %99 = tpu.reciprocal %98 {approx = true} : vector<2x8x1xf32> -> vector<2x8x1xf32>
    %100 = vector.broadcast %99 : vector<2x8x1xf32> to vector<2x8x8xf32>
    %101 = arith.mulf %96, %100 : vector<2x8x8xf32>
    %102 = arith.truncf %101 : vector<2x8x8xf32> to vector<2x8x8xbf16>
    %103 = vector.extract_strided_slice %44 {offsets = [0, 0, 16], sizes = [2, 8, 8], strides = [1, 1, 1]} : vector<2x8x32xbf16> to vector<2x8x8xbf16>
    "tpu.trace_start"() <{level = 10 : i32, message = "bqk,bkd->bqd"}> : () -> ()
    %cst_29 = arith.constant dense<0.000000e+00> : vector<2x8x8xf32>
    %104 = tpu.matmul %102, %103, %cst_29 {dimension_numbers = #tpu.dot_dimension_numbers<[2], [1], [1], [2], [0, 0, 0, 1, 1, 2], [0], [0]>} : vector<2x8x8xbf16>, vector<2x8x8xbf16>, vector<2x8x8xf32> -> vector<2x8x8xf32>
    "tpu.trace_stop"() : () -> ()
    %105 = vector.extract_strided_slice %38 {offsets = [0, 0, 24], sizes = [2, 8, 8], strides = [1, 1, 1]} : vector<2x8x32xbf16> to vector<2x8x8xbf16>
    %106 = vector.extract_strided_slice %41 {offsets = [0, 0, 24], sizes = [2, 8, 8], strides = [1, 1, 1]} : vector<2x8x32xbf16> to vector<2x8x8xbf16>
    "tpu.trace_start"() <{level = 10 : i32, message = "bqd,bkd->bqk"}> : () -> ()
    %cst_30 = arith.constant dense<0.000000e+00> : vector<2x8x8xf32>
    %107 = tpu.matmul %105, %106, %cst_30 {dimension_numbers = #tpu.dot_dimension_numbers<[2], [2], [1], [1], [0, 0, 0, 1, 1, 1], [0], [0]>} : vector<2x8x8xbf16>, vector<2x8x8xbf16>, vector<2x8x8xf32> -> vector<2x8x8xf32>
    "tpu.trace_stop"() : () -> ()
    %cst_31 = arith.constant 0.353553385 : f32
    %108 = vector.broadcast %cst_31 : f32 to vector<2x8x8xf32>
    %109 = arith.mulf %107, %108 : vector<2x8x8xf32>
    %110 = vector.broadcast %23 : vector<2x1x8xf32> to vector<2x8x8xf32>
    %111 = arith.addf %109, %110 : vector<2x8x8xf32>
    %cst_32 = arith.constant dense<0xFF800000> : vector<2x8xf32>
    %112 = vector.multi_reduction <maximumf>, %111, %cst_32 [2] : vector<2x8x8xf32> to vector<2x8xf32>
    %113 = vector.shape_cast %112 : vector<2x8xf32> to vector<2x8x1xf32>
    %114 = vector.broadcast %113 : vector<2x8x1xf32> to vector<2x8x8xf32>
    %115 = arith.subf %111, %114 : vector<2x8x8xf32>
    %116 = math.exp %115 : vector<2x8x8xf32>
    %cst_33 = arith.constant dense<0.000000e+00> : vector<2x8xf32>
    %117 = vector.multi_reduction <add>, %116, %cst_33 [2] : vector<2x8x8xf32> to vector<2x8xf32>
    %118 = vector.shape_cast %117 : vector<2x8xf32> to vector<2x8x1xf32>
    %119 = tpu.reciprocal %118 {approx = true} : vector<2x8x1xf32> -> vector<2x8x1xf32>
    %120 = vector.broadcast %119 : vector<2x8x1xf32> to vector<2x8x8xf32>
    %121 = arith.mulf %116, %120 : vector<2x8x8xf32>
    %122 = arith.truncf %121 : vector<2x8x8xf32> to vector<2x8x8xbf16>
    %123 = vector.extract_strided_slice %44 {offsets = [0, 0, 24], sizes = [2, 8, 8], strides = [1, 1, 1]} : vector<2x8x32xbf16> to vector<2x8x8xbf16>
    "tpu.trace_start"() <{level = 10 : i32, message = "bqk,bkd->bqd"}> : () -> ()
    %cst_34 = arith.constant dense<0.000000e+00> : vector<2x8x8xf32>
    %124 = tpu.matmul %122, %123, %cst_34 {dimension_numbers = #tpu.dot_dimension_numbers<[2], [1], [1], [2], [0, 0, 0, 1, 1, 2], [0], [0]>} : vector<2x8x8xbf16>, vector<2x8x8xbf16>, vector<2x8x8xf32> -> vector<2x8x8xf32>
    "tpu.trace_stop"() : () -> ()
    %125 = tpu.concatenate %64, %84, %104, %124 in 2 : vector<2x8x8xf32>, vector<2x8x8xf32>, vector<2x8x8xf32>, vector<2x8x8xf32> -> vector<2x8x32xf32>
    %126 = vector.shape_cast %125 : vector<2x8x32xf32> to vector<16x32xf32>
    %127 = arith.truncf %126 : vector<16x32xf32> to vector<16x32xbf16>
    %c0_35 = arith.constant 0 : index
    %c0_36 = arith.constant 0 : index
    %c0_37 = arith.constant 0 : index
    %128 = vector.load %arg8[%c0_35, %c0_36, %c0_37] : memref<1x32x32xbf16, #tpu.memory_space<vmem>>, vector<1x32x32xbf16>
    %129 = vector.shape_cast %128 : vector<1x32x32xbf16> to vector<32x32xbf16>
    %cst_38 = arith.constant dense<0.000000e+00> : vector<16x32xf32>
    %130 = tpu.matmul %127, %129, %cst_38 {dimension_numbers = #tpu.dot_dimension_numbers<[1], [0], [0], [1], [0, 0, 1, 1], [], []>} : vector<16x32xbf16>, vector<32x32xbf16>, vector<16x32xf32> -> vector<16x32xf32>
    %c0_39 = arith.constant 0 : index
    %c0_40 = arith.constant 0 : index
    %c0_41 = arith.constant 0 : index
    %131 = vector.load %arg9[%c0_39, %c0_40, %c0_41] : memref<1x1x32xf32, #tpu.memory_space<vmem>>, vector<1x1x32xf32>
    %132 = vector.shape_cast %131 : vector<1x1x32xf32> to vector<1x32xf32>
    %133 = vector.broadcast %132 : vector<1x32xf32> to vector<16x32xf32>
    %134 = arith.addf %130, %133 : vector<16x32xf32>
    %135 = arith.addf %27, %134 : vector<16x32xf32>
    %c0_42 = arith.constant 0 : index
    %c0_43 = arith.constant 0 : index
    %c0_44 = arith.constant 0 : index
    %136 = vector.load %arg10[%c0_42, %c0_43, %c0_44] : memref<1x1x32xf32, #tpu.memory_space<vmem>>, vector<1x1x32xf32>
    %137 = vector.shape_cast %136 : vector<1x1x32xf32> to vector<1x32xf32>
    %c0_45 = arith.constant 0 : index
    %c0_46 = arith.constant 0 : index
    %c0_47 = arith.constant 0 : index
    %138 = vector.load %arg11[%c0_45, %c0_46, %c0_47] : memref<1x1x32xf32, #tpu.memory_space<vmem>>, vector<1x1x32xf32>
    %139 = vector.shape_cast %138 : vector<1x1x32xf32> to vector<1x32xf32>
    %cst_48 = arith.constant dense<0.000000e+00> : vector<16xf32>
    %140 = vector.multi_reduction <add>, %135, %cst_48 [1] : vector<16x32xf32> to vector<16xf32>
    %141 = vector.shape_cast %140 : vector<16xf32> to vector<16x1xf32>
    %cst_49 = arith.constant 3.200000e+01 : f32
    %142 = vector.broadcast %cst_49 : f32 to vector<16x1xf32>
    %143 = arith.divf %141, %142 : vector<16x1xf32>
    %144 = vector.broadcast %143 : vector<16x1xf32> to vector<16x32xf32>
    %145 = arith.subf %135, %144 : vector<16x32xf32>
    %146 = arith.mulf %145, %145 : vector<16x32xf32>
    %cst_50 = arith.constant dense<0.000000e+00> : vector<16xf32>
    %147 = vector.multi_reduction <add>, %146, %cst_50 [1] : vector<16x32xf32> to vector<16xf32>
    %148 = vector.shape_cast %147 : vector<16xf32> to vector<16x1xf32>
    %cst_51 = arith.constant 3.200000e+01 : f32
    %149 = vector.broadcast %cst_51 : f32 to vector<16x1xf32>
    %150 = arith.divf %148, %149 : vector<16x1xf32>
    %151 = vector.broadcast %143 : vector<16x1xf32> to vector<16x32xf32>
    %152 = arith.subf %135, %151 : vector<16x32xf32>
    %cst_52 = arith.constant 9.99999974E-6 : f32
    %153 = vector.broadcast %cst_52 : f32 to vector<16x1xf32>
    %154 = arith.addf %150, %153 : vector<16x1xf32>
    %155 = math.rsqrt %154 : vector<16x1xf32>
    %156 = vector.broadcast %155 : vector<16x1xf32> to vector<16x32xf32>
    %157 = arith.mulf %152, %156 : vector<16x32xf32>
    %158 = vector.broadcast %137 : vector<1x32xf32> to vector<16x32xf32>
    %159 = arith.mulf %157, %158 : vector<16x32xf32>
    %160 = vector.broadcast %139 : vector<1x32xf32> to vector<16x32xf32>
    %161 = arith.addf %159, %160 : vector<16x32xf32>
    %162 = arith.truncf %161 : vector<16x32xf32> to vector<16x32xbf16>
    %c0_53 = arith.constant 0 : index
    %c0_54 = arith.constant 0 : index
    %c0_55 = arith.constant 0 : index
    %163 = vector.load %arg12[%c0_53, %c0_54, %c0_55] : memref<1x32x2048xbf16, #tpu.memory_space<vmem>>, vector<1x32x2048xbf16>
    %164 = vector.shape_cast %163 : vector<1x32x2048xbf16> to vector<32x2048xbf16>
    %cst_56 = arith.constant dense<0.000000e+00> : vector<16x2048xf32>
    %165 = tpu.matmul %162, %164, %cst_56 {dimension_numbers = #tpu.dot_dimension_numbers<[1], [0], [0], [1], [0, 0, 1, 1], [], []>} : vector<16x32xbf16>, vector<32x2048xbf16>, vector<16x2048xf32> -> vector<16x2048xf32>
    %c0_57 = arith.constant 0 : index
    %c0_58 = arith.constant 0 : index
    %c0_59 = arith.constant 0 : index
    %166 = vector.load %arg13[%c0_57, %c0_58, %c0_59] : memref<1x1x2048xf32, #tpu.memory_space<vmem>>, vector<1x1x2048xf32>
    %167 = vector.shape_cast %166 : vector<1x1x2048xf32> to vector<1x2048xf32>
    %168 = vector.broadcast %167 : vector<1x2048xf32> to vector<16x2048xf32>
    %169 = arith.addf %165, %168 : vector<16x2048xf32>
    %cst_60 = arith.constant 0.000000e+00 : f32
    %170 = vector.broadcast %cst_60 : f32 to vector<16x2048xf32>
    %171 = arith.maximumf %169, %170 : vector<16x2048xf32>
    %172 = arith.truncf %171 : vector<16x2048xf32> to vector<16x2048xbf16>
    %c0_61 = arith.constant 0 : index
    %c0_62 = arith.constant 0 : index
    %c0_63 = arith.constant 0 : index
    %173 = vector.load %arg14[%c0_61, %c0_62, %c0_63] : memref<1x32x2048xbf16, #tpu.memory_space<vmem>>, vector<1x32x2048xbf16>
    %174 = vector.shape_cast %173 : vector<1x32x2048xbf16> to vector<32x2048xbf16>
    %cst_64 = arith.constant dense<0.000000e+00> : vector<16x32xf32>
    %175 = tpu.matmul %172, %174, %cst_64 {dimension_numbers = #tpu.dot_dimension_numbers<[1], [1], [0], [0], [0, 0, 1, 0], [], []>} : vector<16x2048xbf16>, vector<32x2048xbf16>, vector<16x32xf32> -> vector<16x32xf32>
    %c0_65 = arith.constant 0 : index
    %c0_66 = arith.constant 0 : index
    %c0_67 = arith.constant 0 : index
    %176 = vector.load %arg15[%c0_65, %c0_66, %c0_67] : memref<1x1x32xf32, #tpu.memory_space<vmem>>, vector<1x1x32xf32>
    %177 = vector.shape_cast %176 : vector<1x1x32xf32> to vector<1x32xf32>
    %178 = vector.broadcast %177 : vector<1x32xf32> to vector<16x32xf32>
    %179 = arith.addf %175, %178 : vector<16x32xf32>
    %180 = arith.addf %161, %179 : vector<16x32xf32>
    %c0_68 = arith.constant 0 : index
    %c0_69 = arith.constant 0 : index
    %c0_70 = arith.constant 0 : index
    %181 = vector.load %arg16[%c0_68, %c0_69, %c0_70] : memref<1x1x32xf32, #tpu.memory_space<vmem>>, vector<1x1x32xf32>
    %182 = vector.shape_cast %181 : vector<1x1x32xf32> to vector<1x32xf32>
    %c0_71 = arith.constant 0 : index
    %c0_72 = arith.constant 0 : index
    %c0_73 = arith.constant 0 : index
    %183 = vector.load %arg17[%c0_71, %c0_72, %c0_73] : memref<1x1x32xf32, #tpu.memory_space<vmem>>, vector<1x1x32xf32>
    %184 = vector.shape_cast %183 : vector<1x1x32xf32> to vector<1x32xf32>
    %cst_74 = arith.constant dense<0.000000e+00> : vector<16xf32>
    %185 = vector.multi_reduction <add>, %180, %cst_74 [1] : vector<16x32xf32> to vector<16xf32>
    %186 = vector.shape_cast %185 : vector<16xf32> to vector<16x1xf32>
    %cst_75 = arith.constant 3.200000e+01 : f32
    %187 = vector.broadcast %cst_75 : f32 to vector<16x1xf32>
    %188 = arith.divf %186, %187 : vector<16x1xf32>
    %189 = vector.broadcast %188 : vector<16x1xf32> to vector<16x32xf32>
    %190 = arith.subf %180, %189 : vector<16x32xf32>
    %191 = arith.mulf %190, %190 : vector<16x32xf32>
    %cst_76 = arith.constant dense<0.000000e+00> : vector<16xf32>
    %192 = vector.multi_reduction <add>, %191, %cst_76 [1] : vector<16x32xf32> to vector<16xf32>
    %193 = vector.shape_cast %192 : vector<16xf32> to vector<16x1xf32>
    %cst_77 = arith.constant 3.200000e+01 : f32
    %194 = vector.broadcast %cst_77 : f32 to vector<16x1xf32>
    %195 = arith.divf %193, %194 : vector<16x1xf32>
    %196 = vector.broadcast %188 : vector<16x1xf32> to vector<16x32xf32>
    %197 = arith.subf %180, %196 : vector<16x32xf32>
    %cst_78 = arith.constant 9.99999974E-6 : f32
    %198 = vector.broadcast %cst_78 : f32 to vector<16x1xf32>
    %199 = arith.addf %195, %198 : vector<16x1xf32>
    %200 = math.rsqrt %199 : vector<16x1xf32>
    %201 = vector.broadcast %200 : vector<16x1xf32> to vector<16x32xf32>
    %202 = arith.mulf %197, %201 : vector<16x32xf32>
    %203 = vector.broadcast %182 : vector<1x32xf32> to vector<16x32xf32>
    %204 = arith.mulf %202, %203 : vector<16x32xf32>
    %205 = vector.broadcast %184 : vector<1x32xf32> to vector<16x32xf32>
    %206 = arith.addf %204, %205 : vector<16x32xf32>
    %c0_i32_79 = arith.constant 0 : i32
    %207 = arith.cmpi eq, %arg0, %c0_i32_79 : i32
    %208 = arith.extui %207 : i1 to i32
    %c0_i32_80 = arith.constant 0 : i32
    %209 = arith.cmpi ne, %208, %c0_i32_80 : i32
    scf.if %209 {
      %c0_84 = arith.constant 0 : index
      %c0_85 = arith.constant 0 : index
      %216 = vector.load %arg23[%c0_84, %c0_85] : memref<16x32xf32, #tpu.memory_space<vmem>>, vector<16x32xf32>
      tpu.vector_store %arg23[%c0_84, %c0_85], %206 {strides = array<i32>} : memref<16x32xf32, #tpu.memory_space<vmem>>, vector<16x32xf32>,
    } else {
    }
    %c1_i32_81 = arith.constant 1 : i32
    %210 = arith.cmpi eq, %arg0, %c1_i32_81 : i32
    %211 = arith.extui %210 : i1 to i32
    %c0_i32_82 = arith.constant 0 : i32
    %212 = arith.cmpi ne, %211, %c0_i32_82 : i32
    scf.if %212 {
      %216 = tpu.iota {dimensions = array<i32: 0>} : vector<2x16xi32>
      %217 = tpu.iota {dimensions = array<i32: 1>} : vector<2x16xi32>
      %cst_84 = arith.constant 0.000000e+00 : f32
      %218 = vector.broadcast %cst_84 : f32 to vector<2x16xf32>
      %c0_i32_85 = arith.constant 0 : i32
      %219 = vector.broadcast %c0_i32_85 : i32 to vector<2x16xi32>
      %220 = arith.cmpi eq, %216, %219 : vector<2x16xi32>
      %c0_i32_86 = arith.constant 0 : i32
      %221 = vector.broadcast %c0_i32_86 : i32 to vector<2x16xi32>
      %222 = arith.cmpi sge, %217, %221 : vector<2x16xi32>
      %223 = arith.andi %220, %222 : vector<2x16xi1>
      %c0_87 = arith.constant 0 : index
      %224 = memref.load %arg1[%c0_87] : memref<2xi32, #tpu.memory_space<smem>>
      %c0_i32_88 = arith.constant 0 : i32
      %225 = arith.addi %c0_i32_88, %224 : i32
      %226 = vector.broadcast %225 : i32 to vector<2x16xi32>
      %227 = arith.cmpi slt, %217, %226 : vector<2x16xi32>
      %228 = arith.andi %223, %227 : vector<2x16xi1>
      %cst_89 = arith.constant 1.000000e+00 : f32
      %229 = vector.broadcast %cst_89 : f32 to vector<2x16xf32>
      %230 = arith.select %228, %229, %218 : vector<2x16xi1>, vector<2x16xf32>
      %c1_i32_90 = arith.constant 1 : i32
      %231 = vector.broadcast %c1_i32_90 : i32 to vector<2x16xi32>
      %232 = arith.cmpi eq, %216, %231 : vector<2x16xi32>
      %c8_i32 = arith.constant 8 : i32
      %233 = vector.broadcast %c8_i32 : i32 to vector<2x16xi32>
      %234 = arith.cmpi sge, %217, %233 : vector<2x16xi32>
      %235 = arith.andi %232, %234 : vector<2x16xi1>
      %c1_91 = arith.constant 1 : index
      %236 = memref.load %arg1[%c1_91] : memref<2xi32, #tpu.memory_space<smem>>
      %c8_i32_92 = arith.constant 8 : i32
      %237 = arith.addi %c8_i32_92, %236 : i32
      %238 = vector.broadcast %237 : i32 to vector<2x16xi32>
      %239 = arith.cmpi slt, %217, %238 : vector<2x16xi32>
      %240 = arith.andi %235, %239 : vector<2x16xi1>
      %cst_93 = arith.constant 1.000000e+00 : f32
      %241 = vector.broadcast %cst_93 : f32 to vector<2x16xf32>
      %242 = arith.select %240, %241, %230 : vector<2x16xi1>, vector<2x16xf32>
      %cst_94 = arith.constant dense<0.000000e+00> : vector<2xf32>
      %243 = vector.multi_reduction <add>, %242, %cst_94 [1] : vector<2x16xf32> to vector<2xf32>
      %244 = vector.shape_cast %243 : vector<2xf32> to vector<2x1xf32>
      %cst_95 = arith.constant 1.000000e+00 : f32
      %245 = vector.broadcast %cst_95 : f32 to vector<2x1xf32>
      %246 = arith.maximumf %244, %245 : vector<2x1xf32>
      %247 = tpu.reciprocal %246 {approx = true} : vector<2x1xf32> -> vector<2x1xf32>
      %248 = vector.broadcast %247 : vector<2x1xf32> to vector<2x16xf32>
      %249 = arith.mulf %242, %248 : vector<2x16xf32>
      %cst_96 = arith.constant dense<0.000000e+00> : vector<2x32xf32>
      %250 = tpu.matmul %249, %206, %cst_96 {dimension_numbers = #tpu.dot_dimension_numbers<[1], [0], [0], [1], [0, 0, 1, 1], [], []>} : vector<2x16xf32>, vector<16x32xf32>, vector<2x32xf32> -> vector<2x32xf32>
      %c0_97 = arith.constant 0 : index
      %c0_98 = arith.constant 0 : index
      %251 = vector.load %arg20[%c0_97, %c0_98] : memref<2x32xf32, #tpu.memory_space<vmem>>, vector<2x32xf32>
      tpu.vector_store %arg20[%c0_97, %c0_98], %250 {strides = array<i32>} : memref<2x32xf32, #tpu.memory_space<vmem>>, vector<2x32xf32>,
    } else {
    }
    %c2_i32 = arith.constant 2 : i32
    %213 = arith.cmpi eq, %arg0, %c2_i32 : i32
    %214 = arith.extui %213 : i1 to i32
    %c0_i32_83 = arith.constant 0 : i32
    %215 = arith.cmpi ne, %214, %c0_i32_83 : i32
    scf.if %215 {
      %216 = tpu.iota {dimensions = array<i32: 0>} : vector<2x16xi32>
      %217 = tpu.iota {dimensions = array<i32: 1>} : vector<2x16xi32>
      %cst_84 = arith.constant 0.000000e+00 : f32
      %218 = vector.broadcast %cst_84 : f32 to vector<2x16xf32>
      %c0_i32_85 = arith.constant 0 : i32
      %219 = vector.broadcast %c0_i32_85 : i32 to vector<2x16xi32>
      %220 = arith.cmpi eq, %216, %219 : vector<2x16xi32>
      %c0_i32_86 = arith.constant 0 : i32
      %221 = vector.broadcast %c0_i32_86 : i32 to vector<2x16xi32>
      %222 = arith.cmpi sge, %217, %221 : vector<2x16xi32>
      %223 = arith.andi %220, %222 : vector<2x16xi1>
      %c0_87 = arith.constant 0 : index
      %224 = memref.load %arg1[%c0_87] : memref<2xi32, #tpu.memory_space<smem>>
      %c0_i32_88 = arith.constant 0 : i32
      %225 = arith.addi %c0_i32_88, %224 : i32
      %226 = vector.broadcast %225 : i32 to vector<2x16xi32>
      %227 = arith.cmpi slt, %217, %226 : vector<2x16xi32>
      %228 = arith.andi %223, %227 : vector<2x16xi1>
      %cst_89 = arith.constant 1.000000e+00 : f32
      %229 = vector.broadcast %cst_89 : f32 to vector<2x16xf32>
      %230 = arith.select %228, %229, %218 : vector<2x16xi1>, vector<2x16xf32>
      %c1_i32_90 = arith.constant 1 : i32
      %231 = vector.broadcast %c1_i32_90 : i32 to vector<2x16xi32>
      %232 = arith.cmpi eq, %216, %231 : vector<2x16xi32>
      %c8_i32 = arith.constant 8 : i32
      %233 = vector.broadcast %c8_i32 : i32 to vector<2x16xi32>
      %234 = arith.cmpi sge, %217, %233 : vector<2x16xi32>
      %235 = arith.andi %232, %234 : vector<2x16xi1>
      %c1_91 = arith.constant 1 : index
      %236 = memref.load %arg1[%c1_91] : memref<2xi32, #tpu.memory_space<smem>>
      %c8_i32_92 = arith.constant 8 : i32
      %237 = arith.addi %c8_i32_92, %236 : i32
      %238 = vector.broadcast %237 : i32 to vector<2x16xi32>
      %239 = arith.cmpi slt, %217, %238 : vector<2x16xi32>
      %240 = arith.andi %235, %239 : vector<2x16xi1>
      %cst_93 = arith.constant 1.000000e+00 : f32
      %241 = vector.broadcast %cst_93 : f32 to vector<2x16xf32>
      %242 = arith.select %240, %241, %230 : vector<2x16xi1>, vector<2x16xf32>
      %cst_94 = arith.constant dense<0.000000e+00> : vector<2xf32>
      %243 = vector.multi_reduction <add>, %242, %cst_94 [1] : vector<2x16xf32> to vector<2xf32>
      %244 = vector.shape_cast %243 : vector<2xf32> to vector<2x1xf32>
      %cst_95 = arith.constant 1.000000e+00 : f32
      %245 = vector.broadcast %cst_95 : f32 to vector<2x1xf32>
      %246 = arith.maximumf %244, %245 : vector<2x1xf32>
      %247 = tpu.reciprocal %246 {approx = true} : vector<2x1xf32> -> vector<2x1xf32>
      %248 = vector.broadcast %247 : vector<2x1xf32> to vector<2x16xf32>
      %249 = arith.mulf %242, %248 : vector<2x16xf32>
      %cst_96 = arith.constant dense<0.000000e+00> : vector<2x32xf32>
      %250 = tpu.matmul %249, %206, %cst_96 {dimension_numbers = #tpu.dot_dimension_numbers<[1], [0], [0], [1], [0, 0, 1, 1], [], []>} : vector<2x16xf32>, vector<16x32xf32>, vector<2x32xf32> -> vector<2x32xf32>
      %c0_97 = arith.constant 0 : index
      %c0_98 = arith.constant 0 : index
      %251 = vector.load %arg21[%c0_97, %c0_98] : memref<2x32xf32, #tpu.memory_space<vmem>>, vector<2x32xf32>
      tpu.vector_store %arg21[%c0_97, %c0_98], %250 {strides = array<i32>} : memref<2x32xf32, #tpu.memory_space<vmem>>, vector<2x32xf32>,
      %252 = arith.truncf %250 : vector<2x32xf32> to vector<2x32xbf16>
      %c0_99 = arith.constant 0 : index
      %c0_100 = arith.constant 0 : index
      %253 = vector.load %arg18[%c0_99, %c0_100] : memref<32x3xbf16, #tpu.memory_space<vmem>>, vector<32x3xbf16>
      %cst_101 = arith.constant dense<0.000000e+00> : vector<2x3xf32>
      %254 = tpu.matmul %252, %253, %cst_101 {dimension_numbers = #tpu.dot_dimension_numbers<[1], [0], [0], [1], [0, 0, 1, 1], [], []>} : vector<2x32xbf16>, vector<32x3xbf16>, vector<2x3xf32> -> vector<2x3xf32>
      %c0_102 = arith.constant 0 : index
      %c0_103 = arith.constant 0 : index
      %255 = vector.load %arg19[%c0_102, %c0_103] : memref<1x3xf32, #tpu.memory_space<vmem>>, vector<1x3xf32>
      %256 = vector.broadcast %255 : vector<1x3xf32> to vector<2x3xf32>
      %257 = arith.addf %254, %256 : vector<2x3xf32>
      %258 = arith.negf %257 : vector<2x3xf32>
      %259 = math.exp %258 : vector<2x3xf32>
      %cst_104 = arith.constant 1.000000e+00 : f32
      %260 = vector.broadcast %cst_104 : f32 to vector<2x3xf32>
      %261 = arith.addf %260, %259 : vector<2x3xf32>
      %262 = arith.divf %260, %261 : vector<2x3xf32>
      %c0_105 = arith.constant 0 : index
      %c0_106 = arith.constant 0 : index
      %263 = vector.load %arg22[%c0_105, %c0_106] : memref<2x3xf32, #tpu.memory_space<vmem>>, vector<2x3xf32>
      tpu.vector_store %arg22[%c0_105, %c0_106], %262 {strides = array<i32>} : memref<2x3xf32, #tpu.memory_space<vmem>>, vector<2x3xf32>,
    } else {
    }
    return
  }
  func.func @transform_0(%arg0: i32, %arg1: memref<2xi32, #tpu.memory_space<smem>>) -> (i32, i32) {
    %c0_i32 = arith.constant 0 : i32
    %c0_i32_0 = arith.constant 0 : i32
    %c0_i32_1 = arith.constant 0 : i32
    return %c0_i32, %c0_i32_0 : i32, i32
  }
  func.func @transform_1(%arg0: i32, %arg1: memref<2xi32, #tpu.memory_space<smem>>) -> (i32, i32) {
    %c0_i32 = arith.constant 0 : i32
    %c0_i32_0 = arith.constant 0 : i32
    %c0_i32_1 = arith.constant 0 : i32
    return %c0_i32, %c0_i32_0 : i32, i32
  }
  func.func @transform_2(%arg0: i32, %arg1: memref<2xi32, #tpu.memory_space<smem>>) -> (i32, i32) {
    %c0_i32 = arith.constant 0 : i32
    %c0_i32_0 = arith.constant 0 : i32
    %c0_i32_1 = arith.constant 0 : i32
    return %c0_i32, %c0_i32_0 : i32, i32
  }
  func.func @transform_3(%arg0: i32, %arg1: memref<2xi32, #tpu.memory_space<smem>>) -> (i32, i32) {
    %c0_i32 = arith.constant 0 : i32
    %c0_i32_0 = arith.constant 0 : i32
    %c0_i32_1 = arith.constant 0 : i32
    return %c0_i32, %c0_i32_0 : i32, i32
  }
  func.func @transform_4(%arg0: i32, %arg1: memref<2xi32, #tpu.memory_space<smem>>) -> (i32, i32, i32) {
    %c0_i32 = arith.constant 0 : i32
    %c0_i32_0 = arith.constant 0 : i32
    %c0_i32_1 = arith.constant 0 : i32
    return %arg0, %c0_i32, %c0_i32_0 : i32, i32, i32
  }
  func.func @transform_5(%arg0: i32, %arg1: memref<2xi32, #tpu.memory_space<smem>>) -> (i32, i32, i32) {
    %c0_i32 = arith.constant 0 : i32
    %c0_i32_0 = arith.constant 0 : i32
    %c0_i32_1 = arith.constant 0 : i32
    return %arg0, %c0_i32, %c0_i32_0 : i32, i32, i32
  }
  func.func @transform_6(%arg0: i32, %arg1: memref<2xi32, #tpu.memory_space<smem>>) -> (i32, i32, i32) {
    %c0_i32 = arith.constant 0 : i32
    %c0_i32_0 = arith.constant 0 : i32
    %c0_i32_1 = arith.constant 0 : i32
    return %arg0, %c0_i32, %c0_i32_0 : i32, i32, i32
  }
  func.func @transform_7(%arg0: i32, %arg1: memref<2xi32, #tpu.memory_space<smem>>) -> (i32, i32, i32) {
    %c0_i32 = arith.constant 0 : i32
    %c0_i32_0 = arith.constant 0 : i32
    %c0_i32_1 = arith.constant 0 : i32
    return %arg0, %c0_i32, %c0_i32_0 : i32, i32, i32
  }
  func.func @transform_8(%arg0: i32, %arg1: memref<2xi32, #tpu.memory_space<smem>>) -> (i32, i32, i32) {
    %c0_i32 = arith.constant 0 : i32
    %c0_i32_0 = arith.constant 0 : i32
    %c0_i32_1 = arith.constant 0 : i32
    return %arg0, %c0_i32, %c0_i32_0 : i32, i32, i32
  }
  func.func @transform_9(%arg0: i32, %arg1: memref<2xi32, #tpu.memory_space<smem>>) -> (i32, i32, i32) {
    %c0_i32 = arith.constant 0 : i32
    %c0_i32_0 = arith.constant 0 : i32
    %c0_i32_1 = arith.constant 0 : i32
    return %arg0, %c0_i32, %c0_i32_0 : i32, i32, i32
  }
  func.func @transform_10(%arg0: i32, %arg1: memref<2xi32, #tpu.memory_space<smem>>) -> (i32, i32, i32) {
    %c0_i32 = arith.constant 0 : i32
    %c0_i32_0 = arith.constant 0 : i32
    %c0_i32_1 = arith.constant 0 : i32
    return %arg0, %c0_i32, %c0_i32_0 : i32, i32, i32
  }
  func.func @transform_11(%arg0: i32, %arg1: memref<2xi32, #tpu.memory_space<smem>>) -> (i32, i32, i32) {
    %c0_i32 = arith.constant 0 : i32
    %c0_i32_0 = arith.constant 0 : i32
    %c0_i32_1 = arith.constant 0 : i32
    return %arg0, %c0_i32, %c0_i32_0 : i32, i32, i32
  }
  func.func @transform_12(%arg0: i32, %arg1: memref<2xi32, #tpu.memory_space<smem>>) -> (i32, i32, i32) {
    %c0_i32 = arith.constant 0 : i32
    %c0_i32_0 = arith.constant 0 : i32
    %c0_i32_1 = arith.constant 0 : i32
    return %arg0, %c0_i32, %c0_i32_0 : i32, i32, i32
  }
  func.func @transform_13(%arg0: i32, %arg1: memref<2xi32, #tpu.memory_space<smem>>) -> (i32, i32, i32) {
    %c0_i32 = arith.constant 0 : i32
    %c0_i32_0 = arith.constant 0 : i32
    %c0_i32_1 = arith.constant 0 : i32
    return %arg0, %c0_i32, %c0_i32_0 : i32, i32, i32
  }
  func.func @transform_14(%arg0: i32, %arg1: memref<2xi32, #tpu.memory_space<smem>>) -> (i32, i32, i32) {
    %c0_i32 = arith.constant 0 : i32
    %c0_i32_0 = arith.constant 0 : i32
    %c0_i32_1 = arith.constant 0 : i32
    return %arg0, %c0_i32, %c0_i32_0 : i32, i32, i32
  }
  func.func @transform_15(%arg0: i32, %arg1: memref<2xi32, #tpu.memory_space<smem>>) -> (i32, i32, i32) {
    %c0_i32 = arith.constant 0 : i32
    %c0_i32_0 = arith.constant 0 : i32
    %c0_i32_1 = arith.constant 0 : i32
    return %arg0, %c0_i32, %c0_i32_0 : i32, i32, i32
  }
  func.func @transform_16(%arg0: i32, %arg1: memref<2xi32, #tpu.memory_space<smem>>) -> (i32, i32) {
    %c0_i32 = arith.constant 0 : i32
    %c0_i32_0 = arith.constant 0 : i32
    %c0_i32_1 = arith.constant 0 : i32
    return %c0_i32, %c0_i32_0 : i32, i32
  }
  func.func @transform_17(%arg0: i32, %arg1: memref<2xi32, #tpu.memory_space<smem>>) -> (i32, i32) {
    %c0_i32 = arith.constant 0 : i32
    %c0_i32_0 = arith.constant 0 : i32
    %c0_i32_1 = arith.constant 0 : i32
    return %c0_i32, %c0_i32_0 : i32, i32
  }
  func.func @transform_18(%arg0: i32, %arg1: memref<2xi32, #tpu.memory_space<smem>>) -> (i32, i32) {
    %c0_i32 = arith.constant 0 : i32
    %c0_i32_0 = arith.constant 0 : i32
    %c0_i32_1 = arith.constant 0 : i32
    return %c0_i32, %c0_i32_0 : i32, i32
  }
  func.func @transform_19(%arg0: i32, %arg1: memref<2xi32, #tpu.memory_space<smem>>) -> (i32, i32) {
    %c0_i32 = arith.constant 0 : i32
    %c0_i32_0 = arith.constant 0 : i32
    %c0_i32_1 = arith.constant 0 : i32
    return %c0_i32, %c0_i32_0 : i32, i32
  }
  func.func @transform_20(%arg0: i32, %arg1: memref<2xi32, #tpu.memory_space<smem>>) -> (i32, i32) {
    %c0_i32 = arith.constant 0 : i32
    %c0_i32_0 = arith.constant 0 : i32
    %c0_i32_1 = arith.constant 0 : i32
    return %c0_i32, %c0_i32_0 : i32, i32
  }
}

</mosaic_0001>

<bundles_post_ra>
// kernel: tpu_custom_call.1
= control target key start
LH: loop header
LB: loop body
LE: loop exit
PB: predicated region body
PF: predicated region fallthrough
CT: control target
= control target key end

     0   :  { %s6164_s0 = inlined_call_operand.hbm [shape: s32[2], index: 0, kind: input, shape index: {}]   ;;  %s6165_s1 = inlined_call_operand.hbm [shape: f32[16,16], index: 1, kind: input, shape index: {}]   ;;  %s6166_s2 = inlined_call_operand.vmem [shape: f32[8,32], index: 2, kind: input, shape index: {}]   ;;  %s6167_s3 = inlined_call_operand.hbm [shape: bf16[16,32], index: 3, kind: input, shape index: {}]   ;;  %s6168_s4 = inlined_call_operand.hbm [shape: f32[1,32], index: 4, kind: input, shape index: {}]   ;;  %s6169_s5 = inlined_call_operand.hbm [shape: bf16[3,32,96], index: 5, kind: input, shape index: {}]   ;;  %s6170_s6 = inlined_call_operand.vmem [shape: f32[3,1,96], index: 6, kind: input, shape index: {}]   ;;  %s6171_s7 = inlined_call_operand.hbm [shape: bf16[3,32,32], index: 7, kind: input, shape index: {}]   ;;  %s6172_s8 = inlined_call_operand.vmem [shape: f32[3,1,32], index: 8, kind: input, shape index: {}]   ;;  %s6173_s9 = inlined_call_operand.hbm [shape: f32[3,1,32], index: 9, kind: input, shape index: {}]   ;;  %s6174_s10 = inlined_call_operand.hbm [shape: f32[3,1,32], index: 10, kind: input, shape index: {}]   ;;  %s6175_s11 = inlined_call_operand.hbm [shape: bf16[3,32,2048], index: 11, kind: input, shape index: {}]   ;;  %s6176_s12 = inlined_call_operand.vmem [shape: f32[3,1,2048], index: 12, kind: input, shape index: {}]   ;;  %s6177_s13 = inlined_call_operand.hbm [shape: bf16[3,32,2048], index: 13, kind: input, shape index: {}]   ;;  %s6178_s14 = inlined_call_operand.vmem [shape: f32[3,1,32], index: 14, kind: input, shape index: {}]   ;;  %s6179_s15 = inlined_call_operand.vmem [shape: f32[3,1,32], index: 15, kind: input, shape index: {}]   ;;  %s6180_s16 = inlined_call_operand.vmem [shape: f32[3,1,32], index: 16, kind: input, shape index: {}]   ;;  %s6181_s17 = inlined_call_operand.vmem [shape: bf16[32,3], index: 17, kind: input, shape index: {}]   ;;  %s6182_s18 = inlined_call_operand.vmem [shape: f32[1,3], index: 18, kind: input, shape index: {}]   ;;  %s6183_s19 = inlined_call_operand.hbm [shape: f32[2,32], index: 19, kind: output, shape index: {0}]   ;;  %s6184_s20 = inlined_call_operand.hbm [shape: f32[2,32], index: 20, kind: output, shape index: {1}]   ;;  %s6185_s21 = inlined_call_operand.hbm [shape: f32[2,3], index: 21, kind: output, shape index: {2}]  }
   0x1   :  { %6231 = sst [smem:[#allocation39_spill]] %s6164_s0 }
   0x2   :  { %6232 = sst [smem:[#allocation40_spill]] %s6165_s1  ;;  %s6251_s26 = sld [smem:[#allocation39_spill]] }
   0x3   :  { %6233 = sst [smem:[#allocation41_spill]] %s6166_s2 }
   0x4   :  { %6234 = sst [smem:[#allocation42_spill]] %s6167_s3 }
   0x5   :  { %6235 = sst [smem:[#allocation43_spill]] %s6168_s4 }
   0x6   :  { %6236 = sst [smem:[#allocation44_spill]] %s6169_s5 }
   0x7   :  { %6237 = sst [smem:[#allocation45_spill]] %s6170_s6 }
   0x8   :  { %6238 = sst [smem:[#allocation46_spill]] %s6172_s8 }
   0x9   :  { %6239 = sst [smem:[#allocation47_spill]] %s6173_s9 }
   0xa   :  { %6240 = sst [smem:[#allocation48_spill]] %s6174_s10 }
   0xb   :  { %6241 = sst [smem:[#allocation49_spill]] %s6175_s11 }
   0xc   :  { %6242 = sst [smem:[#allocation50_spill]] %s6176_s12 }
   0xd   :  { %6243 = sst [smem:[#allocation51_spill]] %s6178_s14 }
   0xe   :  { %6244 = sst [smem:[#allocation52_spill]] %s6179_s15  ;;  %s4573_s15 = scalar_lea.hbm %s6251_s26, 16 }
   0xf   :  { %6245 = sst [smem:[#allocation53_spill]] %s6180_s16  ;;  %p4574_p0 = scmp.ne.s32.totalorder %s6251_s26, %s4573_s15 }
  0x10   :  { %6246 = sst [smem:[#allocation54_spill]] %s6181_s17  ;;  %p4577_p1 = scmp.lt.u32.totalorder %s4573_s15, %s6251_s26 }
  0x11   :  { %6247 = sst [smem:[#allocation55_spill]] %s6182_s18 }
  0x12   :  { %6248 = sst [smem:[#allocation56_spill]] %s6183_s19  ;;  %p4579_p2 = pnand %p4577_p1, %p4574_p0 }
  0x13   :  { %6249 = sst [smem:[#allocation57_spill]] %s6184_s20 }
  0x14   :  { %6250 = sst [smem:[#allocation58_spill]] %s6185_s21 }
  0x15   :  { %4582 = shalt.err (!%p4579_p2)  }
  0x16   :  { %s4987_s0 = smov [#allocation4]  }
  0x17   :  { %28 = dma.hbm_to_smem %s6251_s26, 16, %s4987_s0, [#allocation3] }
  0x18   :  { %4941 = dma.done.wait [#allocation3], 16 }
  0x19   :  { %4942 = vsyncadd [#allocation3], 4294967280 }
  0x1a   :  { %30 = sfence }
  0x1b   :  { %31 = vsyncpa [#allocation6], 0 }
  0x1c   :  { %32 = vsyncpa [#allocation9], 0 }
  0x1d   :  { %33 = vsyncpa [#allocation12], 0 }
  0x1e   :  { %35 = vsyncpa [#allocation12 + $0x1], 0 }
  0x1f   :  { %36 = vsyncpa [#allocation15], 0 }
  0x20   :  { %38 = vsyncpa [#allocation15 + $0x1], 0 }
  0x21   :  { %39 = vsyncpa [#allocation18], 0 }
  0x22   :  { %41 = vsyncpa [#allocation18 + $0x1], 0 }
  0x23   :  { %42 = vsyncpa [#allocation7], 0 }
  0x24   :  { %43 = vsyncpa [#allocation22], 0  ;;  %s5153_s15 = smov 0   ;;  %s5155_s5 = smov 0  }
  0x25   :  { %s5157_s22 = smov 0   ;;  %s5159_s23 = smov 0  }
  0x26 LB: > { %6252 = sst [smem:[#allocation32_spill]] %s4977_s5  ;;  %s5172_s1 = sadd.s32 4294967295, %s4985_s23   ;;  %s4985_s23 = sphi %s5159_s23, %s6326_s23   ;;  %s4981_s22 = sphi %s5157_s22, %s6329_s22   ;;  %s4977_s5 = sphi %s5155_s5, %s6328_s5   ;;  %s4973_s15 = sphi %s5153_s15, %s6327_s15  }
  0x27   : > { %6253 = sst [smem:[#allocation33_spill]] %s4981_s22  ;;  %s5175_s24 = sadd.s32 1, %s4985_s23  }
  0x28   : > { %6254 = sst [smem:[#allocation34_spill]] %s5172_s1  ;;  %s137_s2 = ssub.s32 %s4985_s23, %s5175_s24 }
  0x29   : > { %6255 = sst [smem:[#allocation35_spill]] %s5175_s24  ;;  %s140_s25 = sadd.s32 1, %s4981_s22 }
  0x2a   : > { %p138_p3 = scmp.eq.s32.totalorder %s137_s2, 0  ;;  %p147_p4 = scmp.ne.s32.totalorder %s4981_s22, %s4977_s5 }
  0x2b   : > { %p148_p5 = scmp.eq.s32.totalorder %s4985_s23, 0  ;;  %p153_p6 = scmp.ne.s32.totalorder %s4977_s5, %s4973_s15 }
  0x2c   : > { %s5185_s26 = scalar_select %p138_p3, %s4981_s22, %s140_s25  }
  0x2d   : > { %p5187_p7 = por %p148_p5, %p147_p4  ;;  %p6197_p8 = scmp.eq.s32.totalorder %s5172_s1, 0 }
  0x2e   : > { %6256 = sst [smem:[#allocation36_spill]] %s5185_s26  ;;  %p4002_p9 = scmp.ge.s32.totalorder %s4985_s23, 1 }
  0x2f   : > { %p555_p10 = scmp.lt.s32.totalorder %s4985_s23, 4  ;;  %p5196_p11 = por %p6197_p8, %p153_p6 }
  0x30   : > { %s4988_s29 = smov [#allocation8]   ;;  %p4423_p2 = scmp.lt.s32.totalorder %s4985_s23, 3 }
  0x31   : > { %s6258_s3 = scalar_select %p5196_p11, 1, 0 }
  0x32   : > { %p5201_p13 = pnand %p4002_p9, %p555_p10  ;;  %s583_s0 = sshll.u32 %s4988_s29, 4  ;;  %s584_s0 = int_to_ptr.vmem [resolvable:$true] %s583_s0 }
  0x33   : > { %6259 = sst [smem:[#allocation37_spill]] %s6258_s3  ;;  %s5215_s30 = sand.u32 1, %s4985_s23  }
  0x34   : > { %s6260_s28 = scalar_select %p5201_p13, 1, 0 }
  0x35   : > { %p4391_p0 = pneg %p5201_p13  ;;  %s5218_s15 = sand.u32 1, %s4981_s22  }
  0x36   : > { %6261 = sst [smem:[#allocation38_spill]] %s6260_s28  ;;  %p5222_p3 = pnand %p4423_p2, %p5187_p7 }
  0x37   : > { %p5209_p1 = pnand %p4391_p0, %p6197_p8  ;;  %s6264_s26 = sld [smem:[#allocation42_spill]] }
  0x38   : > { %s6263_s2 = scalar_select %p5222_p3, 1, 0 }
  0x39   : > { %s6262_s4 = scalar_select %p5209_p1, 1, 0 }
  0x3a   : > { %p5234_p5 = pneg %p5209_p1 }
  0x3c   : > { %s6265_s20 = scalar_select %p5234_p5, 1, 0 }
  0x3d   : > { %s4583_s24 = scalar_lea.hbm %s6264_s26, 128 }
  0x3e   : > { %p4584_p4 = scmp.ne.s32.totalorder %s6264_s26, %s4583_s24  ;;  %p4590_p9 = scmp.lt.u32.totalorder %s4583_s24, %s6264_s26 }
  0x40   : > { %p4586_p6 = pnand %p5234_p5, %p4584_p4 }
  0x42   : > { %p4587_p7 = pneg %p4586_p6 }
  0x44   : > { %p4592_p10 = pnand %p4590_p9, %p4587_p7 }
  0x46   : > { %4595 = shalt.err (!%p4592_p10)
}
  0x47   : > { %s4596_s25 = scalar_lea.vmem %s584_s0, 128  ;;  %p4604_p8 = scmp.lt.s32.totalorder %s584_s0, %s584_s0 }
  0x48   : > { %p4597_p0 = scmp.ne.s32.totalorder %s584_s0, %s4596_s25  ;;  %p4605_p11 = scmp.lt.s32.totalorder %s4596_s25, %s4596_s25 }
  0x4a   : > { %p4599_p2 = pnand %p4597_p0, %p5234_p5  ;;  %p4606_p13 = por %p4605_p11, %p4604_p8 }
  0x4c   : > { %p4600_p12 = pneg %p4599_p2 }
  0x4e   : > { %p4607_p3 = pnand %p4606_p13, %p4600_p12 }
  0x50   : > { %4610 = shalt.err (!%p4607_p3)
}
  0x51   : > { %s6203_s19 = smov 64   ;;  %s6212_s21 = smov 4  }
  0x52   : > { %4397 = dma.hbm_to_vmem [thread:$0]  (!%p5209_p1), %s6264_s26, 128, %s584_s0, [#allocation9], %s6203_s19, %s6203_s19, %s6212_s21  }
  0x53   : > { %s6202_s29 = sshll.u32 %s5218_s15, 4  ;;  %s4156_s27 = sshll.u32 %s4985_s23, 8 }
  0x54   : > { %s6266_s17 = sld [smem:[#allocation44_spill]]  ;;  %s618_s12 = scalar_lea.vmem [#allocation11], %s6202_s29 }
  0x55   : > { %s625_s14 = sshll.u32 %s618_s12, 4  ;;  %s5267_s0 = scalar_lea.hbm %s6171_s7, %s4156_s27  ;;  %s5262_s14 = int_to_ptr.vmem [resolvable:$true] %s625_s14 }
  0x56   : > { %s6211_s22 = scalar_lea.sflag [#allocation12], %s5215_s30  ;;  %p6267_p11 = scmp.ne.s32.totalorder %s6263_s2, 0 }
  0x58   : > { %p5274_p12 = pneg %p6267_p11 }
  0x5a   : > { %s5258_s16 = scalar_lea.hbm %s6266_s17, %s4156_s27  ;;  %s4616_s29 = scalar_lea.hbm %s6266_s17, 768 }
  0x5b   : > { %s4611_s24 = scalar_lea.hbm %s5258_s16, 256  ;;  %p4617_p4 = scmp.lt.u32.totalorder %s5258_s16, %s6266_s17 }
  0x5c   : > { %p4612_p8 = scmp.ne.s32.totalorder %s5258_s16, %s4611_s24  ;;  %p4618_p6 = scmp.lt.u32.totalorder %s4616_s29, %s4611_s24 }
  0x5d   : > { %s6268_s18 = scalar_select %p5274_p12, 1, 0 }
  0x5e   : > { %p4614_p13 = pnand %p5274_p12, %p4612_p8  ;;  %p4619_p7 = por %p4618_p6, %p4617_p4 }
  0x5f   : > { %p4620_p9 = scmp.lt.u32.totalorder %s4611_s24, %s5258_s16 }
  0x60   : > { %p4615_p3 = pneg %p4614_p13 }
  0x61   : > { %p4621_p10 = por %p4620_p9, %p4619_p7 }
  0x63   : > { %p4622_p0 = pnand %p4621_p10, %p4615_p3 }
  0x65   : > { %4625 = shalt.err (!%p4622_p0)
}
  0x66   : > { %s4626_s8 = scalar_lea.vmem %s5262_s14, 256  ;;  %s4991_s27 = smov [#allocation11]  }
  0x67   : > { %p4627_p2 = scmp.ne.s32.totalorder %s5262_s14, %s4626_s8  ;;  %s4631_s12 = sshll.u32 %s4991_s27, 4  ;;  %s4632_s12 = int_to_ptr.vmem [resolvable:$false] %s4631_s12 }
  0x68   : > { %s4633_s19 = scalar_lea.vmem %s4632_s12, 512  ;;  %p4634_p1 = scmp.lt.s32.totalorder %s5262_s14, %s4632_s12 }
  0x69   : > { %p4629_p8 = pnand %p4627_p2, %p5274_p12  ;;  %p4635_p5 = scmp.lt.s32.totalorder %s4633_s19, %s4626_s8 }
  0x6b   : > { %p4630_p13 = pneg %p4629_p8  ;;  %p4636_p4 = por %p4635_p5, %p4634_p1 }
  0x6d   : > { %p4637_p6 = pnand %p4636_p4, %p4630_p13 }
  0x6f   : > { %4640 = shalt.err (!%p4637_p6)
}
  0x70   : > { %s6269_s29 = smov 64   ;;  %s6270_s24 = sshll.u32 %s5218_s15, 4 }
  0x71   : > { %4404 = dma.hbm_to_vmem [thread:$0]  (!%p6267_p11), %s5258_s16, 256, %s5262_s14, %s6211_s22, %s6269_s29, %s6269_s29, %s6212_s21  }
  0x72   : > { %s645_s25 = scalar_lea.vmem [#allocation13], %s6270_s24  ;;  %s6213_s8 = sshll.u32 %s4985_s23, 4 }
  0x73   : > { %s652_s6 = sshll.u32 %s645_s25, 4  ;;  %s671_s27 = scalar_lea.vmem [#allocation14], %s5218_s15  ;;  %s5304_s6 = int_to_ptr.vmem [resolvable:$true] %s652_s6 }
  0x74   : > { %s678_s12 = sshll.u32 %s671_s27, 4  ;;  %s6271_s9 = sld [smem:[#allocation47_spill]]  ;;  %s679_s12 = int_to_ptr.vmem [resolvable:$true] %s678_s12 }
  0x75   : > { %s6215_s14 = scalar_lea.sflag [#allocation15], %s5215_s30 }
  0x7a   : > { %s5313_s26 = scalar_lea.hbm %s6271_s9, %s6213_s8  ;;  %s4646_s27 = scalar_lea.hbm %s6271_s9, 48 }
  0x7b   : > { %s4641_s16 = scalar_lea.hbm %s5313_s26, 16  ;;  %p4647_p7 = scmp.lt.u32.totalorder %s5313_s26, %s6271_s9 }
  0x7c   : > { %p4642_p1 = scmp.ne.s32.totalorder %s5313_s26, %s4641_s16  ;;  %p4648_p9 = scmp.lt.u32.totalorder %s4646_s27, %s4641_s16 }
  0x7d   : > { %p4650_p0 = scmp.lt.u32.totalorder %s4641_s16, %s5313_s26 }
  0x7e   : > { %p4644_p5 = pnand %p4642_p1, %p5274_p12  ;;  %p4649_p10 = por %p4648_p9, %p4647_p7 }
  0x80   : > { %p4645_p3 = pneg %p4644_p5  ;;  %p4651_p2 = por %p4650_p0, %p4649_p10 }
  0x82   : > { %p4652_p8 = pnand %p4651_p2, %p4645_p3 }
  0x84   : > { %4655 = shalt.err (!%p4652_p8)
}
  0x85   : > { %s4656_s17 = scalar_lea.vmem %s679_s12, 16  ;;  %s4992_s19 = smov [#allocation14]  }
  0x86   : > { %p4657_p13 = scmp.ne.s32.totalorder %s679_s12, %s4656_s17  ;;  %s4661_s8 = sshll.u32 %s4992_s19, 4  ;;  %s4662_s8 = int_to_ptr.vmem [resolvable:$false] %s4661_s8 }
  0x87   : > { %s4663_s24 = scalar_lea.vmem %s4662_s8, 32  ;;  %p4664_p1 = scmp.lt.s32.totalorder %s679_s12, %s4662_s8 }
  0x88   : > { %p4659_p4 = pnand %p4657_p13, %p5274_p12  ;;  %p4665_p5 = scmp.lt.s32.totalorder %s4663_s24, %s4656_s17 }
  0x8a   : > { %p4660_p6 = pneg %p4659_p4  ;;  %p4666_p11 = por %p4665_p5, %p4664_p1 }
  0x8c   : > { %p4667_p7 = pnand %p4666_p11, %p4660_p6 }
  0x8e   : > { %4670 = shalt.err (!%p4667_p7)
}
  0x8f   : > { %p6272_p9 = scmp.ne.s32.totalorder %s6263_s2, 0  ;;  %s6273_s21 = sshll.u32 %s4985_s23, 4 }
  0x90   : > { %s6274_s10 = sld [smem:[#allocation48_spill]]  ;;  %s4015_s25 = sshll.u32 %s5218_s15, 8 }
  0x91   : > { %4410 = dma.hbm_to_vmem [thread:$0]  (!%p6272_p9), %s5313_s26, 16, %s679_s12, %s6215_s14  }
  0x92   : > { %s6216_s27 = sshll.u32 %s4985_s23, 12  ;;  %s6275_s11 = sld [smem:[#allocation49_spill]] }
  0x93   : > { %s706_s26 = scalar_lea.vmem [#allocation17], %s4015_s25  ;;  %s6226_s22 = scalar_lea.sflag [#allocation18], %s5215_s30 }
  0x94   : > { %s713_s12 = sshll.u32 %s706_s26, 4  ;;  %s5353_s12 = int_to_ptr.vmem [resolvable:$true] %s713_s12 }
  0x96   : > { %s5340_s16 = scalar_lea.hbm %s6274_s10, %s6273_s21 }
  0x98   : > { %s5349_s24 = scalar_lea.hbm %s6275_s11, %s6216_s27  ;;  %s4676_s17 = scalar_lea.hbm %s6275_s11, 12288 }
  0x99   : > { %s4671_s21 = scalar_lea.hbm %s5349_s24, 4096  ;;  %p4677_p0 = scmp.lt.u32.totalorder %s5349_s24, %s6275_s11 }
  0x9a   : > { %p4672_p11 = scmp.ne.s32.totalorder %s5349_s24, %s4671_s21  ;;  %p4678_p2 = scmp.lt.u32.totalorder %s4676_s17, %s4671_s21 }
  0x9b   : > { %p4680_p13 = scmp.lt.u32.totalorder %s4671_s21, %s5349_s24 }
  0x9c   : > { %p4674_p3 = pnand %p4672_p11, %p5274_p12  ;;  %p4679_p8 = por %p4678_p2, %p4677_p0 }
  0x9e   : > { %p4675_p10 = pneg %p4674_p3  ;;  %p4681_p4 = por %p4680_p13, %p4679_p8 }
  0xa0   : > { %p4682_p6 = pnand %p4681_p4, %p4675_p10 }
  0xa2   : > { %4685 = shalt.err (!%p4682_p6)
}
  0xa3   : > { %s4686_s26 = scalar_lea.vmem %s5353_s12, 4096  ;;  %s4993_s14 = smov [#allocation17]  }
  0xa4   : > { %p4687_p1 = scmp.ne.s32.totalorder %s5353_s12, %s4686_s26  ;;  %s4691_s8 = sshll.u32 %s4993_s14, 4  ;;  %s4692_s8 = int_to_ptr.vmem [resolvable:$false] %s4691_s8 }
  0xa5   : > { %s4693_s27 = scalar_lea.vmem %s4692_s8, 8192  ;;  %p4694_p11 = scmp.lt.s32.totalorder %s5353_s12, %s4692_s8 }
  0xa6   : > { %p4689_p5 = pnand %p4687_p1, %p5274_p12  ;;  %p4695_p3 = scmp.lt.s32.totalorder %s4693_s27, %s4686_s26 }
  0xa8   : > { %p4690_p7 = pneg %p4689_p5  ;;  %p4696_p0 = por %p4695_p3, %p4694_p11 }
  0xaa   : > { %p4697_p2 = pnand %p4696_p0, %p4690_p7 }
  0xac   : > { %4700 = shalt.err (!%p4697_p2)
}
  0xad   : > { %s6227_s21 = smov 1024   ;;  %s6276_s17 = sshll.u32 %s4985_s23, 12 }
  0xae   : > { %4416 = dma.hbm_to_vmem [thread:$0]  (!%p6272_p9), %s5349_s24, 4096, %s5353_s12, %s6226_s22, %s6227_s21, %s6227_s21, %s6269_s29  }
  0xaf   : > { %s5387_s14 = scalar_lea.hbm %s6177_s13, %s6276_s17  ;;  %s734_s8 = scalar_lea.vmem [#allocation19], %s4015_s25 }
  0xb0   : > { %s741_s27 = sshll.u32 %s734_s8, 4  ;;  %s4995_s9 = smov [#allocation5]   ;;  %s5391_s27 = int_to_ptr.vmem [resolvable:$true] %s741_s27 }
  0xb1   : > { %s567_s11 = sshll.u32 %s4995_s9, 4  ;;  %s6277_s1 = sld [smem:[#allocation40_spill]]  ;;  %s568_s11 = int_to_ptr.vmem [resolvable:$true] %s567_s11 }
  0xb2   : > { %p6278_p8 = scmp.ne.s32.totalorder %s6265_s20, 0 }
  0xb7   : > { %s4701_s28 = scalar_lea.hbm %s6277_s1, 256 }
  0xb8   : > { %p4702_p10 = scmp.ne.s32.totalorder %s6277_s1, %s4701_s28  ;;  %p4708_p6 = scmp.lt.u32.totalorder %s4701_s28, %s6277_s1 }
  0xba   : > { %p4704_p13 = pnand %p4702_p10, %p6278_p8 }
  0xbc   : > { %p4705_p4 = pneg %p4704_p13 }
  0xbe   : > { %p4710_p1 = pnand %p4708_p6, %p4705_p4 }
  0xc0   : > { %4713 = shalt.err (!%p4710_p1)
}
  0xc1   : > { %s4714_s25 = scalar_lea.vmem %s568_s11, 256  ;;  %p4722_p3 = scmp.lt.s32.totalorder %s568_s11, %s568_s11 }
  0xc2   : > { %p4715_p5 = scmp.ne.s32.totalorder %s568_s11, %s4714_s25  ;;  %p4723_p0 = scmp.lt.s32.totalorder %s4714_s25, %s4714_s25 }
  0xc4   : > { %p4717_p7 = pnand %p4715_p5, %p6278_p8  ;;  %p4724_p2 = por %p4723_p0, %p4722_p3 }
  0xc6   : > { %p4718_p11 = pneg %p4717_p7 }
  0xc8   : > { %p4725_p9 = pnand %p4724_p2, %p4718_p11 }
  0xca   : > { %4728 = shalt.err (!%p4725_p9)
}
  0xcb   : > { %s4996_s9 = smov 128   ;;  %s4997_s10 = smov 8  }
  0xcc   : > { %p6279_p10 = scmp.ne.s32.totalorder %s6262_s4, 0  ;;  %s4998_s28 = smov [#allocation10]  }
  0xcd   : > { %s597_s17 = sshll.u32 %s4998_s28, 4  ;;  %s688_s19 = scalar_lea.vmem [#allocation16], %s5218_s15  ;;  %s598_s17 = int_to_ptr.vmem [resolvable:$true] %s597_s17 }
  0xce   : > { %4394 = dma.hbm_to_vmem [thread:$0]  (!%p6279_p10), %s6277_s1, 256, %s568_s11, [#allocation6], %s4996_s9, %s4996_s9, %s4997_s10  }
  0xcf   : > { %s695_s26 = sshll.u32 %s688_s19, 4  ;;  %s6280_s23 = sld [smem:[#allocation43_spill]]  ;;  %s5412_s26 = int_to_ptr.vmem [resolvable:$true] %s695_s26 }
  0xd5   : > { %s6281_s12 = smov %s6280_s23  ;;  %s4729_s25 = scalar_lea.hbm %s6280_s23, 16 }
  0xd6   : > { %p4730_p9 = scmp.ne.s32.totalorder %s6281_s12, %s4729_s25  ;;  %p4736_p6 = scmp.lt.u32.totalorder %s4729_s25, %s6281_s12 }
  0xd8   : > { %p4732_p13 = pnand %p4730_p9, %p6278_p8 }
  0xda   : > { %p4733_p4 = pneg %p4732_p13 }
  0xdc   : > { %p4738_p1 = pnand %p4736_p6, %p4733_p4 }
  0xde   : > { %4741 = shalt.err (!%p4738_p1)
}
  0xdf   : > { %s4742_s15 = scalar_lea.vmem %s598_s17, 16  ;;  %s4749_s9 = scalar_lea.vmem %s598_s17, 32 }
  0xe0   : > { %p4743_p5 = scmp.ne.s32.totalorder %s598_s17, %s4742_s15  ;;  %p4750_p3 = scmp.lt.s32.totalorder %s598_s17, %s598_s17 }
  0xe1   : > { %p4751_p0 = scmp.lt.s32.totalorder %s4749_s9, %s4742_s15 }
  0xe2   : > { %p4745_p7 = pnand %p4743_p5, %p6278_p8 }
  0xe3   : > { %p4752_p2 = por %p4751_p0, %p4750_p3 }
  0xe4   : > { %p4746_p11 = pneg %p4745_p7 }
  0xe6   : > { %p4753_p12 = pnand %p4752_p2, %p4746_p11 }
  0xe8   : > { %4756 = shalt.err (!%p4753_p12)
}
  0xe9   : > { %4400 = dma.hbm_to_vmem [thread:$0]  (!%p6279_p10), %s6281_s12, 16, %s598_s17, [#allocation9]  }
  0xea   : > { %s4757_s20 = scalar_lea.hbm %s5267_s0, 256  ;;  %p6282_p9 = scmp.ne.s32.totalorder %s6268_s18, 0 }
  0xeb   : > { %p4758_p8 = scmp.ne.s32.totalorder %s5267_s0, %s4757_s20  ;;  %s4762_s28 = scalar_lea.hbm %s6171_s7, 768 }
  0xec   : > { %p4763_p12 = scmp.lt.u32.totalorder %s5267_s0, %s6171_s7  ;;  %p4764_p6 = scmp.lt.u32.totalorder %s4762_s28, %s4757_s20 }
  0xed   : > { %p4760_p13 = pnand %p4758_p8, %p6282_p9  ;;  %p4766_p5 = scmp.lt.u32.totalorder %s4757_s20, %s5267_s0 }
  0xee   : > { %p4765_p1 = por %p4764_p6, %p4763_p12 }
  0xef   : > { %p4761_p4 = pneg %p4760_p13 }
  0xf0   : > { %p4767_p7 = por %p4766_p5, %p4765_p1 }
  0xf2   : > { %p4768_p11 = pnand %p4767_p7, %p4761_p4 }
  0xf4   : > { %4771 = shalt.err (!%p4768_p11)
}
  0xf5   : > { %s4772_s17 = scalar_lea.vmem %s5304_s6, 256  ;;  %s4999_s8 = smov [#allocation13]  }
  0xf6   : > { %p4773_p10 = scmp.ne.s32.totalorder %s5304_s6, %s4772_s17  ;;  %s4777_s24 = sshll.u32 %s4999_s8, 4  ;;  %s4778_s24 = int_to_ptr.vmem [resolvable:$false] %s4777_s24 }
  0xf7   : > { %s4779_s23 = scalar_lea.vmem %s4778_s24, 512  ;;  %p4780_p2 = scmp.lt.s32.totalorder %s5304_s6, %s4778_s24 }
  0xf8   : > { %p4775_p3 = pnand %p4773_p10, %p6282_p9  ;;  %p4781_p8 = scmp.lt.s32.totalorder %s4779_s23, %s4772_s17 }
  0xfa   : > { %p4776_p0 = pneg %p4775_p3  ;;  %p4782_p13 = por %p4781_p8, %p4780_p2 }
  0xfc   : > { %p4783_p12 = pnand %p4782_p13, %p4776_p0 }
  0xfe   : > { %4786 = shalt.err (!%p4783_p12)
}
  0xff   : > { %p6283_p4 = scmp.ne.s32.totalorder %s6263_s2, 0  ;;  %s6284_s25 = smov 4  }
 0x100   : > { %s6285_s5 = scalar_lea.sflag [#allocation12], %s5215_s30  ;;  %s4787_s11 = scalar_lea.hbm %s5340_s16, 16 }
 0x101   : > { %4407 = dma.hbm_to_vmem [thread:$0]  (!%p6283_p4), %s5267_s0, 256, %s5304_s6, %s6285_s5, %s6269_s29, %s6269_s29, %s6284_s25  }
 0x102   : > { %p4788_p6 = scmp.ne.s32.totalorder %s5340_s16, %s4787_s11  ;;  %s6286_s22 = sld [smem:[#allocation48_spill]] }
 0x103   : > { %p4796_p3 = scmp.lt.u32.totalorder %s4787_s11, %s5340_s16 }
 0x104   : > { %p4790_p1 = pnand %p4788_p6, %p6282_p9 }
 0x106   : > { %p4791_p5 = pneg %p4790_p1 }
 0x108   : > { %s4792_s21 = scalar_lea.hbm %s6286_s22, 48  ;;  %p4793_p7 = scmp.lt.u32.totalorder %s5340_s16, %s6286_s22 }
 0x109   : > { %p4794_p11 = scmp.lt.u32.totalorder %s4792_s21, %s4787_s11 }
 0x10b   : > { %p4795_p10 = por %p4794_p11, %p4793_p7 }
 0x10d   : > { %p4797_p0 = por %p4796_p3, %p4795_p10 }
 0x10f   : > { %p4798_p2 = pnand %p4797_p0, %p4791_p5 }
 0x111   : > { %4801 = shalt.err (!%p4798_p2)
}
 0x112   : > { %s4802_s0 = scalar_lea.vmem %s5412_s26, 16  ;;  %s5000_s6 = smov [#allocation16]  }
 0x113   : > { %p4803_p8 = scmp.ne.s32.totalorder %s5412_s26, %s4802_s0  ;;  %s4807_s3 = sshll.u32 %s5000_s6, 4  ;;  %s4808_s3 = int_to_ptr.vmem [resolvable:$false] %s4807_s3 }
 0x114   : > { %s4809_s28 = scalar_lea.vmem %s4808_s3, 32  ;;  %p4810_p6 = scmp.lt.s32.totalorder %s5412_s26, %s4808_s3 }
 0x115   : > { %p4805_p13 = pnand %p4803_p8, %p6282_p9  ;;  %p4811_p1 = scmp.lt.s32.totalorder %s4809_s28, %s4802_s0 }
 0x117   : > { %p4806_p12 = pneg %p4805_p13  ;;  %p4812_p7 = por %p4811_p1, %p4810_p6 }
 0x119   : > { %p4813_p11 = pnand %p4812_p7, %p4806_p12 }
 0x11b   : > { %4816 = shalt.err (!%p4813_p11)
}
 0x11c   : > { %s6287_s19 = scalar_lea.sflag [#allocation15], %s5215_s30  ;;  %s4817_s4 = scalar_lea.hbm %s5387_s14, 4096 }
 0x11d   : > { %4413 = dma.hbm_to_vmem [thread:$0]  (!%p6283_p4), %s5340_s16, 16, %s5412_s26, %s6287_s19  }
 0x11e   : > { %p4818_p5 = scmp.ne.s32.totalorder %s5387_s14, %s4817_s4  ;;  %s4822_s24 = scalar_lea.hbm %s6177_s13, 12288 }
 0x11f   : > { %p4823_p0 = scmp.lt.u32.totalorder %s5387_s14, %s6177_s13  ;;  %p4824_p2 = scmp.lt.u32.totalorder %s4822_s24, %s4817_s4 }
 0x120   : > { %p4820_p10 = pnand %p4818_p5, %p6282_p9  ;;  %p4826_p13 = scmp.lt.u32.totalorder %s4817_s4, %s5387_s14 }
 0x121   : > { %p4825_p8 = por %p4824_p2, %p4823_p0 }
 0x122   : > { %p4821_p3 = pneg %p4820_p10 }
 0x123   : > { %p4827_p12 = por %p4826_p13, %p4825_p8 }
 0x125   : > { %p4828_p6 = pnand %p4827_p12, %p4821_p3 }
 0x127   : > { %4831 = shalt.err (!%p4828_p6)
}
 0x128   : > { %s4832_s16 = scalar_lea.vmem %s5391_s27, 4096  ;;  %s5001_s26 = smov [#allocation19]  }
 0x129   : > { %p4833_p1 = scmp.ne.s32.totalorder %s5391_s27, %s4832_s16  ;;  %s4837_s5 = sshll.u32 %s5001_s26, 4  ;;  %s4838_s5 = int_to_ptr.vmem [resolvable:$false] %s4837_s5 }
 0x12a   : > { %s4839_s11 = scalar_lea.vmem %s4838_s5, 8192  ;;  %p4840_p5 = scmp.lt.s32.totalorder %s5391_s27, %s4838_s5 }
 0x12b   : > { %p4835_p7 = pnand %p4833_p1, %p6282_p9  ;;  %p4841_p10 = scmp.lt.s32.totalorder %s4839_s11, %s4832_s16 }
 0x12d   : > { %p4836_p11 = pneg %p4835_p7  ;;  %p4842_p0 = por %p4841_p10, %p4840_p5 }
 0x12f   : > { %p4843_p2 = pnand %p4842_p0, %p4836_p11 }
 0x131   : > { %4846 = shalt.err (!%p4843_p2)
}
 0x132   : > { %s6288_s15 = smov 1024   ;;  %s6289_s9 = scalar_lea.sflag [#allocation18], %s5215_s30 }
 0x133   : > { %4419 = dma.hbm_to_vmem [thread:$0]  (!%p6283_p4), %s5387_s14, 4096, %s5391_s27, %s6289_s9, %s6288_s15, %s6288_s15, %s6269_s29  }
 0x134   : > { %s6290_s18 = sld [smem:[#allocation38_spill]] }
 0x13a   : > { %p6291_p9 = scmp.ne.s32.totalorder %s6290_s18, 0 }
 0x13b   : > { %s6292_s22 = sld [smem:[#allocation34_spill]] (!%p6291_p9) }
 0x13c   : > { %771 = sbr.rel (%p6291_p9) target bundleno = 5860 (0x16e4), region = 92 }
 0x141   : > { %p6293_p3 = scmp.eq.s32.totalorder (!%p6291_p9), %s6292_s22, 0 }
 0x143   : > { %4944 = dma.done.wait (%p6293_p3), [#allocation6], 256   ;;  %p6294_p8 = pmov %p6293_p3 }
 0x144   : > { %p6295_p13 = pmov %p6293_p3 }
 0x145   : > { %4946 = vsyncadd (%p6294_p8), [#allocation6], 4294967040 }
 0x146   : > { %4948 = dma.done.wait (%p6295_p13), [#allocation9], 144   ;;  %p6296_p12 = pmov %p6293_p3 }
 0x147   : > { %s6297_s30 = sld [smem:[#allocation32_spill]]  ;;  %s6298_s2 = sld [smem:[#allocation37_spill]] }
 0x148   : > { %4950 = vsyncadd (%p6296_p12), [#allocation9], 4294967152  ;;  %s785_s21 = sand.u32 1, %s6292_s22  }
 0x149   : > { %s786_s27 = scalar_lea.sflag [#allocation12], %s785_s21 }
 0x14d   : > { %s5519_s29 = sand.u32 1, %s6297_s30   ;;  %p6299_p4 = scmp.ne.s32.totalorder %s6298_s2, 0 }
 0x14e   : > { %s4025_s14 = sshll.u32 %s5519_s29, 4 }
 0x14f   : > { %s5522_s20 = scalar_lea.vmem [#allocation11], %s4025_s14 }
 0x150   : > { %4952 = dma.done.wait (%p6299_p4), %s786_s27, 512  }
 0x151   : > { %4954 = vsyncadd (%p6299_p4), %s786_s27, 4294966784  ;;  %s5528_s10 = scalar_lea.vmem [#allocation13], %s4025_s14  ;;  %s804_s0 = scalar_lea.sflag [#allocation15], %s785_s21 }
 0x152   : > { %4956 = dma.done.wait (%p6299_p4), %s804_s0, 32  }
 0x153   : > { %4958 = vsyncadd (%p6299_p4), %s804_s0, 4294967264  ;;  %s6230_s3 = sshll.u32 %s5519_s29, 8  ;;  %s820_s19 = scalar_lea.sflag [#allocation18], %s785_s21 }
 0x154   : > { %s5539_s4 = scalar_lea.vmem [#allocation17], %s6230_s3 }
 0x155   : > { %4960 = dma.done.wait (%p6299_p4), %s820_s19, 8192  }
 0x156   : > { %4962 = vsyncadd (%p6299_p4), %s820_s19, 4294959104  ;;  %v946_v0 = vlaneseq  ;;  %p926_p6 = scmp.lt.s32.totalorder %s6292_s22, 2  ;;  %s951_s17 = sld [smem:[#allocation4]]  ;;  %v5002_v3 = vmov 1966171168   ;;  %v5003_v8 = vmov 0.0  }
 0x157   : > { %s4030_s8 = sld [smem:[#allocation4 + $0x1]]  ;;  %v966_v4 = vunpack.c.l.s4 %v5002_v3  ;;  %s6300_s16 = sld [smem:[#allocation45_spill]] }
 0x158   : > { %v5546_v1 = vshrl.u32 %v946_v0, 7  ;;  %s5549_s24 = scalar_select %p926_p6, %s6292_s22, 2  ;;  %v5551_v2 = vand.u32 127, %v946_v0 }
 0x159   : > { %s6301_s15 = sld [smem:[#allocation46_spill]]  ;;  %s6302_s21 = sld [smem:[#allocation51_spill]]  ;;  %v967_v7 = vunpack.c.0.s8 %v966_v4 }
 0x15a   : > { %s4029_s18 = sshll.u32 %s5549_s24, 4  ;;  %vm950_vm0 = vcmp.eq.s32.totalorder %v5546_v1, 0  ;;  %s6303_s19 = sld [smem:[#allocation50_spill]]  ;;  %vm956_vm1 = vcmp.eq.s32.totalorder %v5546_v1, 1 }
 0x15b   : > { %s6304_s23 = sld [smem:[#allocation52_spill]]  ;;  %s6305_s11 = sld [smem:[#allocation53_spill]]  ;;  %v5589_v12 = vsub.s32 %v967_v7, %v5546_v1 }
 0x15c   : > { %v952_v5 = vstv %s951_s17  ;;  %s6306_s6 = sshll.u32 %s5519_s29, 8  ;;  %p6307_p1 = scmp.ne.s32.totalorder %s6292_s22, 0 }
 0x15d   : > { %s928_s26 = scalar_lea.vmem %s6300_s16, %s5549_s24  ;;  %v958_v6 = vstv %s4030_s8  ;;  %vm953_vm2 = vcmp.lt.s32.totalorder %v5551_v2, %v952_v5  ;;  %s5603_s3 = scalar_lea.vmem [#allocation19], %s6306_s6  ;;  %v4503_v18 = vld [vmem:[#allocation8] sm:$0xff] (!%p6307_p1)   ;;  %v5004_v19 = vmov (!%p6307_p1), 0.0   ;;  %v991_v20 = vld [vmem:[#allocation5] sm:$0xff] (!%p6307_p1)  ;;  %v992_v21 = vld [vmem:[#allocation5 + $0x8] sm:$0xff] (!%p6307_p1)  ;;  %vm5005_vm6 = vmmov (!%p6307_p1), 0  }
 0x15e   : > { %vm959_vm3 = vcmp.lt.s32.totalorder %v5551_v2, %v958_v6  ;;  %vm954_vm4 = vmand %vm950_vm0, %vm953_vm2  ;;  %4209 = vmatprep.subr.bf16.mxu0 (!%p6307_p1), %v5004_v19  ;;  %4211 = vmatprep.mubr.msk.bf16.mxu0 (!%p6307_p1), %vm5005_vm6, %v5004_v19  ;;  %v993_v22 = vpack.c.bf16 (!%p6307_p1), %v992_v21, %v991_v20  ;;  %vm1009_vm7 = vcmask (!%p6307_p1), 130048   ;;  %v4032_v23 = vld [vmem:[#allocation10] ss:$0 sm:$0xff] (!%p6307_p1)  ;;  %vm1057_vm8 = vcmask (!%p6307_p1), 261120  }
 0x15f   : > { %s931_s9 = scalar_lea.vmem %s6301_s15, %s5549_s24  ;;  %s938_s14 = scalar_lea.vmem %s6302_s21, %s5549_s24  ;;  %v955_v9 = vsel %vm954_vm4, 1.0, %v5003_v8  ;;  %vm960_vm5 = vmand %vm956_vm1, %vm959_vm3  ;;  %4210 = vmatpush3.bf16.msra.mxu0 (!%p6307_p1), %v4503_v18 }
 0x160   : > { %s5570_s28 = scalar_lea.vmem %s6303_s19, %s4029_s18  ;;  %v961_v10 = vsel %vm960_vm5, 1.0, %v955_v9  ;;  %s6308_s18 = sld [smem:[#allocation41_spill]] (!%p6307_p1) }
 0x161   : > { %s941_s25 = scalar_lea.vmem %s6304_s23, %s5549_s24  ;;  %s944_s15 = scalar_lea.vmem %s6305_s11, %s5549_s24  ;;  %v962_v11 = vsub.f32 1.0, %v961_v10 }
 0x162   : > { %4212 = vmatmul.mubr.msk.bf16.vlgmr.msra.gmra.mrb[0].mxu0 (!%p6307_p1), %vm1009_vm7, %v993_v22 }
 0x163   : > { %v963_v13 = vmul.f32 -1e+09, %v962_v11  ;;  %990 = sbr.rel (%p6307_p1) target bundleno = 573 (0x23d), region = 132 }
 0x165   : > { %v5592_v14 = vrot.slane %v963_v13, %v5589_v12 }
 0x166   : > { %v1054_v25 = vld [vmem:[%s6308_s18] sm:$0xff] (!%p6307_p1) }
 0x167   : > { %v972_v15 = vcombine.high %v5592_v14, %v5592_v14  ;;  %v979_v16 = vrot.slane %v5592_v14, %v5589_v12 }
 0x169   : > { %v5599_v17 = vrot.slane %v972_v15, %v5589_v12 }
 0x235   : > { %v1047_v24 = vpop.f32.mrb[0].mxu0 }
 0x236   : > { %v1048_v26 = vadd.f32 %v4032_v23, %v1047_v24  ;;  %v4213_v27 = vpop.f32.mrb[1].mxu0 }
 0x237   : > { %v1050_v28 = vpop.f32.mrb[2].mxu0 }
 0x238   : > { %v1055_v29 = vadd.f32 %v1054_v25, %v1048_v26  ;;  %v1051_v30 = vadd.f32 %v4032_v23, %v1050_v28  ;;  %v4214_v31 = vpop.f32.mrb[3].mxu0 }
 0x23a   : > { %1058 = vst.msk [vmem:[#allocation2] sm:$0xff] %vm1057_vm8, %v1055_v29  ;;  %v1056_v32 = vadd.f32 %v1054_v25, %v1051_v30 }
 0x23c   : > { %1059 = vst.msk [vmem:[#allocation2 + $0x8] sm:$0xff] %vm1057_vm8, %v1056_v32 }
 0x23d PF: > { %4215 = vmatprep.subr.bf16.mxu0 %v5003_v8  ;;  %v4519_v33 = vld [vmem:[%s5522_s20] sm:$0xff]   ;;  %4223 = vmatprep.subr.bf16.mxu1 %v5003_v8  ;;  %vm5006_vm9 = vmmov 0   ;;  %v4520_v34 = vld [vmem:[%s5522_s20 + $0x8] sm:$0xff]   ;;  %vm1086_vm10 = vcmask 261120   ;;  %s5007_s2 = smov 96   ;;  %vm1136_vm11 = vcmask 64512  }
 0x23e   : > { %4219 = vmatprep.mubr.msk.bf16.mxu0 %vm5006_vm9, %v5003_v8  ;;  %4225 = vmatprep.mubr.msk.bf16.mxu1 %vm5006_vm9, %v5003_v8  ;;  %v4035_v38 = vld [vmem:[%s928_s26] ss:$0 sm:$0xff]  ;;  %v5653_v51 = vsub.s32 0, %v5546_v1  ;;  %s5008_s26 = smov 64   ;;  %s5009_s21 = smov 88   ;;  %vm1275_vm12 = vcmask 1043456  }
 0x23f   : > { %4216 = vmatpush3.bf16.msra.mxu0 %v4519_v33  ;;  %s5010_s27 = smov 120   ;;  %s5011_s0 = smov 56   ;;  %vm2065_vm13 = vcmask 130048   ;;  %vm2068_vm14 = vcmask 195584  }
 0x240   : > { %4217 = vmatprep.subr.bf16.mxu0 %v5003_v8  ;;  %v5659_v52 = vrot.slane %v979_v16, %v5653_v51  ;;  %v5664_v59 = vrot.slane %v5599_v17, %v5653_v51  ;;  %s5012_s19 = smov 80   ;;  %s5013_s23 = smov 112  }
 0x241   : > { %v5618_v35 = vld [vmem:[#allocation2] sm:$0xff]  ;;  %s5014_s16 = smov 48   ;;  %s5015_s5 = smov 72  }
 0x242   : > { %s5016_s11 = smov 104   ;;  %s5017_s6 = smov 40  }
 0x243   : > { %v5620_v36 = vld [vmem:[#allocation2 + $0x8] sm:$0xff]  ;;  %4218 = vmatpush3.bf16.msra.mxu0 %v4520_v34  ;;  %s5018_s17 = smov 8   ;;  %s5019_s8 = smov 16  }
 0x244   : > { %v1062_v37 = vpack.c.bf16 %v5620_v36, %v5618_v35  ;;  %4229 = vmatprep.subr.bf16.mxu0 %v5003_v8  ;;  %s5020_s18 = smov 24   ;;  %s6312_s30 = scalar_lea.vmem [#allocation16], %s5519_s29 }
 0x246   : > { %4220 = vmatmul.mubr.msk.bf16.vlgmr.msra.gmra.mrb[0].mxu0 %vm1086_vm10, %v1062_v37 }
 0x247   : > { %4231 = vmatprep.mubr.msk.bf16.mxu0 %vm5006_vm9, %v5003_v8 }
 0x319   : > { %v1124_v39 = vpop.f32.mrb[0].mxu0 }
 0x31a   : > { %v1125_v40 = vadd.f32 %v4035_v38, %v1124_v39  ;;  %v4221_v41 = vpop.f32.mrb[1].mxu0 }
 0x31b   : > { %v1127_v42 = vpop.f32.mrb[2].mxu0 }
 0x31c   : > { %v5634_v43 = vpack.c.bf16 %v1125_v40, %v1125_v40  ;;  %v1128_v44 = vadd.f32 %v4035_v38, %v1127_v42  ;;  %v4222_v45 = vpop.f32.mrb[3].mxu0 }
 0x31e   : > { %1134 = vrot.lane.b32.xlu0 %v5634_v43, %s5007_s2  ;;  %v5637_v46 = vpack.c.bf16 %v1128_v44, %v1128_v44 }
 0x322   : > { %1184 = vrot.lane.b32.xlu0 %v5637_v46, %s5007_s2 }
 0x390   : > { %v1135_v47 = vpop.permute.xlu0 %1134 }
 0x391   : > { %v1141_v48 = vsel %vm1136_vm11, %v1135_v47, 0 }
 0x392   : > { %4224 = vmatpush3.bf16.xpose.msra.mxu1 %v1141_v48 }
 0x393   : > { %4235 = vmatprep.subr.bf16.mxu1 %v5003_v8 }
 0x394   : > { %v1185_v49 = vpop.permute.xlu0 %1184 }
 0x395   : > { %v1190_v50 = vsel %vm1136_vm11, %v1185_v49, 0 }
 0x396   : > { %4230 = vmatpush3.bf16.xpose.msra.mxu0 %v1190_v50 }
 0x397   : > { %4241 = vmatprep.subr.bf16.mxu0 %v5003_v8 }
 0x399   : > { %4226 = vmatmul.mubr.msk.bf16.vlgmr.msra.gmra.mrb[0].mxu1 %vm1136_vm11, %v5634_v43 }
 0x39a   : > { %4237 = vmatprep.mubr.msk.bf16.mxu1 %vm5006_vm9, %v5003_v8 }
 0x39d   : > { %4232 = vmatmul.mubr.msk.bf16.vlgmr.msra.gmra.mrb[4].mxu0 %vm1136_vm11, %v5637_v46 }
 0x39e   : > { %4243 = vmatprep.mubr.msk.bf16.mxu0 %vm5006_vm9, %v5003_v8 }
 0x46c   : > { %v1177_v53 = vpop.f32.mrb[0].mxu1 }
 0x46d   : > { %v1232_v54 = vmul.f32 0.35355338, %v1177_v53  ;;  %v4227_v55 = vpop.f32.mrb[1].mxu1 }
 0x46e   : > { %v1180_v56 = vpop.f32.mrb[2].mxu1 }
 0x46f   : > { %v4228_v57 = vpop.f32.mrb[3].mxu1  ;;  %v1244_v58 = vadd.f32 %v5659_v52, %v1232_v54 }
 0x470   : > { %v1226_v60 = vpop.f32.mrb[4].mxu0 }
 0x471   : > { %v1233_v61 = vmul.f32 0.35355338, %v1226_v60  ;;  %v4233_v62 = vpop.f32.mrb[5].mxu0  ;;  %v1246_v63 = vsel %vm1136_vm11, %v1244_v58, -inf }
 0x472   : > { %1247 = vmax.xlane.f32.xlu1 %v1246_v63  ;;  %v1229_v0 = vpop.f32.mrb[6].mxu0 }
 0x473   : > { %v4234_v3 = vpop.f32.mrb[7].mxu0  ;;  %v1245_v4 = vadd.f32 %v5664_v59, %v1233_v61 }
 0x475   : > { %v1249_v5 = vsel %vm1136_vm11, %v1245_v4, -inf }
 0x476   : > { %1250 = vmax.xlane.f32.xlu1 %v1249_v5 }
 0x487   : > { %1270 = vrot.lane.b32.xlu1 %v5634_v43, %s5008_s26 }
 0x48b   : > { %1319 = vrot.lane.b32.xlu1 %v5637_v46, %s5008_s26 }
 0x48f   : > { %1369 = vrot.lane.b32.xlu1 %v5634_v43, %s5009_s21 }
 0x4ff   : > { %v1248_v6 = vpop.xlane.xlu1 %1247 }
 0x500   : > { %v1252_v7 = vsub.f32 %v1244_v58, %v1248_v6 }
 0x502   : > { %v1254_v9 = vmul.f32 1.442695, %v1252_v7 }
 0x503   : > { %v1251_v10 = vpop.xlane.xlu1 %1250 }
 0x504   : > { %4523 = vpow2.f32 %v1254_v9  ;;  %v1253_v11 = vsub.f32 %v1245_v4, %v1251_v10 }
 0x506   : > { %v1256_v12 = vmul.f32 1.442695, %v1253_v11 }
 0x507   : > { %v1271_v13 = vpop.permute.xlu1 %1270 }
 0x508   : > { %4525 = vpow2.f32 %v1256_v12  ;;  %v1277_v14 = vsel %vm1275_vm12, %v1271_v13, 0 }
 0x509   : > { %4236 = vmatpush3.bf16.msra.mxu1 %v1277_v14 }
 0x50a   : > { %4247 = vmatprep.subr.bf16.mxu1 %v5003_v8 }
 0x50b   : > { %v1320_v15 = vpop.permute.xlu1 %1319 }
 0x50c   : > { %v1325_v16 = vsel %vm1275_vm12, %v1320_v15, 0 }
 0x50d   : > { %4242 = vmatpush3.bf16.msra.mxu0 %v1325_v16 }
 0x50e   : > { %v4524_v17 = vpop.eup %4523  ;;  %4253 = vmatprep.subr.bf16.mxu0 %v5003_v8 }
 0x50f   : > { %v1258_v18 = vsel %vm1136_vm11, %v4524_v17, 0.0  ;;  %v1370_v21 = vpop.permute.xlu1 %1369 }
 0x510   : > { %1259 = vadd.xlane.f32.xlu0 %v1258_v18  ;;  %v1375_v28 = vsel %vm1136_vm11, %v1370_v21, 0 }
 0x512   : > { %v4526_v19 = vpop.eup %4525 }
 0x513   : > { %v1261_v20 = vsel %vm1136_vm11, %v4526_v19, 0.0 }
 0x514   : > { %1262 = vadd.xlane.f32.xlu1 %v1261_v20 }
 0x525   : > { %1419 = vrot.lane.b32.xlu1 %v5637_v46, %s5009_s21 }
 0x526   : > { %1367 = vrot.lane.b32.xlu0 %v5634_v43, %s5010_s27 }
 0x529   : > { %1417 = vrot.lane.b32.xlu1 %v5637_v46, %s5010_s27 }
 0x59d   : > { %v1260_v22 = vpop.xlane.xlu0 %1259 }
 0x59e   : > { %4527 = vrcp.f32 %v1260_v22 }
 0x5a1   : > { %v1263_v23 = vpop.xlane.xlu1 %1262  ;;  %v1368_v33 = vpop.permute.xlu0 %1367 }
 0x5a2   : > { %4529 = vrcp.f32 %v1263_v23 }
 0x5a5   : > { %v1420_v30 = vpop.permute.xlu1 %1419 }
 0x5a6   : > { %v1425_v32 = vsel %vm1136_vm11, %v1420_v30, 0 }
 0x5a8   : > { %v4528_v24 = vpop.eup %4527 }
 0x5a9   : > { %v1266_v25 = vmul.f32 %v4528_v24, %v4524_v17  ;;  %v1418_v34 = vpop.permute.xlu1 %1417 }
 0x5ab   : > { %v1268_v26 = vpack.c.bf16 %v1266_v25, %v1266_v25 }
 0x5ac   : > { %v4530_v27 = vpop.eup %4529 }
 0x5ad   : > { %v1267_v29 = vmul.f32 %v4530_v27, %v4526_v19  ;;  %4238 = vmatmul.mubr.msk.bf16.vlgmr.msra.gmra.mrb[4].mxu1 %vm1136_vm11, %v1268_v26 }
 0x5ae   : > { %4248 = vmatpush3.bf16.xpose.msra.mxu1 %v1375_v28  ;;  %4249 = vmatprep.mubr.msk.bf16.mxu1 %vm5006_vm9, %v5003_v8 }
 0x5af   : > { %v1269_v31 = vpack.c.bf16 %v1267_v29, %v1267_v29  ;;  %4259 = vmatprep.subr.bf16.mxu1 %v5003_v8 }
 0x5b1   : > { %4244 = vmatmul.mubr.msk.bf16.vlgmr.msra.gmra.mrb[8].mxu0 %vm1136_vm11, %v1269_v31 }
 0x5b2   : > { %4254 = vmatpush3.bf16.xpose.msra.mxu0 %v1425_v32  ;;  %4255 = vmatprep.mubr.msk.bf16.mxu0 %vm5006_vm9, %v5003_v8 }
 0x5b3   : > { %4265 = vmatprep.subr.bf16.mxu0 %v5003_v8 }
 0x5b5   : > { %4250 = vmatmul.mubr.msk.bf16.vlgmr.msra.gmra.mrb[8].mxu1 %vm1136_vm11, %v1368_v33 }
 0x5b6   : > { %4261 = vmatprep.mubr.msk.bf16.mxu1 %vm5006_vm9, %v5003_v8 }
 0x5b9   : > { %4256 = vmatmul.mubr.msk.bf16.vlgmr.msra.gmra.mrb[12].mxu0 %vm1136_vm11, %v1418_v34 }
 0x5ba   : > { %4267 = vmatprep.mubr.msk.bf16.mxu0 %vm5006_vm9, %v5003_v8 }
 0x680   : > { %v5697_v37 = vpop.f32.mrb[4].mxu1 }
 0x681   : > { %v4239_v38 = vpop.f32.mrb[5].mxu1 }
 0x682   : > { %v1316_v39 = vpop.f32.mrb[6].mxu1 }
 0x683   : > { %v4240_v40 = vpop.f32.mrb[7].mxu1 }
 0x684   : > { %v5699_v41 = vpop.f32.mrb[8].mxu0 }
 0x685   : > { %v4245_v42 = vpop.f32.mrb[9].mxu0 }
 0x686   : > { %v1364_v44 = vpop.f32.mrb[10].mxu0 }
 0x687   : > { %v4246_v45 = vpop.f32.mrb[11].mxu0 }
 0x688   : > { %v1411_v47 = vpop.f32.mrb[8].mxu1 }
 0x689   : > { %v1467_v48 = vmul.f32 0.35355338, %v1411_v47  ;;  %v4251_v49 = vpop.f32.mrb[9].mxu1 }
 0x68a   : > { %v1414_v50 = vpop.f32.mrb[10].mxu1 }
 0x68b   : > { %v4252_v53 = vpop.f32.mrb[11].mxu1  ;;  %v1469_v54 = vadd.f32 %v1467_v48, %v5659_v52 }
 0x68c   : > { %v1461_v55 = vpop.f32.mrb[12].mxu0 }
 0x68d   : > { %v1468_v56 = vmul.f32 0.35355338, %v1461_v55  ;;  %v4257_v57 = vpop.f32.mrb[13].mxu0  ;;  %v1471_v58 = vsel %vm1136_vm11, %v1469_v54, -inf }
 0x68e   : > { %1472 = vmax.xlane.f32.xlu1 %v1471_v58  ;;  %v1464_v60 = vpop.f32.mrb[14].mxu0 }
 0x68f   : > { %v4258_v61 = vpop.f32.mrb[15].mxu0  ;;  %v1470_v62 = vadd.f32 %v1468_v56, %v5664_v59 }
 0x691   : > { %v1474_v63 = vsel %vm1136_vm11, %v1470_v62, -inf }
 0x692   : > { %1475 = vmax.xlane.f32.xlu0 %v1474_v63 }
 0x69f   : > { %1495 = vrot.lane.b32.xlu1 %v5634_v43, %s5011_s0 }
 0x6a3   : > { %1593 = vrot.lane.b32.xlu1 %v5634_v43, %s5012_s19 }
 0x6a8   : > { %1543 = vrot.lane.b32.xlu0 %v5637_v46, %s5011_s0  ;;  %s6316_s0 = sld [smem:[#allocation34_spill]] }
 0x6ac   : > { %1591 = vrot.lane.b32.xlu0 %v5634_v43, %s5013_s23 }
 0x6ae   : > { %p6317_p7 = scmp.ne.s32.totalorder %s6316_s0, 0 }
 0x71b   : > { %v1473_v0 = vpop.xlane.xlu1 %1472 }
 0x71c   : > { %v1477_v3 = vsub.f32 %v1469_v54, %v1473_v0 }
 0x71e   : > { %v1479_v4 = vmul.f32 1.442695, %v1477_v3 }
 0x71f   : > { %v1496_v5 = vpop.permute.xlu1 %1495  ;;  %v1476_v6 = vpop.xlane.xlu0 %1475 }
 0x720   : > { %4531 = vpow2.f32 %v1479_v4  ;;  %v1501_v7 = vsel %vm1275_vm12, %v1496_v5, 0  ;;  %v1478_v9 = vsub.f32 %v1470_v62, %v1476_v6 }
 0x721   : > { %4260 = vmatpush3.bf16.msra.mxu1 %v1501_v7 }
 0x722   : > { %v1481_v10 = vmul.f32 1.442695, %v1478_v9  ;;  %4271 = vmatprep.subr.bf16.mxu1 %v5003_v8 }
 0x723   : > { %v1544_v11 = vpop.permute.xlu0 %1543  ;;  %v1594_v17 = vpop.permute.xlu1 %1593 }
 0x724   : > { %4533 = vpow2.f32 %v1481_v10  ;;  %v1549_v12 = vsel %vm1275_vm12, %v1544_v11, 0  ;;  %v1599_v24 = vsel %vm1136_vm11, %v1594_v17, 0 }
 0x725   : > { %4266 = vmatpush3.bf16.msra.mxu0 %v1549_v12 }
 0x726   : > { %4277 = vmatprep.subr.bf16.mxu0 %v5003_v8 }
 0x727   : > { %v1592_v29 = vpop.permute.xlu0 %1591 }
 0x72a   : > { %v4532_v13 = vpop.eup %4531 }
 0x72b   : > { %v1483_v14 = vsel %vm1136_vm11, %v4532_v13, 0.0 }
 0x72c   : > { %1484 = vadd.xlane.f32.xlu1 %v1483_v14 }
 0x72e   : > { %v4534_v15 = vpop.eup %4533 }
 0x72f   : > { %v1486_v16 = vsel %vm1136_vm11, %v4534_v15, 0.0 }
 0x730   : > { %1487 = vadd.xlane.f32.xlu1 %v1486_v16 }
 0x741   : > { %1643 = vrot.lane.b32.xlu1 %v5637_v46, %s5012_s19 }
 0x745   : > { %1641 = vrot.lane.b32.xlu1 %v5637_v46, %s5013_s23 }
 0x7b9   : > { %v1485_v18 = vpop.xlane.xlu1 %1484 }
 0x7ba   : > { %4535 = vrcp.f32 %v1485_v18 }
 0x7bd   : > { %v1488_v19 = vpop.xlane.xlu1 %1487 }
 0x7be   : > { %4537 = vrcp.f32 %v1488_v19 }
 0x7c1   : > { %v1644_v26 = vpop.permute.xlu1 %1643 }
 0x7c2   : > { %v1649_v28 = vsel %vm1136_vm11, %v1644_v26, 0 }
 0x7c4   : > { %v4536_v20 = vpop.eup %4535 }
 0x7c5   : > { %v1491_v21 = vmul.f32 %v4536_v20, %v4532_v13  ;;  %v1642_v30 = vpop.permute.xlu1 %1641 }
 0x7c7   : > { %v1493_v22 = vpack.c.bf16 %v1491_v21, %v1491_v21 }
 0x7c8   : > { %v4538_v23 = vpop.eup %4537 }
 0x7c9   : > { %v1492_v25 = vmul.f32 %v4538_v23, %v4534_v15  ;;  %4262 = vmatmul.mubr.msk.bf16.vlgmr.msra.gmra.mrb[12].mxu1 %vm1136_vm11, %v1493_v22 }
 0x7ca   : > { %4272 = vmatpush3.bf16.xpose.msra.mxu1 %v1599_v24  ;;  %4273 = vmatprep.mubr.msk.bf16.mxu1 %vm5006_vm9, %v5003_v8 }
 0x7cb   : > { %v1494_v27 = vpack.c.bf16 %v1492_v25, %v1492_v25  ;;  %4283 = vmatprep.subr.bf16.mxu1 %v5003_v8 }
 0x7cd   : > { %4268 = vmatmul.mubr.msk.bf16.vlgmr.msra.gmra.mrb[16].mxu0 %vm1136_vm11, %v1494_v27 }
 0x7ce   : > { %4278 = vmatpush3.bf16.xpose.msra.mxu0 %v1649_v28  ;;  %4279 = vmatprep.mubr.msk.bf16.mxu0 %vm5006_vm9, %v5003_v8 }
 0x7cf   : > { %4289 = vmatprep.subr.bf16.mxu0 %v5003_v8 }
 0x7d1   : > { %4274 = vmatmul.mubr.msk.bf16.vlgmr.msra.gmra.mrb[16].mxu1 %vm1136_vm11, %v1592_v29 }
 0x7d2   : > { %4285 = vmatprep.mubr.msk.bf16.mxu1 %vm5006_vm9, %v5003_v8 }
 0x7d5   : > { %4280 = vmatmul.mubr.msk.bf16.vlgmr.msra.gmra.mrb[20].mxu0 %vm1136_vm11, %v1642_v30 }
 0x7d6   : > { %4291 = vmatprep.mubr.msk.bf16.mxu0 %vm5006_vm9, %v5003_v8 }
 0x89c   : > { %v5733_v31 = vpop.f32.mrb[12].mxu1 }
 0x89d   : > { %v4263_v32 = vpop.f32.mrb[13].mxu1 }
 0x89e   : > { %v1540_v33 = vpop.f32.mrb[14].mxu1 }
 0x89f   : > { %v4264_v34 = vpop.f32.mrb[15].mxu1 }
 0x8a0   : > { %v5735_v38 = vpop.f32.mrb[16].mxu0 }
 0x8a1   : > { %v4504_v39 = vpack.i.bf16 %v5735_v38, %v5733_v31  ;;  %v4269_v40 = vpop.f32.mrb[17].mxu0 }
 0x8a2   : > { %v1588_v42 = vpop.f32.mrb[18].mxu0 }
 0x8a3   : > { %v4270_v44 = vpop.f32.mrb[19].mxu0 }
 0x8a4   : > { %v1635_v45 = vpop.f32.mrb[16].mxu1 }
 0x8a5   : > { %v1691_v47 = vmul.f32 0.35355338, %v1635_v45  ;;  %v4275_v48 = vpop.f32.mrb[17].mxu1 }
 0x8a6   : > { %v1638_v49 = vpop.f32.mrb[18].mxu1 }
 0x8a7   : > { %v4276_v50 = vpop.f32.mrb[19].mxu1  ;;  %v1693_v53 = vadd.f32 %v1691_v47, %v5659_v52 }
 0x8a8   : > { %v1685_v54 = vpop.f32.mrb[20].mxu0 }
 0x8a9   : > { %v1692_v55 = vmul.f32 0.35355338, %v1685_v54  ;;  %v4281_v56 = vpop.f32.mrb[21].mxu0  ;;  %v1695_v57 = vsel %vm1136_vm11, %v1693_v53, -inf }
 0x8aa   : > { %1696 = vmax.xlane.f32.xlu0 %v1695_v57  ;;  %v1688_v58 = vpop.f32.mrb[22].mxu0 }
 0x8ab   : > { %v4282_v60 = vpop.f32.mrb[23].mxu0  ;;  %v1694_v61 = vadd.f32 %v1692_v55, %v5664_v59 }
 0x8ad   : > { %v1698_v62 = vsel %vm1136_vm11, %v1694_v61, -inf }
 0x8ae   : > { %1699 = vmax.xlane.f32.xlu1 %v1698_v62 }
 0x8bf   : > { %1719 = vrot.lane.b32.xlu1 %v5634_v43, %s5014_s16 }
 0x8c3   : > { %1817 = vrot.lane.b32.xlu1 %v5634_v43, %s5015_s5 }
 0x8c7   : > { %1867 = vrot.lane.b32.xlu1 %v5637_v46, %s5015_s5 }
 0x8cb   : > { %1865 = vrot.lane.b32.xlu1 %v5637_v46, %s5016_s11 }
 0x937   : > { %v1697_v63 = vpop.xlane.xlu0 %1696 }
 0x938   : > { %v1701_v0 = vsub.f32 %v1693_v53, %v1697_v63 }
 0x93a   : > { %v1703_v3 = vmul.f32 1.442695, %v1701_v0 }
 0x93b   : > { %v1700_v4 = vpop.xlane.xlu1 %1699 }
 0x93c   : > { %4539 = vpow2.f32 %v1703_v3  ;;  %v1702_v5 = vsub.f32 %v1694_v61, %v1700_v4 }
 0x93e   : > { %v1705_v6 = vmul.f32 1.442695, %v1702_v5 }
 0x93f   : > { %v1720_v7 = vpop.permute.xlu1 %1719 }
 0x940   : > { %4541 = vpow2.f32 %v1705_v6  ;;  %v1725_v9 = vsel %vm1275_vm12, %v1720_v7, 0 }
 0x941   : > { %4284 = vmatpush3.bf16.msra.mxu1 %v1725_v9 }
 0x942   : > { %4295 = vmatprep.subr.bf16.mxu1 %v5003_v8 }
 0x943   : > { %v1818_v19 = vpop.permute.xlu1 %1817 }
 0x944   : > { %v1823_v23 = vsel %vm1136_vm11, %v1818_v19, 0  ;;  %v4521_v19 = vld [vmem:[%s5528_s10] sm:$0xff]  }
 0x946   : > { %v4540_v10 = vpop.eup %4539 }
 0x947   : > { %v1707_v11 = vsel %vm1136_vm11, %v4540_v10, 0.0  ;;  %v1868_v25 = vpop.permute.xlu1 %1867 }
 0x948   : > { %1708 = vadd.xlane.f32.xlu0 %v1707_v11  ;;  %v1873_v27 = vsel %vm1136_vm11, %v1868_v25, 0 }
 0x94a   : > { %v4542_v12 = vpop.eup %4541 }
 0x94b   : > { %v1710_v13 = vsel %vm1136_vm11, %v4542_v12, 0.0  ;;  %v1866_v29 = vpop.permute.xlu1 %1865 }
 0x94c   : > { %1711 = vadd.xlane.f32.xlu0 %v1710_v13 }
 0x962   : > { %1767 = vrot.lane.b32.xlu0 %v5637_v46, %s5014_s16 }
 0x966   : > { %1815 = vrot.lane.b32.xlu0 %v5634_v43, %s5016_s11 }
 0x9d5   : > { %v1709_v14 = vpop.xlane.xlu0 %1708 }
 0x9d6   : > { %4543 = vrcp.f32 %v1709_v14 }
 0x9d9   : > { %v1712_v15 = vpop.xlane.xlu0 %1711 }
 0x9da   : > { %4545 = vrcp.f32 %v1712_v15 }
 0x9dd   : > { %v1768_v16 = vpop.permute.xlu0 %1767 }
 0x9de   : > { %v1773_v17 = vsel %vm1275_vm12, %v1768_v16, 0 }
 0x9df   : > { %4290 = vmatpush3.bf16.msra.mxu0 %v1773_v17 }
 0x9e0   : > { %v4544_v18 = vpop.eup %4543  ;;  %4301 = vmatprep.subr.bf16.mxu0 %v5003_v8 }
 0x9e1   : > { %v1715_v20 = vmul.f32 %v4544_v18, %v4540_v10  ;;  %v1816_v28 = vpop.permute.xlu0 %1815 }
 0x9e3   : > { %v1717_v21 = vpack.c.bf16 %v1715_v20, %v1715_v20  ;;  %v4522_v20 = vld [vmem:[%s5528_s10 + $0x8] sm:$0xff]  }
 0x9e4   : > { %v4546_v22 = vpop.eup %4545 }
 0x9e5   : > { %v1716_v24 = vmul.f32 %v4546_v22, %v4542_v12  ;;  %4286 = vmatmul.mubr.msk.bf16.vlgmr.msra.gmra.mrb[20].mxu1 %vm1136_vm11, %v1717_v21 }
 0x9e6   : > { %4296 = vmatpush3.bf16.xpose.msra.mxu1 %v1823_v23  ;;  %4297 = vmatprep.mubr.msk.bf16.mxu1 %vm5006_vm9, %v5003_v8 }
 0x9e7   : > { %v1718_v26 = vpack.c.bf16 %v1716_v24, %v1716_v24  ;;  %4307 = vmatprep.subr.bf16.mxu1 %v5003_v8 }
 0x9e9   : > { %4292 = vmatmul.mubr.msk.bf16.vlgmr.msra.gmra.mrb[24].mxu0 %vm1136_vm11, %v1718_v26 }
 0x9ea   : > { %4302 = vmatpush3.bf16.xpose.msra.mxu0 %v1873_v27  ;;  %4303 = vmatprep.mubr.msk.bf16.mxu0 %vm5006_vm9, %v5003_v8 }
 0x9eb   : > { %4313 = vmatprep.subr.bf16.mxu0 %v5003_v8 }
 0x9ed   : > { %4298 = vmatmul.mubr.msk.bf16.vlgmr.msra.gmra.mrb[24].mxu1 %vm1136_vm11, %v1816_v28 }
 0x9ee   : > { %4309 = vmatprep.mubr.msk.bf16.mxu1 %vm5006_vm9, %v5003_v8 }
 0x9f1   : > { %4304 = vmatmul.mubr.msk.bf16.vlgmr.msra.gmra.mrb[28].mxu0 %vm1136_vm11, %v1866_v29 }
 0x9f2   : > { %4315 = vmatprep.mubr.msk.bf16.mxu0 %vm5006_vm9, %v5003_v8 }
 0xab8   : > { %v1761_v30 = vpop.f32.mrb[20].mxu1 }
 0xab9   : > { %v4287_v32 = vpop.f32.mrb[21].mxu1 }
 0xaba   : > { %v1764_v33 = vpop.f32.mrb[22].mxu1 }
 0xabb   : > { %v4288_v34 = vpop.f32.mrb[23].mxu1 }
 0xabc   : > { %v1809_v40 = vpop.f32.mrb[24].mxu0 }
 0xabd   : > { %v4509_v42 = vpack.i.bf16 %v1809_v40, %v1761_v30  ;;  %v4293_v44 = vpop.f32.mrb[25].mxu0 }
 0xabe   : > { %v1812_v45 = vpop.f32.mrb[26].mxu0 }
 0xabf   : > { %v4294_v47 = vpop.f32.mrb[27].mxu0 }
 0xac0   : > { %v1859_v48 = vpop.f32.mrb[24].mxu1 }
 0xac1   : > { %v1915_v49 = vmul.f32 0.35355338, %v1859_v48  ;;  %v4299_v50 = vpop.f32.mrb[25].mxu1 }
 0xac2   : > { %v1862_v53 = vpop.f32.mrb[26].mxu1 }
 0xac3   : > { %v4300_v54 = vpop.f32.mrb[27].mxu1  ;;  %v1917_v55 = vadd.f32 %v1915_v49, %v5659_v52 }
 0xac4   : > { %v1909_v56 = vpop.f32.mrb[28].mxu0 }
 0xac5   : > { %v1916_v57 = vmul.f32 0.35355338, %v1909_v56  ;;  %v4305_v58 = vpop.f32.mrb[29].mxu0  ;;  %v1919_v60 = vsel %vm1136_vm11, %v1917_v55, -inf  ;;  %v4055_v56 = vld [vmem:[%s931_s9] ss:$0 sm:$0xff] }
 0xac6   : > { %1920 = vmax.xlane.f32.xlu0 %v1919_v60  ;;  %v1912_v61 = vpop.f32.mrb[30].mxu0  ;;  %s6311_s9 = scalar_lea.vmem [#allocation14], %s5519_s29 }
 0xac7   : > { %v4306_v62 = vpop.f32.mrb[31].mxu0  ;;  %v1918_v63 = vadd.f32 %v1916_v57, %v5664_v59 }
 0xac9   : > { %v1922_v0 = vsel %vm1136_vm11, %v1918_v63, -inf }
 0xaca   : > { %1923 = vmax.xlane.f32.xlu1 %v1922_v0 }
 0xadb   : > { %1943 = vrot.lane.b32.xlu1 %v5634_v43, %s5017_s6 }
 0xadf   : > { %4505 = vrot.lane.b32.xlu1 %v4504_v39, %s5018_s17 }
 0xae3   : > { %4510 = vrot.lane.b32.xlu1 %v4509_v42, %s5019_s8 }
 0xb53   : > { %v1921_v52 = vpop.xlane.xlu0 %1920 }
 0xb54   : > { %v1925_v3 = vsub.f32 %v1917_v55, %v1921_v52 }
 0xb56   : > { %v1927_v4 = vmul.f32 1.442695, %v1925_v3 }
 0xb57   : > { %v1924_v5 = vpop.xlane.xlu1 %1923 }
 0xb58   : > { %4547 = vpow2.f32 %v1927_v4  ;;  %v1926_v6 = vsub.f32 %v1918_v63, %v1924_v5 }
 0xb5a   : > { %v1929_v59 = vmul.f32 1.442695, %v1926_v6 }
 0xb5b   : > { %v1944_v7 = vpop.permute.xlu1 %1943 }
 0xb5c   : > { %4549 = vpow2.f32 %v1929_v59  ;;  %v1949_v9 = vsel %vm1275_vm12, %v1944_v7, 0 }
 0xb5d   : > { %4308 = vmatpush3.bf16.msra.mxu1 %v1949_v9 }
 0xb5e   : > { %4319 = vmatprep.subr.bf16.mxu1 %v5003_v8 }
 0xb5f   : > { %v4506_v30 = vpop.permute.xlu1 %4505 }
 0xb60   : > { %v4508_v33 = vunpack.i.h.bf16 %v4506_v30  ;;  %v4507_v34 = vunpack.i.l.bf16 %v4506_v30 }
 0xb62   : > { %v4548_v43 = vpop.eup %4547  ;;  %v2064_v44 = vsel %vm1136_vm11, %v5699_v41, %v4508_v33  ;;  %v2063_v45 = vsel %vm1136_vm11, %v5697_v37, %v4507_v34 }
 0xb63   : > { %v1931_v31 = vsel %vm1136_vm11, %v4548_v43, 0.0  ;;  %v4511_v32 = vpop.permute.xlu1 %4510 }
 0xb64   : > { %1932 = vadd.xlane.f32.xlu0 %v1931_v31  ;;  %v4513_v40 = vunpack.i.h.bf16 %v4511_v32  ;;  %v2187_v31 = vld [vmem:[%s5539_s4] sm:$0xff] }
 0xb66   : > { %v4550_v38 = vpop.eup %4549  ;;  %v2067_v50 = vsel %vm2065_vm13, %v2064_v44, %v4513_v40 }
 0xb67   : > { %v1934_v39 = vsel %vm1136_vm11, %v4550_v38, 0.0 }
 0xb68   : > { %1935 = vadd.xlane.f32.xlu0 %v1934_v39  ;;  %v2188_v39 = vld [vmem:[%s5539_s4 + $0x8] sm:$0xff] }
 0xb7e   : > { %1991 = vrot.lane.b32.xlu0 %v5637_v46, %s5017_s6 }
 0xbf1   : > { %v1933_v10 = vpop.xlane.xlu0 %1932 }
 0xbf2   : > { %4551 = vrcp.f32 %v1933_v10 }
 0xbf5   : > { %v1936_v11 = vpop.xlane.xlu0 %1935 }
 0xbf6   : > { %4553 = vrcp.f32 %v1936_v11  ;;  %v2196_v11 = vld [vmem:[%s5539_s4 + $0x48] sm:$0xff] }
 0xbf9   : > { %v1992_v12 = vpop.permute.xlu0 %1991 }
 0xbfa   : > { %v1997_v13 = vsel %vm1275_vm12, %v1992_v12, 0 }
 0xbfb   : > { %4314 = vmatpush3.bf16.msra.mxu0 %v1997_v13  ;;  %v4063_v13 = vcombine.low %v2188_v39, %v2196_v11 }
 0xbfc   : > { %v4552_v14 = vpop.eup %4551 }
 0xbfd   : > { %v1939_v15 = vmul.f32 %v4552_v14, %v4548_v43  ;;  %v4064_v14 = vcombine.high %v2188_v39, %v2196_v11  ;;  %v2201_v11 = vld [vmem:[%s5539_s4 + $0x70] sm:$0xff] }
 0xbff   : > { %v1941_v16 = vpack.c.bf16 %v1939_v15, %v1939_v15  ;;  %v2203_v15 = vld [vmem:[%s5539_s4 + $0x80] sm:$0xff] }
 0xc00   : > { %v4554_v17 = vpop.eup %4553 }
 0xc01   : > { %v1940_v18 = vmul.f32 %v4554_v17, %v4550_v38  ;;  %4310 = vmatmul.mubr.msk.bf16.vlgmr.msra.gmra.mrb[28].mxu1 %vm1136_vm11, %v1941_v16  ;;  %v2195_v38 = vld [vmem:[%s5539_s4 + $0x40] sm:$0xff]  ;;  %v2204_v17 = vld [vmem:[%s5539_s4 + $0x88] sm:$0xff] }
 0xc02   : > { %4323 = vmatprep.mubr.msk.bf16.mxu1 %vm5006_vm9, %v5003_v8  ;;  %4320 = vmatpush3.bf16.msra.mxu1 %v4521_v19  ;;  %v4062_v10 = vcombine.high %v2187_v31, %v2195_v38  ;;  %v4061_v12 = vcombine.low %v2187_v31, %v2195_v38  ;;  %v2211_v16 = vld [vmem:[%s5539_s4 + $0xc0] sm:$0xff] }
 0xc03   : > { %v1942_v46 = vpack.c.bf16 %v1940_v18, %v1940_v18  ;;  %4321 = vmatprep.subr.bf16.mxu1 %v5003_v8  ;;  %v4512_v8 = vunpack.i.l.bf16 %v4511_v32  ;;  %v4078_v18 = vcombine.high %v2203_v15, %v2211_v16  ;;  %v4077_v19 = vcombine.low %v2203_v15, %v2211_v16 }
 0xc04   : > { %2466 = vmatprep.subr.bf16.mxu0 %v4062_v10  ;;  %v2193_v10 = vld [vmem:[%s5539_s4 + $0x30] sm:$0xff] }
 0xc05   : > { %4316 = vmatmul.mubr.msk.bf16.vlgmr.msra.gmra.mrb[32].mxu0 %vm1136_vm11, %v1942_v46  ;;  %v2066_v49 = vsel %vm2065_vm13, %v2063_v45, %v4512_v8  ;;  %v2212_v46 = vld [vmem:[%s5539_s4 + $0xc8] sm:$0xff]  ;;  %v4059_v45 = vld [vmem:[%s6311_s9] ss:$0 sm:$0xff]  ;;  %v4074_v16 = vcombine.high %v2193_v10, %v2201_v11 }
 0xc06   : > { %4322 = vmatpush3.bf16.msra.mxu1 %v4522_v20  ;;  %2467 = vmatpush1.bf16.msra.mxu0 %v4061_v12  ;;  %v4079_v20 = vcombine.low %v2204_v17, %v2212_v46  ;;  %v2194_v12 = vld [vmem:[%s5539_s4 + $0x38] sm:$0xff] }
 0xc07   : > { %2509 = vmatprep.subr.bf16.mxu1 %v4064_v14  ;;  %2468 = vmatprep.subr.bf16.mxu0 %v4078_v18  ;;  %v2209_v18 = vld [vmem:[%s5539_s4 + $0xb0] sm:$0xff] }
 0xc0a   : > { %2469 = vmatpush1.bf16.msra.mxu0 %v4077_v19  ;;  %v2210_v19 = vld [vmem:[%s5539_s4 + $0xb8] sm:$0xff] }
 0xcd4   : > { %v1985_v21 = vpop.f32.mrb[28].mxu1 }
 0xcd5   : > { %v4311_v22 = vpop.f32.mrb[29].mxu1 }
 0xcd6   : > { %v1988_v23 = vpop.f32.mrb[30].mxu1  ;;  %v2189_v22 = vld [vmem:[%s5539_s4 + $0x10] sm:$0xff] }
 0xcd7   : > { %v4312_v24 = vpop.f32.mrb[31].mxu1  ;;  %v2197_v23 = vld [vmem:[%s5539_s4 + $0x50] sm:$0xff] }
 0xcd8   : > { %v2033_v25 = vpop.f32.mrb[32].mxu0  ;;  %v2190_v24 = vld [vmem:[%s5539_s4 + $0x18] sm:$0xff] }
 0xcd9   : > { %v4514_v26 = vpack.i.bf16 %v2033_v25, %v1985_v21  ;;  %v4317_v27 = vpop.f32.mrb[33].mxu0  ;;  %v4080_v21 = vcombine.high %v2204_v17, %v2212_v46  ;;  %v5021_v25 = vmov 0   ;;  %v2217_v46 = vld [vmem:[%s5539_s4 + $0xf0] sm:$0xff] }
 0xcda   : > { %v2036_v28 = vpop.f32.mrb[34].mxu0  ;;  %2498 = vmatprep.mubr.bf16.mxu0 %v5021_v25  ;;  %v2198_v27 = vld [vmem:[%s5539_s4 + $0x58] sm:$0xff] }
 0xcdb   : > { %4515 = vrot.lane.b32.xlu0 %v4514_v26, %s5020_s18  ;;  %v4318_v29 = vpop.f32.mrb[35].mxu0  ;;  %v4066_v26 = vcombine.high %v2189_v22, %v2197_v23  ;;  %v4065_v28 = vcombine.low %v2189_v22, %v2197_v23  ;;  %v4068_v30 = vcombine.high %v2190_v24, %v2198_v27  ;;  %v4090_v23 = vcombine.high %v2209_v18, %v2217_v46 }
 0xcdc   : > { %v4067_v29 = vcombine.low %v2190_v24, %v2198_v27  ;;  %v2866_v27 = vld [vmem:[%s5603_s3 + $0x40] sm:$0xff] }
 0xcdd   : > { %2552 = vmatprep.subr.bf16.mxu0 %v4066_v26  ;;  %v2858_v26 = vld [vmem:[%s5603_s3] sm:$0xff] }
 0xd4d   : > { %v4516_v42 = vpop.permute.xlu0 %4515 }
 0xd4e   : > { %v4518_v47 = vunpack.i.h.bf16 %v4516_v42  ;;  %v4517_v48 = vunpack.i.l.bf16 %v4516_v42 }
 0xd50   : > { %v2070_v53 = vsel %vm2068_vm14, %v2067_v50, %v4518_v47  ;;  %v2069_v54 = vsel %vm2068_vm14, %v2066_v49, %v4517_v48 }
 0xd51   : > { %v2071_v55 = vpack.c.bf16 %v2070_v53, %v2069_v54  ;;  %v4060_v53 = vld [vmem:[%s6312_s30] ss:$0 sm:$0xff] }
 0xd53   : > { %4324 = vmatmul.mubr.msk.bf16.vlgmr.msra.gmra.mrb[32].mxu1 %vm1086_vm10, %v2071_v55  ;;  %v2205_v55 = vld [vmem:[%s5539_s4 + $0x90] sm:$0xff] }
 0xd54   : > { %2510 = vmatpush1.bf16.msra.mxu1 %v4063_v13  ;;  %2541 = vmatprep.mubr.bf16.mxu1 %v5021_v25  ;;  %v2202_v13 = vld [vmem:[%s5539_s4 + $0x78] sm:$0xff] }
 0xd55   : > { %2511 = vmatprep.subr.bf16.mxu1 %v4080_v21  ;;  %v4076_v17 = vcombine.high %v2194_v12, %v2202_v13  ;;  %v4073_v21 = vcombine.low %v2193_v10, %v2201_v11  ;;  %v4075_v22 = vcombine.low %v2194_v12, %v2202_v13 }
 0xd58   : > { %2512 = vmatpush1.bf16.msra.mxu1 %v4079_v20  ;;  %v2218_v20 = vld [vmem:[%s5539_s4 + $0xf8] sm:$0xff] }
 0xd59   : > { %2595 = vmatprep.subr.bf16.mxu1 %v4068_v30  ;;  %v4092_v24 = vcombine.high %v2210_v19, %v2218_v20  ;;  %v4089_v30 = vcombine.low %v2209_v18, %v2217_v46 }
 0xe26   : > { %v2132_v41 = vpop.f32.mrb[32].mxu1 }
 0xe27   : > { %v2133_v57 = vadd.f32 %v4055_v56, %v2132_v41  ;;  %v4325_v58 = vpop.f32.mrb[33].mxu1  ;;  %v2206_v41 = vld [vmem:[%s5539_s4 + $0x98] sm:$0xff] }
 0xe28   : > { %v2135_v37 = vpop.f32.mrb[34].mxu1 }
 0xe29   : > { %v2136_v60 = vadd.f32 %v4055_v56, %v2135_v37  ;;  %v4326_v61 = vpop.f32.mrb[35].mxu1  ;;  %v2139_v62 = vadd.f32 %v2133_v57, %v5618_v35  ;;  %v2213_v56 = vld [vmem:[%s5539_s4 + $0xd0] sm:$0xff]  ;;  %v2214_v57 = vld [vmem:[%s5539_s4 + $0xd8] sm:$0xff] }
 0xe2a   : > { %v4082_v61 = vcombine.high %v2205_v55, %v2213_v56 }
 0xe2b   : > { %v2143_v63 = vsel %vm1086_vm10, %v2139_v62, 0.0  ;;  %v2140_v0 = vadd.f32 %v2136_v60, %v5620_v36 }
 0xe2c   : > { %2144 = vadd.xlane.f32.xlu1 %v2143_v63  ;;  %v2191_v63 = vld [vmem:[%s5539_s4 + $0x20] sm:$0xff] }
 0xe2d   : > { %v2146_v52 = vsel %vm1086_vm10, %v2140_v0, 0.0 }
 0xe2e   : > { %2147 = vadd.xlane.f32.xlu0 %v2146_v52  ;;  %v2192_v52 = vld [vmem:[%s5539_s4 + $0x28] sm:$0xff] }
 0xeb9   : > { %v2145_v3 = vpop.xlane.xlu1 %2144 }
 0xeba   : > { %v2150_v4 = vmul.f32 0.03125, %v2145_v3  ;;  %v2200_v3 = vld [vmem:[%s5539_s4 + $0x68] sm:$0xff] }
 0xebb   : > { %v2148_v5 = vpop.xlane.xlu0 %2147  ;;  %v4071_v31 = vcombine.low %v2192_v52, %v2200_v3 }
 0xebc   : > { %v2152_v6 = vsub.f32 %v2139_v62, %v2150_v4  ;;  %v2151_v59 = vmul.f32 0.03125, %v2148_v5  ;;  %v4084_v62 = vcombine.high %v2206_v41, %v2214_v57  ;;  %v4081_v4 = vcombine.low %v2205_v55, %v2213_v56  ;;  %v5893_v55 = vld [vmem:[%s5603_s3 + $0x18] sm:$0xff] }
 0xebd   : > { %v4083_v5 = vcombine.low %v2206_v41, %v2214_v57  ;;  %v5898_v41 = vld [vmem:[%s5603_s3 + $0x58] sm:$0xff] }
 0xebe   : > { %v2153_v7 = vsub.f32 %v2140_v0, %v2151_v59  ;;  %v2154_v9 = vmul.f32 %v2152_v6, %v2152_v6  ;;  %v2199_v0 = vld [vmem:[%s5539_s4 + $0x60] sm:$0xff]  ;;  %v4072_v59 = vcombine.high %v2192_v52, %v2200_v3  ;;  %v2237_v52 = vsub.s32 3, %v5546_v1 }
 0xec0   : > { %v2156_v35 = vsel %vm1086_vm10, %v2154_v9, 0.0  ;;  %v2155_v43 = vmul.f32 %v2153_v7, %v2153_v7  ;;  %v2215_v9 = vld [vmem:[%s5539_s4 + $0xe0] sm:$0xff] }
 0xec1   : > { %2157 = vadd.xlane.f32.xlu0 %v2156_v35  ;;  %v2208_v35 = vld [vmem:[%s5539_s4 + $0xa8] sm:$0xff] }
 0xec2   : > { %v2159_v36 = vsel %vm1086_vm10, %v2155_v43, 0.0  ;;  %v2216_v43 = vld [vmem:[%s5539_s4 + $0xe8] sm:$0xff] }
 0xec3   : > { %2160 = vadd.xlane.f32.xlu1 %v2159_v36  ;;  %v4069_v36 = vcombine.low %v2191_v63, %v2199_v0  ;;  %v4088_v39 = vcombine.high %v2208_v35, %v2216_v43  ;;  %v4087_v15 = vcombine.low %v2208_v35, %v2216_v43  ;;  %v2245_v43 = vsub.s32 5, %v5546_v1 }
 0xf4e   : > { %v2158_v32 = vpop.xlane.xlu0 %2157 }
 0xf4f   : > { %v2162_v33 = vmul.f32 0.03125, %v2158_v32  ;;  %v4091_v32 = vcombine.low %v2210_v19, %v2218_v20 }
 0xf50   : > { %v2161_v34 = vpop.xlane.xlu1 %2160 }
 0xf51   : > { %v2164_v40 = vadd.f32 1e-05, %v2162_v33  ;;  %v2163_v8 = vmul.f32 0.03125, %v2161_v34  ;;  %v4103_v33 = vcombine.high %v2858_v26, %v2866_v27 }
 0xf53   : > { %4555 = vrsqrt.f32 %v2164_v40  ;;  %v2165_v42 = vadd.f32 1e-05, %v2163_v8  ;;  %v4102_v40 = vcombine.low %v2858_v26, %v2866_v27 }
 0xf55   : > { %4557 = vrsqrt.f32 %v2165_v42  ;;  %v2874_v42 = vld [vmem:[%s5603_s3 + $0x80] sm:$0xff] }
 0xf5d   : > { %v4556_v44 = vpop.eup %4555 }
 0xf5e   : > { %v2168_v47 = vmul.f32 %v4556_v44, %v2152_v6  ;;  %v4070_v6 = vcombine.high %v2191_v63, %v2199_v0  ;;  %v2875_v44 = vld [vmem:[%s5603_s3 + $0x88] sm:$0xff]  ;;  %v2219_v63 = vld [vmem:[%s5570_s28] sm:$0xff]  ;;  %v2229_v0 = vsub.s32 1, %v5546_v1 }
 0xf5f   : > { %v4558_v48 = vpop.eup %4557  ;;  %v2226_v3 = vrot.slane %v2219_v63, %v5653_v51 }
 0xf60   : > { %v2176_v49 = vmul.f32 %v4059_v45, %v2168_v47  ;;  %v2169_v50 = vmul.f32 %v4558_v48, %v2153_v7  ;;  %v2207_v7 = vld [vmem:[%s5539_s4 + $0xa0] sm:$0xff]  ;;  %v2883_v47 = vld [vmem:[%s5603_s3 + $0xc8] sm:$0xff] }
 0xf61   : > { %v4086_v38 = vcombine.high %v2207_v7, %v2215_v9  ;;  %v4085_v14 = vcombine.low %v2207_v7, %v2215_v9  ;;  %v2249_v7 = vsub.s32 6, %v5546_v1 }
 0xf62   : > { %v2177_v54 = vmul.f32 %v4059_v45, %v2169_v50  ;;  %v5832_v58 = vadd.f32 %v4060_v53, %v2176_v49  ;;  %v4120_v49 = vcombine.low %v2875_v44, %v2883_v47  ;;  %v4121_v50 = vcombine.high %v2875_v44, %v2883_v47 }
 0xf63   : > { %v2250_v19 = vrot.slane %v2219_v63, %v2249_v7 }
 0xf64   : > { %v5834_v37 = vadd.f32 %v4060_v53, %v2177_v54  ;;  %v5887_v53 = vld [vmem:[%s5603_s3 + $0x10] sm:$0xff] }
 0xf65   : > { %v5890_v54 = vld [vmem:[%s5603_s3 + $0x50] sm:$0xff] }
 0xf66   : > { %v5838_v60 = vpack.c.bf16 %v5834_v37, %v5832_v58  ;;  %v4107_v56 = vcombine.high %v5887_v53, %v5890_v54  ;;  %v4106_v57 = vcombine.low %v5887_v53, %v5890_v54  ;;  %v5969_v53 = vld [vmem:[%s5603_s3 + $0x60] sm:$0xff] }
 0xf68   : > { %4093 = vmatmul.mubr.msk.bf16.vlgmr.msra.gmra.mrb[36].mxu0 %vm1086_vm10, %v5838_v60  ;;  %4094 = vmatmul.mubr.msk.bf16.vlgmr.msra.gmra.mrb[36].mxu1 %vm1086_vm10, %v5838_v60 }
 0xf69   : > { %2553 = vmatpush1.bf16.msra.mxu0 %v4065_v28  ;;  %2596 = vmatpush1.bf16.msra.mxu1 %v4067_v29  ;;  %v2859_v28 = vld [vmem:[%s5603_s3 + $0x8] sm:$0xff] }
 0xf6a   : > { %2554 = vmatprep.subr.bf16.mxu0 %v4082_v61  ;;  %2597 = vmatprep.subr.bf16.mxu1 %v4084_v62  ;;  %v2867_v29 = vld [vmem:[%s5603_s3 + $0x48] sm:$0xff]  ;;  %v4109_v61 = vcombine.high %v5893_v55, %v5898_v41  ;;  %v2233_v62 = vsub.s32 2, %v5546_v1 }
 0xf6b   : > { %2584 = vmatprep.mubr.bf16.mxu0 %v5021_v25  ;;  %2627 = vmatprep.mubr.bf16.mxu1 %v5021_v25  ;;  %v4105_v34 = vcombine.high %v2859_v28, %v2867_v29  ;;  %v4104_v8 = vcombine.low %v2859_v28, %v2867_v29 }
 0xf6d   : > { %2555 = vmatpush1.bf16.msra.mxu0 %v4081_v4  ;;  %2598 = vmatpush1.bf16.msra.mxu1 %v4083_v5  ;;  %v2234_v4 = vrot.slane %v2219_v63, %v2233_v62  ;;  %v2230_v5 = vrot.slane %v2219_v63, %v2229_v0 }
 0xf6e   : > { %2638 = vmatprep.subr.bf16.mxu0 %v4070_v6  ;;  %2681 = vmatprep.subr.bf16.mxu1 %v4072_v59  ;;  %v2238_v6 = vrot.slane %v2219_v63, %v2237_v52  ;;  %v2241_v59 = vsub.s32 4, %v5546_v1 }
 0xf70   : > { %4095 = vmatmul.mubr.msk.bf16.vlgmr.msra.gmra.mrb[40].mxu0 %vm1086_vm10, %v5838_v60  ;;  %4096 = vmatmul.mubr.msk.bf16.vlgmr.msra.gmra.mrb[40].mxu1 %vm1086_vm10, %v5838_v60  ;;  %v2242_v46 = vrot.slane %v2219_v63, %v2241_v59 }
 0xf71   : > { %2639 = vmatpush1.bf16.msra.mxu0 %v4069_v36  ;;  %2682 = vmatpush1.bf16.msra.mxu1 %v4071_v31  ;;  %v2253_v36 = vsub.s32 7, %v5546_v1 }
 0xf72   : > { %2640 = vmatprep.subr.bf16.mxu0 %v4086_v38  ;;  %2683 = vmatprep.subr.bf16.mxu1 %v4088_v39 }
 0xf73   : > { %2670 = vmatprep.mubr.bf16.mxu0 %v5021_v25  ;;  %2713 = vmatprep.mubr.bf16.mxu1 %v5021_v25 }
 0xf75   : > { %2641 = vmatpush1.bf16.msra.mxu0 %v4085_v14  ;;  %2684 = vmatpush1.bf16.msra.mxu1 %v4087_v15 }
 0xf76   : > { %2724 = vmatprep.subr.bf16.mxu0 %v4074_v16  ;;  %2767 = vmatprep.subr.bf16.mxu1 %v4076_v17 }
 0xf78   : > { %4097 = vmatmul.mubr.msk.bf16.vlgmr.msra.gmra.mrb[44].mxu0 %vm1086_vm10, %v5838_v60  ;;  %4098 = vmatmul.mubr.msk.bf16.vlgmr.msra.gmra.mrb[44].mxu1 %vm1086_vm10, %v5838_v60 }
 0xf79   : > { %2725 = vmatpush1.bf16.msra.mxu0 %v4073_v21  ;;  %2768 = vmatpush1.bf16.msra.mxu1 %v4075_v22  ;;  %v2246_v22 = vrot.slane %v2219_v63, %v2245_v43 }
 0xf7a   : > { %2726 = vmatprep.subr.bf16.mxu0 %v4090_v23  ;;  %2769 = vmatprep.subr.bf16.mxu1 %v4092_v24  ;;  %v2254_v23 = vrot.slane %v2219_v63, %v2253_v36  ;;  %v5930_v24 = vld [vmem:[%s5570_s28 + $0x8] sm:$0xff] }
 0xf7b   : > { %2756 = vmatprep.mubr.bf16.mxu0 %v5021_v25  ;;  %2799 = vmatprep.mubr.bf16.mxu1 %v5021_v25  ;;  %v2882_v25 = vld [vmem:[%s5603_s3 + $0xc0] sm:$0xff] }
 0xf7c   : > { %v4119_v45 = vcombine.high %v2874_v42, %v2882_v25  ;;  %v4118_v48 = vcombine.low %v2874_v42, %v2882_v25  ;;  %v5939_v42 = vld [vmem:[%s5603_s3 + $0x98] sm:$0xff] }
 0xf7d   : > { %2727 = vmatpush1.bf16.msra.mxu0 %v4089_v30  ;;  %2770 = vmatpush1.bf16.msra.mxu1 %v4091_v32  ;;  %v5933_v30 = vld [vmem:[%s5603_s3 + $0x90] sm:$0xff]  ;;  %v5942_v25 = vld [vmem:[%s5603_s3 + $0xd8] sm:$0xff] }
 0xf7e   : > { %3057 = vmatprep.subr.bf16.mxu0 %v4103_v33  ;;  %3098 = vmatprep.subr.bf16.mxu1 %v4105_v34  ;;  %v5936_v32 = vld [vmem:[%s5603_s3 + $0xd0] sm:$0xff] }
 0xf80   : > { %4099 = vmatmul.mubr.msk.bf16.vlgmr.msra.gmra.mrb[48].mxu0 %vm1086_vm10, %v5838_v60  ;;  %4100 = vmatmul.mubr.msk.bf16.vlgmr.msra.gmra.mrb[48].mxu1 %vm1086_vm10, %v5838_v60  ;;  %v4108_v60 = vcombine.low %v5893_v55, %v5898_v41  ;;  %v5972_v41 = vld [vmem:[%s5603_s3 + $0x28] sm:$0xff] }
 0xf86   : > { %3058 = vmatpush1.bf16.xpose.msra.mxu0 %v4102_v40  ;;  %3099 = vmatpush1.bf16.xpose.msra.mxu1 %v4104_v8 }
 0xf87   : > { %3059 = vmatprep.subr.bf16.mxu0 %v4119_v45  ;;  %3100 = vmatprep.subr.bf16.mxu1 %v4121_v50 }
 0xf8e   : > { %3060 = vmatpush1.bf16.xpose.msra.mxu0 %v4118_v48  ;;  %3101 = vmatpush1.bf16.xpose.msra.mxu1 %v4120_v49 }
 0xf8f   : > { %3139 = vmatprep.subr.bf16.mxu0 %v4107_v56  ;;  %3180 = vmatprep.subr.bf16.mxu1 %v4109_v61  ;;  %v2258_v56 = vrot.slane %v5930_v24, %v5653_v51  ;;  %v2266_v51 = vrot.slane %v5930_v24, %v2233_v62  ;;  %v2270_v62 = vrot.slane %v5930_v24, %v2237_v52 }
0x103b   : > { %v2500_v9 = vpop.f32.mrb[36].mxu0  ;;  %v2543_v35 = vpop.f32.mrb[36].mxu1 }
0x103c   : > { %v2501_v31 = vadd.f32 %v2500_v9, %v2226_v3  ;;  %v2544_v38 = vadd.f32 %v2543_v35, %v2234_v4  ;;  %v2502_v39 = vpop.f32.mrb[37].mxu0  ;;  %v2545_v10 = vpop.f32.mrb[37].mxu1 }
0x103d   : > { %v2503_v11 = vadd.f32 %v2502_v39, %v2230_v5  ;;  %v2546_v12 = vadd.f32 %v2545_v10, %v2238_v6  ;;  %v2504_v13 = vpop.f32.mrb[38].mxu0  ;;  %v2547_v14 = vpop.f32.mrb[38].mxu1 }
0x103e   : > { %v2505_v15 = vadd.f32 %v2504_v13, %v2226_v3  ;;  %v2548_v16 = vadd.f32 %v2547_v14, %v2234_v4  ;;  %v2506_v17 = vpop.f32.mrb[39].mxu0  ;;  %v2549_v18 = vpop.f32.mrb[39].mxu1  ;;  %v2810_v26 = vmax.f32 %v2501_v31, 0.0  ;;  %v2812_v27 = vmax.f32 %v2544_v38, 0.0 }
0x103f   : > { %v2507_v20 = vadd.f32 %v2506_v17, %v2230_v5  ;;  %v2550_v21 = vadd.f32 %v2549_v18, %v2238_v6  ;;  %v2811_v33 = vmax.f32 %v2503_v11, 0.0  ;;  %v2813_v34 = vmax.f32 %v2546_v12, 0.0 }
0x1040   : > { %v2826_v28 = vmax.f32 %v2505_v15, 0.0  ;;  %v2828_v29 = vmax.f32 %v2548_v16, 0.0  ;;  %v4123_v5 = vcombine.high %v5933_v30, %v5936_v32  ;;  %v4125_v6 = vcombine.high %v5939_v42, %v5942_v25 }
0x1041   : > { %v2827_v40 = vmax.f32 %v2507_v20, 0.0  ;;  %v2829_v8 = vmax.f32 %v2550_v21, 0.0  ;;  %v2262_v13 = vrot.slane %v5930_v24, %v2229_v0 }
0x1042   : > { %v2842_v44 = vpack.c.bf16 %v2826_v28, %v2810_v26  ;;  %v2844_v45 = vpack.c.bf16 %v2828_v29, %v2812_v27  ;;  %v4122_v27 = vcombine.low %v5933_v30, %v5936_v32  ;;  %v4124_v28 = vcombine.low %v5939_v42, %v5942_v25 }
0x1043   : > { %v2843_v47 = vpack.c.bf16 %v2827_v40, %v2811_v33  ;;  %v2845_v48 = vpack.c.bf16 %v2829_v8, %v2813_v34  ;;  %v2586_v49 = vpop.f32.mrb[40].mxu0  ;;  %v2629_v50 = vpop.f32.mrb[40].mxu1  ;;  %v2274_v30 = vrot.slane %v5930_v24, %v2241_v59  ;;  %v2286_v59 = vrot.slane %v5930_v24, %v2253_v36 }
0x1044   : > { %v2587_v61 = vadd.f32 %v2586_v49, %v2242_v46  ;;  %v2630_v63 = vadd.f32 %v2629_v50, %v2250_v19  ;;  %v2588_v3 = vpop.f32.mrb[41].mxu0  ;;  %v2631_v4 = vpop.f32.mrb[41].mxu1 }
0x1045   : > { %v2589_v9 = vadd.f32 %v2588_v3, %v2246_v22  ;;  %v2632_v35 = vadd.f32 %v2631_v4, %v2254_v23  ;;  %v2590_v31 = vpop.f32.mrb[42].mxu0  ;;  %v2633_v38 = vpop.f32.mrb[42].mxu1  ;;  %3089 = vmatprep.mubr.bf16.mxu0 %v2843_v47  ;;  %3130 = vmatprep.mubr.bf16.mxu1 %v2845_v48 }
0x1046   : > { %v2591_v39 = vadd.f32 %v2590_v31, %v2242_v46  ;;  %v2634_v10 = vadd.f32 %v2633_v38, %v2250_v19  ;;  %v2592_v11 = vpop.f32.mrb[43].mxu0  ;;  %v2635_v12 = vpop.f32.mrb[43].mxu1  ;;  %3090 = vmatmul.mubr.bf16.vlgmr.msra.gmra.mrb[52].mxu0 %v2842_v44  ;;  %3131 = vmatmul.mubr.bf16.vlgmr.msra.gmra.mrb[52].mxu1 %v2844_v45  ;;  %v2814_v16 = vmax.f32 %v2587_v61, 0.0  ;;  %v2816_v17 = vmax.f32 %v2630_v63, 0.0  ;;  %v5966_v46 = vld [vmem:[%s5603_s3 + $0x20] sm:$0xff] }
0x1047   : > { %v2593_v14 = vadd.f32 %v2592_v11, %v2246_v22  ;;  %v2636_v15 = vadd.f32 %v2635_v12, %v2254_v23  ;;  %3140 = vmatpush1.bf16.xpose.msra.mxu0 %v4106_v57  ;;  %3181 = vmatpush1.bf16.xpose.msra.mxu1 %v4108_v60  ;;  %v2815_v54 = vmax.f32 %v2589_v9, 0.0  ;;  %v2817_v57 = vmax.f32 %v2632_v35, 0.0  ;;  %v5975_v60 = vld [vmem:[%s5603_s3 + $0x68] sm:$0xff]  ;;  %v2878_v38 = vld [vmem:[%s5603_s3 + $0xa0] sm:$0xff] }
0x1048   : > { %v2830_v18 = vmax.f32 %v2591_v39, 0.0  ;;  %v2832_v0 = vmax.f32 %v2634_v10, 0.0  ;;  %3141 = vmatprep.subr.bf16.mxu0 %v4123_v5  ;;  %3182 = vmatprep.subr.bf16.mxu1 %v4125_v6  ;;  %v4111_v8 = vcombine.high %v5966_v46, %v5969_v53  ;;  %v4113_v44 = vcombine.high %v5972_v41, %v5975_v60  ;;  %v2886_v10 = vld [vmem:[%s5603_s3 + $0xe0] sm:$0xff]  ;;  %v2879_v11 = vld [vmem:[%s5603_s3 + $0xa8] sm:$0xff] }
0x1049   : > { %v2831_v19 = vmax.f32 %v2593_v14, 0.0  ;;  %v2833_v55 = vmax.f32 %v2636_v15, 0.0  ;;  %v2282_v61 = vrot.slane %v5930_v24, %v2249_v7  ;;  %v2278_v63 = vrot.slane %v5930_v24, %v2245_v43  ;;  %v2887_v12 = vld [vmem:[%s5603_s3 + $0xe8] sm:$0xff] }
0x104a   : > { %v5977_v20 = vpack.c.bf16 %v2830_v18, %v2814_v16  ;;  %v5979_v52 = vpack.c.bf16 %v2832_v0, %v2816_v17  ;;  %v4110_v15 = vcombine.low %v5966_v46, %v5969_v53  ;;  %v4112_v0 = vcombine.low %v5972_v41, %v5975_v60 }
0x104b   : > { %v2847_v21 = vpack.c.bf16 %v2831_v19, %v2815_v54  ;;  %v2849_v22 = vpack.c.bf16 %v2833_v55, %v2817_v57  ;;  %v2672_v23 = vpop.f32.mrb[44].mxu0  ;;  %v2715_v26 = vpop.f32.mrb[44].mxu1 }
0x104c   : > { %v2673_v29 = vadd.f32 %v2672_v23, %v2258_v56  ;;  %v2716_v33 = vadd.f32 %v2715_v26, %v2266_v51  ;;  %v2674_v34 = vpop.f32.mrb[45].mxu0  ;;  %v2717_v40 = vpop.f32.mrb[45].mxu1 }
0x104d   : > { %v2675_v45 = vadd.f32 %v2674_v34, %v2262_v13  ;;  %v2718_v47 = vadd.f32 %v2717_v40, %v2270_v62  ;;  %v2676_v48 = vpop.f32.mrb[46].mxu0  ;;  %v2719_v49 = vpop.f32.mrb[46].mxu1  ;;  %3171 = vmatprep.mubr.bf16.mxu0 %v2847_v21  ;;  %3212 = vmatprep.mubr.bf16.mxu1 %v2849_v22  ;;  %v4127_v21 = vcombine.high %v2878_v38, %v2886_v10 }
0x104e   : > { %v2677_v32 = vadd.f32 %v2676_v48, %v2258_v56  ;;  %v2720_v42 = vadd.f32 %v2719_v49, %v2266_v51  ;;  %v2678_v25 = vpop.f32.mrb[47].mxu0  ;;  %v2721_v50 = vpop.f32.mrb[47].mxu1  ;;  %v2818_v56 = vmax.f32 %v2673_v29, 0.0  ;;  %v2820_v5 = vmax.f32 %v2716_v33, 0.0  ;;  %v2865_v48 = vld [vmem:[%s5603_s3 + $0x38] sm:$0xff] }
0x104f   : > { %v2679_v3 = vadd.f32 %v2678_v25, %v2262_v13  ;;  %v2722_v4 = vadd.f32 %v2721_v50, %v2270_v62  ;;  %3142 = vmatpush1.bf16.xpose.msra.mxu0 %v4122_v27  ;;  %3183 = vmatpush1.bf16.xpose.msra.mxu1 %v4124_v28  ;;  %v2819_v9 = vmax.f32 %v2675_v45, 0.0  ;;  %v2821_v43 = vmax.f32 %v2718_v47, 0.0  ;;  %v2873_v49 = vld [vmem:[%s5603_s3 + $0x78] sm:$0xff] }
0x1050   : > { %v2834_v6 = vmax.f32 %v2677_v32, 0.0  ;;  %v2836_v7 = vmax.f32 %v2720_v42, 0.0  ;;  %3221 = vmatprep.subr.bf16.mxu0 %v4111_v8  ;;  %3262 = vmatprep.subr.bf16.mxu1 %v4113_v44  ;;  %v4129_v22 = vcombine.high %v2879_v11, %v2887_v12  ;;  %v2864_v8 = vld [vmem:[%s5603_s3 + $0x30] sm:$0xff]  ;;  %v4126_v42 = vcombine.low %v2878_v38, %v2886_v10 }
0x1051   : > { %v2835_v35 = vmax.f32 %v2679_v3, 0.0  ;;  %v2837_v31 = vmax.f32 %v2722_v4, 0.0  ;;  %v2872_v44 = vld [vmem:[%s5603_s3 + $0x70] sm:$0xff]  ;;  %v4128_v25 = vcombine.low %v2879_v11, %v2887_v12 }
0x1052   : > { %v6002_v51 = vpack.c.bf16 %v2834_v6, %v2818_v56  ;;  %v6004_v39 = vpack.c.bf16 %v2836_v7, %v2820_v5  ;;  %v4115_v50 = vcombine.high %v2864_v8, %v2872_v44  ;;  %v2888_v3 = vld [vmem:[%s5603_s3 + $0xf0] sm:$0xff]  ;;  %v4114_v4 = vcombine.low %v2864_v8, %v2872_v44  ;;  %v2889_v56 = vld [vmem:[%s5603_s3 + $0xf8] sm:$0xff] }
0x1053   : > { %v2851_v36 = vpack.c.bf16 %v2835_v35, %v2819_v9  ;;  %v2853_v24 = vpack.c.bf16 %v2837_v31, %v2821_v43  ;;  %v2758_v13 = vpop.f32.mrb[48].mxu0  ;;  %v2801_v14 = vpop.f32.mrb[48].mxu1  ;;  %v4116_v5 = vcombine.low %v2865_v48, %v2873_v49  ;;  %v4101_v35 = vld [vmem:[%s938_s14] ss:$0 sm:$0xff] }
0x1054   : > { %v2759_v62 = vadd.f32 %v2758_v13, %v2274_v30  ;;  %v2802_v16 = vadd.f32 %v2801_v14, %v2282_v61  ;;  %v2760_v17 = vpop.f32.mrb[49].mxu0  ;;  %v2803_v18 = vpop.f32.mrb[49].mxu1 }
0x1055   : > { %v2761_v54 = vadd.f32 %v2760_v17, %v2278_v63  ;;  %v2804_v57 = vadd.f32 %v2803_v18, %v2286_v59  ;;  %v2762_v19 = vpop.f32.mrb[50].mxu0  ;;  %v2805_v55 = vpop.f32.mrb[50].mxu1 }
0x1056   : > { %v2763_v23 = vadd.f32 %v2762_v19, %v2274_v30  ;;  %v2806_v26 = vadd.f32 %v2805_v55, %v2282_v61  ;;  %3172 = vmatmul.mubr.bf16.vlgmr.msra.gmra.mrb[56].mxu0 %v5977_v20  ;;  %3213 = vmatmul.mubr.bf16.vlgmr.msra.gmra.mrb[56].mxu1 %v5979_v52  ;;  %v2764_v46 = vpop.f32.mrb[51].mxu0  ;;  %v2807_v53 = vpop.f32.mrb[51].mxu1  ;;  %v2822_v41 = vmax.f32 %v2759_v62, 0.0  ;;  %v2824_v60 = vmax.f32 %v2802_v16, 0.0 }
0x1057   : > { %v2765_v27 = vadd.f32 %v2764_v46, %v2278_v63  ;;  %v2808_v28 = vadd.f32 %v2807_v53, %v2286_v59  ;;  %3222 = vmatpush1.bf16.xpose.msra.mxu0 %v4110_v15  ;;  %3253 = vmatprep.mubr.bf16.mxu0 %v2851_v36  ;;  %v2823_v34 = vmax.f32 %v2761_v54, 0.0  ;;  %v2825_v20 = vmax.f32 %v2804_v57, 0.0  ;;  %v2880_v63 = vld [vmem:[%s5603_s3 + $0xb0] sm:$0xff]  ;;  %v2881_v59 = vld [vmem:[%s5603_s3 + $0xb8] sm:$0xff] }
0x1058   : > { %v2838_v29 = vmax.f32 %v2763_v23, 0.0  ;;  %v2840_v33 = vmax.f32 %v2806_v26, 0.0  ;;  %3263 = vmatpush1.bf16.xpose.msra.mxu1 %v4112_v0  ;;  %3294 = vmatprep.mubr.bf16.mxu1 %v2853_v24  ;;  %v4117_v61 = vcombine.high %v2865_v48, %v2873_v49  ;;  %v4131_v6 = vcombine.high %v2880_v63, %v2888_v3 }
0x1059   : > { %v2839_v40 = vmax.f32 %v2765_v27, 0.0  ;;  %v2841_v52 = vmax.f32 %v2808_v28, 0.0  ;;  %3223 = vmatprep.subr.bf16.mxu0 %v4127_v21  ;;  %3264 = vmatprep.subr.bf16.mxu1 %v4129_v22  ;;  %v4133_v7 = vcombine.high %v2881_v59, %v2889_v56  ;;  %v4130_v9 = vcombine.low %v2880_v63, %v2888_v3 }
0x105a   : > { %v2854_v45 = vpack.c.bf16 %v2838_v29, %v2822_v41  ;;  %v2856_v47 = vpack.c.bf16 %v2840_v33, %v2824_v60  ;;  %v4132_v43 = vcombine.low %v2881_v59, %v2889_v56 }
0x105b   : > { %v2855_v30 = vpack.c.bf16 %v2839_v40, %v2823_v34  ;;  %v2857_v32 = vpack.c.bf16 %v2841_v52, %v2825_v20 }
0x105f   : > { %3224 = vmatpush1.bf16.xpose.msra.mxu0 %v4126_v42 }
0x1060   : > { %3265 = vmatpush1.bf16.xpose.msra.mxu1 %v4128_v25  ;;  %3303 = vmatprep.subr.bf16.mxu0 %v4115_v50 }
0x1061   : > { %3344 = vmatprep.subr.bf16.mxu1 %v4117_v61 }
0x1066   : > { %3254 = vmatmul.mubr.bf16.vlgmr.msra.gmra.mrb[60].mxu0 %v6002_v51 }
0x1067   : > { %3295 = vmatmul.mubr.bf16.vlgmr.msra.gmra.mrb[60].mxu1 %v6004_v39  ;;  %3304 = vmatpush1.bf16.xpose.msra.mxu0 %v4114_v4 }
0x1068   : > { %3335 = vmatprep.mubr.bf16.mxu0 %v2855_v30  ;;  %3345 = vmatpush1.bf16.xpose.msra.mxu1 %v4116_v5 }
0x1069   : > { %3376 = vmatprep.mubr.bf16.mxu1 %v2857_v32  ;;  %3305 = vmatprep.subr.bf16.mxu0 %v4131_v6 }
0x106a   : > { %3346 = vmatprep.subr.bf16.mxu1 %v4133_v7 }
0x106f   : > { %3306 = vmatpush1.bf16.xpose.msra.mxu0 %v4130_v9 }
0x1070   : > { %3347 = vmatpush1.bf16.xpose.msra.mxu1 %v4132_v43 }
0x1076   : > { %3336 = vmatmul.mubr.bf16.vlgmr.msra.gmra.mrb[64].mxu0 %v2854_v45 }
0x1077   : > { %3377 = vmatmul.mubr.bf16.vlgmr.msra.gmra.mrb[64].mxu1 %v2856_v47 }
0x1119   : > { %v3091_v31 = vpop.f32.mrb[52].mxu0  ;;  %v3132_v38 = vpop.f32.mrb[52].mxu1 }
0x111a   : > { %v3092_v51 = vadd.f32 %v4101_v35, %v3091_v31  ;;  %v3093_v39 = vpop.f32.mrb[53].mxu0  ;;  %v3134_v10 = vpop.f32.mrb[53].mxu1 }
0x111b   : > { %v3094_v11 = vpop.f32.mrb[54].mxu0  ;;  %v3135_v12 = vpop.f32.mrb[54].mxu1 }
0x111c   : > { %v3133_v36 = vadd.f32 %v3132_v38, %v3092_v51  ;;  %v3095_v24 = vadd.f32 %v4101_v35, %v3094_v11  ;;  %v3096_v13 = vpop.f32.mrb[55].mxu0  ;;  %v3137_v14 = vpop.f32.mrb[55].mxu1 }
0x111d   : > { %v4135_v14 = vld [vmem:[%s944_s15] ss:$0 sm:$0xff] }
0x111e   : > { %v3136_v15 = vadd.f32 %v3135_v12, %v3095_v24 }
0x1129   : > { %v3173_v62 = vpop.f32.mrb[56].mxu0  ;;  %v3214_v16 = vpop.f32.mrb[56].mxu1 }
0x112a   : > { %v3174_v17 = vadd.f32 %v3173_v62, %v3133_v36  ;;  %v3175_v18 = vpop.f32.mrb[57].mxu0  ;;  %v3216_v0 = vpop.f32.mrb[57].mxu1  ;;  %v4134_v36 = vld [vmem:[%s941_s25] ss:$0 sm:$0xff] }
0x112b   : > { %v3176_v54 = vpop.f32.mrb[58].mxu0  ;;  %v3217_v57 = vpop.f32.mrb[58].mxu1 }
0x112c   : > { %v3215_v19 = vadd.f32 %v3214_v16, %v3174_v17  ;;  %v3177_v55 = vadd.f32 %v3176_v54, %v3136_v15  ;;  %v3178_v21 = vpop.f32.mrb[59].mxu0  ;;  %v3219_v22 = vpop.f32.mrb[59].mxu1 }
0x112e   : > { %v3218_v23 = vadd.f32 %v3217_v57, %v3177_v55 }
0x1139   : > { %v3255_v26 = vpop.f32.mrb[60].mxu0 }
0x113a   : > { %v3256_v46 = vadd.f32 %v3255_v26, %v3215_v19  ;;  %v3296_v53 = vpop.f32.mrb[60].mxu1  ;;  %v3257_v27 = vpop.f32.mrb[61].mxu0 }
0x113b   : > { %v3298_v28 = vpop.f32.mrb[61].mxu1  ;;  %v3258_v41 = vpop.f32.mrb[62].mxu0 }
0x113c   : > { %v3297_v60 = vadd.f32 %v3296_v53, %v3256_v46  ;;  %v3259_v29 = vadd.f32 %v3258_v41, %v3218_v23  ;;  %v3299_v33 = vpop.f32.mrb[62].mxu1  ;;  %v3260_v34 = vpop.f32.mrb[63].mxu0 }
0x113d   : > { %v3301_v20 = vpop.f32.mrb[63].mxu1 }
0x113e   : > { %v3300_v40 = vadd.f32 %v3299_v33, %v3259_v29 }
0x1149   : > { %v3337_v52 = vpop.f32.mrb[64].mxu0 }
0x114a   : > { %v3338_v8 = vadd.f32 %v3337_v52, %v3297_v60  ;;  %v3378_v44 = vpop.f32.mrb[64].mxu1  ;;  %v3339_v45 = vpop.f32.mrb[65].mxu0 }
0x114b   : > { %v3380_v47 = vpop.f32.mrb[65].mxu1  ;;  %v3340_v48 = vpop.f32.mrb[66].mxu0 }
0x114c   : > { %v3379_v49 = vadd.f32 %v3378_v44, %v3338_v8  ;;  %v3341_v30 = vadd.f32 %v3340_v48, %v3300_v40  ;;  %v3381_v32 = vpop.f32.mrb[66].mxu1  ;;  %v3342_v42 = vpop.f32.mrb[67].mxu0 }
0x114d   : > { %v3383_v25 = vpop.f32.mrb[67].mxu1 }
0x114e   : > { %v3382_v50 = vadd.f32 %v3381_v32, %v3341_v30  ;;  %v3385_v61 = vadd.f32 %v3379_v49, %v5832_v58 }
0x1150   : > { %v3389_v63 = vsel %vm1086_vm10, %v3385_v61, 0.0  ;;  %v3386_v3 = vadd.f32 %v3382_v50, %v5834_v37 }
0x1151   : > { %3390 = vadd.xlane.f32.xlu0 %v3389_v63 }
0x1152   : > { %v3392_v4 = vsel %vm1086_vm10, %v3386_v3, 0.0 }
0x1153   : > { %3393 = vadd.xlane.f32.xlu1 %v3392_v4 }
0x11de   : > { %v3391_v59 = vpop.xlane.xlu0 %3390 }
0x11df   : > { %v3395_v56 = vmul.f32 0.03125, %v3391_v59 }
0x11e0   : > { %v3394_v5 = vpop.xlane.xlu1 %3393 }
0x11e1   : > { %v3397_v6 = vsub.f32 %v3385_v61, %v3395_v56  ;;  %v3396_v7 = vmul.f32 0.03125, %v3394_v5 }
0x11e3   : > { %v3398_v9 = vsub.f32 %v3386_v3, %v3396_v7  ;;  %v3399_v43 = vmul.f32 %v3397_v6, %v3397_v6 }
0x11e5   : > { %v3401_v35 = vsel %vm1086_vm10, %v3399_v43, 0.0  ;;  %v3400_v31 = vmul.f32 %v3398_v9, %v3398_v9 }
0x11e6   : > { %3402 = vadd.xlane.f32.xlu0 %v3401_v35 }
0x11e7   : > { %v3404_v58 = vsel %vm1086_vm10, %v3400_v31, 0.0 }
0x11e8   : > { %3405 = vadd.xlane.f32.xlu1 %v3404_v58 }
0x1273   : > { %v3403_v37 = vpop.xlane.xlu0 %3402 }
0x1274   : > { %v3407_v38 = vmul.f32 0.03125, %v3403_v37 }
0x1275   : > { %v3406_v51 = vpop.xlane.xlu1 %3405 }
0x1276   : > { %v3409_v39 = vadd.f32 1e-05, %v3407_v38  ;;  %v3408_v10 = vmul.f32 0.03125, %v3406_v51 }
0x1278   : > { %4559 = vrsqrt.f32 %v3409_v39  ;;  %v3410_v11 = vadd.f32 1e-05, %v3408_v10 }
0x127a   : > { %4561 = vrsqrt.f32 %v3410_v11 }
0x1282   : > { %v4560_v12 = vpop.eup %4559 }
0x1283   : > { %v3413_v24 = vmul.f32 %v4560_v12, %v3397_v6  ;;  %3433 = sbr.rel (%p6317_p7) target bundleno = 4748 (0x128c), region = 136 }
0x1284   : > { %v4562_v13 = vpop.eup %4561 }
0x1285   : > { %v3421_v15 = vmul.f32 %v4134_v36, %v3413_v24  ;;  %v3414_v62 = vmul.f32 %v4562_v13, %v3398_v9 }
0x1287   : > { %v6046_v16 = vadd.f32 %v4135_v14, %v3421_v15  ;;  %v3422_v17 = vmul.f32 %v4134_v36, %v3414_v62 }
0x1289   : > { %v6048_v18 = vadd.f32 %v4135_v14, %v3422_v17  ;;  %3434 = vst.msk [vmem:[#allocation2] sm:$0xff] (!%p6317_p7), %vm1086_vm10, %v6046_v16 }
0x128b   : > { %3435 = vst.msk [vmem:[#allocation2 + $0x8] sm:$0xff] %vm1086_vm10, %v6048_v18 }
0x128c PF: > { %s6318_s25 = sld [smem:[#allocation34_spill]] }
0x1292   : > { %p4137_p11 = scmp.ne.s32.totalorder %s6318_s25, 1 }
0x1293   : > { %s3442_s24 = sld [smem:[#allocation4]] (!%p4137_p11)  ;;  %s4138_s15 = sld [smem:[#allocation4 + $0x1]] (!%p4137_p11)  ;;  %vm3447_vm15 = vcmp.ge.s32.totalorder (!%p4137_p11), %v5551_v2, 8  ;;  %vm3455_vm6 = vcmask (!%p4137_p11), 123904   ;;  %v5022_v57 = vmov (!%p4137_p11), 0.0   ;;  %v4350_v22 = vpack.c.bf16 (!%p4137_p11), %v6048_v18, %v6046_v16 }
0x1294   : > { %3439 = sbr.rel (%p4137_p11) target bundleno = 5137 (0x1411), region = 140  ;;  %vm3448_vm2 = vmand (!%p4137_p11), %vm956_vm1, %vm3447_vm15  ;;  %v5023_v23 = vmov (!%p4137_p11), 0.0|0.0   ;;  %vm5024_vm8 = vmmov (!%p4137_p11), 0   ;;  %vm3535_vm9 = vcmask (!%p4137_p11), 254976  }
0x1295   : > { %4349 = vmatprep.subr.bf16.mxu0 (!%p4137_p11), %v5023_v23  ;;  %4331 = vmatprep.mubr.msk.f32.mxu0 (!%p4137_p11), %vm5024_vm8, %v5022_v57 }
0x1296   : > { %4351 = vmatpush3.bf16.msra.mxu0 (!%p4137_p11), %v4350_v22 }
0x1299   : > { %v3443_v0 = vstv (!%p4137_p11), %s3442_s24  ;;  %s3450_s19 = sadd.s32 (!%p4137_p11), 8, %s4138_s15 }
0x129a   : > { %vm3444_vm3 = vcmp.lt.s32.totalorder (!%p4137_p11), %v5551_v2, %v3443_v0  ;;  %v3451_v54 = vstv (!%p4137_p11), %s3450_s19 }
0x129b   : > { %vm3445_vm4 = vmand %vm950_vm0, %vm3444_vm3  ;;  %vm3452_vm5 = vcmp.lt.s32.totalorder %v5551_v2, %v3451_v54 }
0x129c   : > { %v3446_v19 = vsel %vm3445_vm4, 1.0, %v5022_v57  ;;  %vm3453_vm7 = vmand %vm3448_vm2, %vm3452_vm5 }
0x129d   : > { %v3454_v55 = vsel %vm3453_vm7, 1.0, %v3446_v19 }
0x129e   : > { %v3456_v21 = vsel %vm3455_vm6, %v3454_v55, 0.0 }
0x129f   : > { %3457 = vadd.xlane.f32.xlu0 %v3456_v21 }
0x132c   : > { %v3458_v26 = vpop.xlane.xlu0 %3457 }
0x132d   : > { %v3459_v46 = vmax.f32 %v3458_v26, 1.0 }
0x132f   : > { %4563 = vrcp.f32 %v3459_v46 }
0x1339   : > { %v4564_v53 = vpop.eup %4563 }
0x133a   : > { %v3461_v27 = vmul.f32 %v4564_v53, %v3454_v55 }
0x133c   : > { %4332 = vmatmul.mubr.msk.f32.vlgmr.msra.gmra.mrb[0].mxu0 %vm2065_vm13, %v3461_v27 }
0x140f   : > { %v3531_v28 = vpop.f32.mrb[0].mxu0 }
0x1410   : > { %3536 = vst.msk [vmem:[#allocation20] sm:$0x3] %vm3535_vm9, %v3531_v28  ;;  %v4333_v41 = vpop.f32.mrb[1].mxu0 }
0x1411 PF: > { %s6319_s23 = sld [smem:[#allocation34_spill]] }
0x1417   : > { %p4140_p5 = scmp.ne.s32.totalorder %s6319_s23, 2 }
0x1418   : > { %s3543_s16 = sld [smem:[#allocation4]] (!%p4140_p5)  ;;  %s4141_s5 = sld [smem:[#allocation4 + $0x1]] (!%p4140_p5)  ;;  %v5025_v60 = vmov (!%p4140_p5), 0.0   ;;  %vm3548_vm11 = vcmp.ge.s32.totalorder (!%p4140_p5), %v5551_v2, 8  ;;  %vm3556_vm3 = vcmask (!%p4140_p5), 123904   ;;  %v4353_v52 = vpack.c.bf16 (!%p4140_p5), %v6048_v18, %v6046_v16 }
0x1419   : > { %3540 = sbr.rel (%p4140_p5) target bundleno = 5768 (0x1688), region = 144  ;;  %4341 = vmatprep.subr.bf16.mxu1 (!%p4140_p5), %v5025_v60  ;;  %vm3549_vm12 = vmand (!%p4140_p5), %vm956_vm1, %vm3548_vm11  ;;  %v5026_v8 = vmov (!%p4140_p5), 0.0|0.0   ;;  %vm5027_vm1 = vmmov (!%p4140_p5), 0   ;;  %s6320_s8 = sld [smem:[#allocation54_spill]] (!%p4140_p5) }
0x141a   : > { %4352 = vmatprep.subr.bf16.mxu0 (!%p4140_p5), %v5026_v8  ;;  %4338 = vmatprep.mubr.msk.f32.mxu0 (!%p4140_p5), %vm5027_vm1, %v5025_v60  ;;  %s6321_s9 = sld [smem:[#allocation55_spill]] (!%p4140_p5) }
0x141b   : > { %4354 = vmatpush3.bf16.msra.mxu0 (!%p4140_p5), %v4353_v52  ;;  %4345 = vmatprep.mubr.msk.bf16.mxu1 (!%p4140_p5), %vm5027_vm1, %v5025_v60 }
0x141e   : > { %v3544_v29 = vstv (!%p4140_p5), %s3543_s16  ;;  %s3551_s11 = sadd.s32 (!%p4140_p5), 8, %s4141_s5 }
0x141f   : > { %vm3545_vm14 = vcmp.lt.s32.totalorder (!%p4140_p5), %v5551_v2, %v3544_v29  ;;  %v3552_v33 = vstv (!%p4140_p5), %s3551_s11  ;;  %v4565_v1 = vld [vmem:[%s6320_s8] sm:$0xff] (!%p4140_p5)   ;;  %v4566_v48 = vld [vmem:[%s6320_s8 + $0x8] sm:$0xff] (!%p4140_p5)  }
0x1420   : > { %vm3546_vm15 = vmand %vm950_vm0, %vm3545_vm14  ;;  %vm3553_vm2 = vcmp.lt.s32.totalorder %v5551_v2, %v3552_v33  ;;  %4342 = vmatpush3.bf16.msra.mxu1 %v4565_v1  ;;  %vm3636_vm0 = vcmask 254976   ;;  %v4143_v42 = vld [vmem:[%s6321_s9] ss:$0 sm:$0xff] }
0x1421   : > { %v3547_v34 = vsel %vm3546_vm15, 1.0, %v5025_v60  ;;  %vm3554_vm4 = vmand %vm3549_vm12, %vm3553_vm2  ;;  %4343 = vmatprep.subr.bf16.mxu1 %v5025_v60 }
0x1422   : > { %v3555_v20 = vsel %vm3554_vm4, 1.0, %v3547_v34 }
0x1423   : > { %v3557_v40 = vsel %vm3556_vm3, %v3555_v20, 0.0 }
0x1424   : > { %3558 = vadd.xlane.f32.xlu0 %v3557_v40  ;;  %4344 = vmatpush3.bf16.msra.mxu1 %v4566_v48 }
0x14b1   : > { %v3559_v2 = vpop.xlane.xlu0 %3558 }
0x14b2   : > { %v3560_v44 = vmax.f32 %v3559_v2, 1.0 }
0x14b4   : > { %4567 = vrcp.f32 %v3560_v44 }
0x14be   : > { %v4568_v45 = vpop.eup %4567 }
0x14bf   : > { %v3562_v47 = vmul.f32 %v4568_v45, %v3555_v20 }
0x14c1   : > { %4339 = vmatmul.mubr.msk.f32.vlgmr.msra.gmra.mrb[0].mxu0 %vm2065_vm13, %v3562_v47  ;;  %vm3711_vm13 = vcmask 17408  }
0x1594   : > { %v3632_v49 = vpop.f32.mrb[0].mxu0 }
0x1595   : > { %3637 = vst.msk [vmem:[#allocation21] sm:$0x3] %vm3636_vm0, %v3632_v49  ;;  %v3638_v30 = vpack.c.bf16 %v3632_v49, %v3632_v49  ;;  %v4340_v32 = vpop.f32.mrb[1].mxu0 }
0x1597   : > { %4346 = vmatmul.mubr.msk.bf16.vlgmr.msra.gmra.mrb[0].mxu1 %vm1086_vm10, %v3638_v30 }
0x166a   : > { %v3699_v25 = vpop.f32.mrb[0].mxu1 }
0x166b   : > { %v3700_v50 = vadd.f32 %v4143_v42, %v3699_v25  ;;  %v4347_v61 = vpop.f32.mrb[1].mxu1 }
0x166c   : > { %v3702_v63 = vpop.f32.mrb[2].mxu1 }
0x166d   : > { %v4147_v3 = vmul.f32 -1.442695, %v3700_v50  ;;  %v4348_v4 = vpop.f32.mrb[3].mxu1 }
0x166f   : > { %4569 = vpow2.f32 %v4147_v3 }
0x1679   : > { %v4570_v59 = vpop.eup %4569 }
0x167a   : > { %v3708_v56 = vadd.f32 1.0, %v4570_v59 }
0x167c   : > { %4571 = vrcp.f32 %v3708_v56 }
0x1686   : > { %v4572_v5 = vpop.eup %4571 }
0x1687   : > { %3712 = vst.msk [vmem:[#allocation23] sm:$0x3] %vm3711_vm13, %v4572_v5 }
0x1688 PF: > { %s6322_s30 = sld [smem:[#allocation34_spill]]  ;;  %s5028_s29 = smov [#allocation21]  }
0x1689   : > { %s3731_s28 = sshll.u32 %s5028_s29, 4  ;;  %s5029_s4 = smov [#allocation20]   ;;  %s3732_s28 = int_to_ptr.vmem [resolvable:$true] %s3731_s28 }
0x168a   : > { %s3720_s14 = sshll.u32 %s5029_s4, 4  ;;  %s4847_s3 = scalar_lea.vmem %s3732_s28, 32  ;;  %s3721_s14 = int_to_ptr.vmem [resolvable:$true] %s3720_s14 }
0x168b   : > { %p4848_p0 = scmp.ne.s32.totalorder %s3732_s28, %s4847_s3  ;;  %p4854_p3 = scmp.lt.s32.totalorder %s3732_s28, %s3732_s28 }
0x168c   : > { %p4855_p8 = scmp.lt.s32.totalorder %s4847_s3, %s4847_s3 }
0x168e   : > { %p4427_p10 = scmp.eq.s32.totalorder %s6322_s30, 2  ;;  %p4856_p13 = por %p4855_p8, %p4854_p3 }
0x1690   : > { %p4849_p2 = pnand %p4848_p0, %p4427_p10 }
0x1692   : > { %p4850_p9 = pneg %p4849_p2 }
0x1694   : > { %p4857_p12 = pnand %p4856_p13, %p4850_p9 }
0x1696   : > { %4860 = shalt.err (!%p4857_p12)
}
0x1697   : > { %s6323_s21 = sld [smem:[#allocation57_spill]] }
0x169d   : > { %s4861_s27 = scalar_lea.hbm %s6323_s21, 32 }
0x169e   : > { %p4862_p4 = scmp.ne.s32.totalorder %s6323_s21, %s4861_s27  ;;  %p4867_p7 = scmp.lt.u32.totalorder %s4861_s27, %s6323_s21 }
0x16a0   : > { %p4863_p6 = pnand %p4862_p4, %p4427_p10 }
0x16a2   : > { %p4864_p1 = pneg %p4863_p6 }
0x16a4   : > { %p4869_p11 = pnand %p4867_p7, %p4864_p1 }
0x16a6   : > { %4872 = shalt.err (!%p4869_p11)
}
0x16a7   : > { %4382 = dma.vmem_to_hbm [thread:$0]  (%p4427_p10), %s3732_s28, 32, %s6323_s21, [#allocation22]  }
0x16a8   : > { %s4873_s16 = scalar_lea.vmem %s3721_s14, 32  ;;  %p4880_p9 = scmp.lt.s32.totalorder %s3721_s14, %s3721_s14 }
0x16a9   : > { %p4874_p5 = scmp.ne.s32.totalorder %s3721_s14, %s4873_s16  ;;  %p4881_p3 = scmp.lt.s32.totalorder %s4873_s16, %s4873_s16 }
0x16ab   : > { %p4875_p0 = pnand %p4874_p5, %p4427_p10  ;;  %p4882_p8 = por %p4881_p3, %p4880_p9 }
0x16ad   : > { %p4876_p2 = pneg %p4875_p0 }
0x16af   : > { %p4883_p13 = pnand %p4882_p8, %p4876_p2 }
0x16b1   : > { %4886 = shalt.err (!%p4883_p13)
}
0x16b2   : > { %s6324_s6 = sld [smem:[#allocation56_spill]] }
0x16b8   : > { %s4887_s17 = scalar_lea.hbm %s6324_s6, 32 }
0x16b9   : > { %p4888_p12 = scmp.ne.s32.totalorder %s6324_s6, %s4887_s17  ;;  %p4893_p1 = scmp.lt.u32.totalorder %s4887_s17, %s6324_s6 }
0x16bb   : > { %p4889_p4 = pnand %p4888_p12, %p4427_p10 }
0x16bd   : > { %p4890_p6 = pneg %p4889_p4 }
0x16bf   : > { %p4895_p7 = pnand %p4893_p1, %p4890_p6 }
0x16c1   : > { %4898 = shalt.err (!%p4895_p7)
}
0x16c2   : > { %4380 = dma.vmem_to_hbm [thread:$0]  (%p4427_p10), %s3721_s14, 32, %s6324_s6, [#allocation7]  }
0x16c3   : > { %s5030_s28 = smov [#allocation23]  }
0x16c4   : > { %s3742_s4 = sshll.u32 %s5030_s28, 4  ;;  %s3743_s4 = int_to_ptr.vmem [resolvable:$true] %s3742_s4 }
0x16c5   : > { %s4899_s3 = scalar_lea.vmem %s3743_s4, 32  ;;  %p4906_p2 = scmp.lt.s32.totalorder %s3743_s4, %s3743_s4 }
0x16c6   : > { %p4900_p11 = scmp.ne.s32.totalorder %s3743_s4, %s4899_s3  ;;  %p4907_p9 = scmp.lt.s32.totalorder %s4899_s3, %s4899_s3 }
0x16c8   : > { %p4901_p5 = pnand %p4900_p11, %p4427_p10  ;;  %p4908_p3 = por %p4907_p9, %p4906_p2 }
0x16ca   : > { %p4902_p0 = pneg %p4901_p5 }
0x16cc   : > { %p4909_p8 = pnand %p4908_p3, %p4902_p0 }
0x16ce   : > { %4912 = shalt.err (!%p4909_p8)
}
0x16cf   : > { %s6325_s27 = sld [smem:[#allocation58_spill]] }
0x16d5   : > { %s4913_s0 = scalar_lea.hbm %s6325_s27, 32 }
0x16d6   : > { %p4914_p13 = scmp.ne.s32.totalorder %s6325_s27, %s4913_s0  ;;  %p4919_p6 = scmp.lt.u32.totalorder %s4913_s0, %s6325_s27 }
0x16d8   : > { %p4915_p12 = pnand %p4914_p13, %p4427_p10 }
0x16da   : > { %p4916_p4 = pneg %p4915_p12 }
0x16dc   : > { %p4921_p1 = pnand %p4919_p6, %p4916_p4 }
0x16de   : > { %4924 = shalt.err (!%p4921_p1)
}
0x16df   : > { %4384 = dma.vmem_to_hbm [thread:$0]  (%p4427_p10), %s3743_s4, 32, %s6325_s27, [#allocation22]  }
0x16e0   : > { %4964 = dma.done.wait (%p4427_p10), [#allocation7], 32  }
0x16e1   : > { %4966 = vsyncadd (%p4427_p10), [#allocation7], 4294967264 }
0x16e2   : > { %4968 = dma.done.wait (%p4427_p10), [#allocation22], 64  }
0x16e3   : > { %4970 = vsyncadd (%p4427_p10), [#allocation22], 4294967232 }
0x16e4 PF: > { %s6326_s23 = sld [smem:[#allocation35_spill]]  ;;  %s6327_s15 = sld [smem:[#allocation32_spill]] }
0x16e5   : > { %s6328_s5 = sld [smem:[#allocation33_spill]]  ;;  %s6329_s22 = sld [smem:[#allocation36_spill]] }
0x16ea   : > { %p46_p7 = scmp.ge.s32.totalorder %s6326_s23, 5  }
0x16ec   :  { %48 = sbr.rel (!%p46_p7) target bundleno = 38 (0x26), region = 251 }
0x16f3   :  { %3763 = vsyncpa [#allocation6], 1 }
0x16f4   :  { %3765 = vsyncpa [#allocation6 + $0x1], 1 }
0x16f5   :  { %3766 = vsyncpa [#allocation9], 1 }
0x16f6   :  { %3767 = vsyncpa [#allocation12], 1 }
0x16f7   :  { %3769 = vsyncpa [#allocation12 + $0x1], 1 }
0x16f8   :  { %3770 = vsyncpa [#allocation15], 1 }
0x16f9   :  { %3772 = vsyncpa [#allocation15 + $0x1], 1 }
0x16fa   :  { %3773 = vsyncpa [#allocation18], 1 }
0x16fb   :  { %3775 = vsyncpa [#allocation18 + $0x1], 1 }
0x16fc   :  { %3776 = vsyncpa [#allocation7], 1 }
0x16fd   :  { %3778 = vsyncpa [#allocation7 + $0x1], 1 }
0x16fe   :  { %3779 = vsyncpa [#allocation22], 1 }

</bundles_post_ra>
